<compile_context>
chip_gen: v6e
topology: v6e:2x2x1
jax: 0.10.0
libtpu: 0.0.40
codegen_flags: <defaults>
</compile_context>

<pallas_src>
import jax
import jax.numpy as jnp
import numpy as np
from jax.experimental import pallas as pl
from jax.experimental.pallas import tpu as pltpu

DTYPE = jnp.bfloat16   # matmul operand / activation storage dtype (f32 accumulation)

GW = 11       # flattened spatial grid width at every level (11x11 cell grid)
SIMG = 128    # per-image column stride (lane aligned), identical at every level

# conv1/conv2 outputs are computed on [0, TB*SIMG - _L1_CUT), conv3 on
# [0, TB*SIMG - _L3_CUT); the cut keeps shifted reads in bounds of the
# TB*SIMG-wide buffers.  These invariants are load-bearing:
_L1_CUT = 16
_L3_CUT = 32
assert 10 * GW + 10 < SIMG                    # s2d(8) input grid fits one image stride
assert GW + 1 <= _L1_CUT                      # conv1/conv2 max shift stays in bounds
assert 2 * GW + 2 <= _L3_CUT                  # conv3 max shift stays in bounds
assert SIMG - _L1_CUT >= 9 * GW + 9 + 1       # all valid conv1 columns are computed
assert SIMG - _L1_CUT >= 8 * GW + 8 + 1       # all valid conv2 columns are computed
assert SIMG - _L3_CUT >= 6 * GW + 6 + 1       # all valid conv3 columns are computed


def _conv1_tap_table():
    """Taps for conv1 (8x8 s4) on the s2d(8) input, output in s2d(2) layout.

    Each tap is (sub_grid, a, b, h): sub_grid = 2*r + s is the conv1-output
    s2d(2) sub-grid (output position (2p+r, 2q+s)); (a, b) picks the input 8x8
    cell (p+a, q+b); h picks the x8 half (x8 in [4h, 4h+4)) of that cell's 256
    channels, so every tap is a dense [32,128] x [128,N] matmul.
    """
    taps = []
    for r in (0, 1):
        for s in (0, 1):
            for a in ((0,) if r == 0 else (0, 1)):
                for b in ((0,) if s == 0 else (0, 1)):
                    halves = (0, 1) if s == 0 else (1 - b,)
                    for h in halves:
                        taps.append((2 * r + s, a, b, h))
    return tuple(taps)


CONV1_TAPS = _conv1_tap_table()
N_TAPS = len(CONV1_TAPS)          # 12


# --------------------------------------------------------------------------
# Kernel 1: fused conv1 + conv2 + conv3 (bias + ReLU), TB images per grid step
# --------------------------------------------------------------------------
def _conv_stack_kernel(xs_ref, w1_ref, b1_ref, w2_ref, b2_ref, w3_ref, b3_ref,
                       o_ref, a1_ref, a2_ref, a3_ref):
    tb = o_ref.shape[0]
    tbs = a1_ref.shape[1]                  # tb * SIMG
    l1 = tbs - _L1_CUT                     # conv1 / conv2 computed columns
    l3 = tbs - _L3_CUT                     # conv3 computed columns

    # Keep every stored value finite (fc1's zero weight rows rely on it).
    a1_ref[:, l1:] = jnp.zeros((a1_ref.shape[0], tbs - l1), a1_ref.dtype)
    a2_ref[:, l1:] = jnp.zeros((a2_ref.shape[0], tbs - l1), a2_ref.dtype)
    a3_ref[:, l3:] = jnp.zeros((a3_ref.shape[0], tbs - l3), a3_ref.dtype)

    # ---- conv1 (8x8, stride 4): 12 half-cell taps, s2d(2)-ordered output -----
    # a1 row = (2r+s)*32 + c_out, col = t*SIMG + p*GW + q  <->  output (2p+r, 2q+s).
    for sg in range(4):
        acc = None
        for tidx, (sg_t, a, b, h) in enumerate(CONV1_TAPS):
            if sg_t != sg:
                continue
            off = a * GW + b
            part = jnp.dot(w1_ref[tidx],
                           xs_ref[0, h * 128:(h + 1) * 128, off:off + l1],
                           preferred_element_type=jnp.float32)
            acc = part if acc is None else acc + part
        a1_ref[sg * 32:(sg + 1) * 32, :l1] = (
            jnp.maximum(acc + b1_ref[...], 0.0).astype(a1_ref.dtype))

    # ---- conv2 (4x4, stride 2) == 2x2 stride-1 conv over 128 s2d(2) channels --
    acc2 = None
    for a in range(2):
        for b in range(2):
            off = a * GW + b
            part = jnp.dot(w2_ref[a * 2 + b], a1_ref[:, off:off + l1],
                           preferred_element_type=jnp.float32)
            acc2 = part if acc2 is None else acc2 + part
    a2_ref[:, :l1] = jnp.maximum(acc2 + b2_ref[...], 0.0).astype(a2_ref.dtype)

    # ---- conv3 (3x3, stride 1) ------------------------------------------------
    acc3 = None
    for i in range(3):
        for j in range(3):
            off = i * GW + j
            part = jnp.dot(w3_ref[i * 3 + j], a2_ref[:, off:off + l3],
                           preferred_element_type=jnp.float32)
            acc3 = part if acc3 is None else acc3 + part
    a3_ref[:, :l3] = jnp.maximum(acc3 + b3_ref[...], 0.0).astype(a3_ref.dtype)

    # lane-dense per-image [32, 128] writeback
    for t in range(tb):
        o_ref[t] = a3_ref[:, t * SIMG:(t + 1) * SIMG]


def conv_stack(xs, p, tb):
    """xs: [B//tb, 256, tb*SIMG] bf16 (s2d(8) frames) -> [B, 32, SIMG] bf16."""
    nb = xs.shape[0]
    tbs = tb * SIMG
    assert xs.shape == (nb, 256, tbs)
    B = nb * tb
    return pl.pallas_call(
        _conv_stack_kernel,
        out_shape=jax.ShapeDtypeStruct((B, 32, SIMG), DTYPE),
        grid_spec=pltpu.PrefetchScalarGridSpec(
            num_scalar_prefetch=0,
            grid=(nb,),
            in_specs=[
                pl.BlockSpec((1, 256, tbs), lambda b: (b, 0, 0)),     # s2d(8) frames
                pl.BlockSpec((N_TAPS, 32, 128), lambda b: (0, 0, 0)),  # conv1 taps (resident)
                pl.BlockSpec((32, 1), lambda b: (0, 0)),               # conv1 b
                pl.BlockSpec((4, 64, 128), lambda b: (0, 0, 0)),       # conv2 taps
                pl.BlockSpec((64, 1), lambda b: (0, 0)),               # conv2 b
                pl.BlockSpec((9, 32, 64), lambda b: (0, 0, 0)),        # conv3 taps
                pl.BlockSpec((32, 1), lambda b: (0, 0)),               # conv3 b
            ],
            out_specs=pl.BlockSpec((tb, 32, SIMG), lambda b: (b, 0, 0)),
            scratch_shapes=[
                pltpu.VMEM((128, tbs), DTYPE),   # conv1 activations (s2d(2) layout)
                pltpu.VMEM((64, tbs), DTYPE),    # conv2 activations
                pltpu.VMEM((32, tbs), DTYPE),    # conv3 activations
            ],
        ),
        compiler_params=pltpu.CompilerParams(dimension_semantics=("parallel",)),
    )(xs, p["w1"], p["b1"], p["w2"], p["b2"], p["w3"], p["b3"])


# --------------------------------------------------------------------------
# Kernel 2: fused fc1 + ReLU + action_value (batch tiled, fc1 weight resident)
# --------------------------------------------------------------------------
def _fc_head_kernel(x_ref, w1_ref, b1_ref, w2_ref, b2_ref, o_ref):
    h = jnp.dot(x_ref[...], w1_ref[...], preferred_element_type=jnp.float32)
    h = jnp.maximum(h + b1_ref[...], 0.0)
    out = jnp.dot(h.astype(w2_ref.dtype), w2_ref[...],
                  preferred_element_type=jnp.float32)
    o_ref[...] = (out + b2_ref[...]).astype(o_ref.dtype)


def fc_head(x, p):
    """x: [B, 32*SIMG] bf16 -> action values [B, A] f32."""
    B, K = x.shape
    n1 = p["fc1_w"].shape[1]
    A = p["av_w"].shape[1]
    tbf = _fc_batch_tile(B)
    return pl.pallas_call(
        _fc_head_kernel,
        out_shape=jax.ShapeDtypeStruct((B, A), jnp.float32),
        grid_spec=pltpu.PrefetchScalarGridSpec(
            num_scalar_prefetch=0,
            grid=(B // tbf,),
            in_specs=[
                pl.BlockSpec((tbf, K), lambda i: (i, 0)),
                pl.BlockSpec((K, n1), lambda i: (0, 0)),   # fc1 w (resident, ~2 MB bf16)
                pl.BlockSpec((1, n1), lambda i: (0, 0)),
                pl.BlockSpec((n1, A), lambda i: (0, 0)),   # action_value w
                pl.BlockSpec((1, A), lambda i: (0, 0)),
            ],
            out_specs=pl.BlockSpec((tbf, A), lambda i: (i, 0)),
        ),
        compiler_params=pltpu.CompilerParams(dimension_semantics=("parallel",)),
    )(x, p["fc1_w"], p["fc1_b"], p["av_w"], p["av_b"])


# --------------------------------------------------------------------------
# Batch tiling choices (>=2 grid steps whenever B > 1, for v7x megacore)
# --------------------------------------------------------------------------
def _conv_batch_tile(B):
    for tb in (16, 8, 4, 2):
        if B % tb == 0 and B // tb >= 2:
            return tb
    return 1


def _fc_batch_tile(B):
    for t in (128, 64, 32, 16, 8):       # multiples of 8 -> clean sublane tiling
        if B % t == 0 and B // t >= 2:
            return t
    return B


# --------------------------------------------------------------------------
# Input layout prep: space-to-depth(8) of the raw frames (only per-forward
# XLA layout op; exactly input-sized, bf16).
# --------------------------------------------------------------------------
def _space_to_depth8(x, tb):
    """[B,4,84,84] -> [B//tb, 256, tb*SIMG] bf16.

    Row = x8*32 + y8*4 + c (8x8 pixel cell, channel-minor);
    col = t_in_block*SIMG + P*GW + Q over the 11x11 grid of cells.
    """
    B = x.shape[0]
    x = x.astype(DTYPE)                                   # pixel values <=255 exact in bf16
    x = jnp.pad(x, ((0, 0), (0, 0), (0, 4), (0, 4)))      # 84 -> 88 (zero taps cover the pad)
    x = x.reshape(B, 4, 11, 8, 11, 8)                     # [B, c, P, y8, Q, x8]
    x = x.transpose(0, 5, 3, 1, 2, 4)                     # [B, x8, y8, c, P, Q]
    x = x.reshape(B, 256, 11 * 11)
    x = jnp.pad(x, ((0, 0), (0, 0), (0, SIMG - 11 * 11)))
    x = x.reshape(B // tb, tb, 256, SIMG)
    return x.transpose(0, 2, 1, 3).reshape(B // tb, 256, tb * SIMG)


# --------------------------------------------------------------------------
# Parameter init (PyTorch layout, mirrors module __init__) + one-time prep
# --------------------------------------------------------------------------
def _orthogonal(key, shape, gain):
    rows = shape[0]
    cols = int(np.prod(shape[1:]))
    a = jax.random.normal(key, (max(rows, cols), min(rows, cols)), dtype=jnp.float32)
    q, r = jnp.linalg.qr(a)
    q = q * jnp.sign(jnp.diagonal(r))
    if rows < cols:
        q = q.T
    return (gain * q[:rows, :cols]).reshape(shape).astype(jnp.float32)


def init_params(num_actions, key):
    g = float(np.sqrt(2.0))  # calculate_gain('relu')
    k = jax.random.split(key, 6)
    return {
        "conv1_w": _orthogonal(k[0], (32, 4, 8, 8), g),
        "conv1_b": jnp.zeros((32,), jnp.float32),
        "conv2_w": _orthogonal(k[1], (64, 32, 4, 4), g),
        "conv2_b": jnp.zeros((64,), jnp.float32),
        "conv3_w": _orthogonal(k[2], (32, 64, 3, 3), g),
        "conv3_b": jnp.zeros((32,), jnp.float32),
        "fc1_w": _orthogonal(k[3], (256, 32 * 7 * 7), g),
        "fc1_b": jnp.zeros((256,), jnp.float32),
        # action_value: PyTorch default Linear init (uniform +-1/sqrt(fan_in))
        "av_w": jax.random.uniform(k[4], (num_actions, 256), jnp.float32,
                                   -1.0 / np.sqrt(256.0), 1.0 / np.sqrt(256.0)),
        "av_b": jax.random.uniform(k[5], (num_actions,), jnp.float32,
                                   -1.0 / np.sqrt(256.0), 1.0 / np.sqrt(256.0)),
    }


def prepare_params(raw):
    """One-time weight prep: fold 1/255, reorder for the fused kernels, cast bf16."""
    # conv1: 12 half-cell taps [32, 128] over the s2d(8) channel order x8*32+y8*4+c.
    c1 = np.asarray(jax.device_get(raw["conv1_w"]), np.float32)
    w1 = np.zeros((N_TAPS, 32, 128), np.float32)
    for tidx, (sg, a, b, h) in enumerate(CONV1_TAPS):
        r, s = sg // 2, sg % 2
        for c in range(4):
            for y8 in range(8):
                kh = y8 - 4 * r + 8 * a
                if not 0 <= kh < 8:
                    continue
                for xl in range(4):
                    x8 = 4 * h + xl
                    kw = x8 - 4 * s + 8 * b
                    if not 0 <= kw < 8:
                        continue
                    w1[tidx, :, xl * 32 + y8 * 4 + c] = c1[:, c, kh, kw] / 255.0
    w1 = jnp.asarray(w1).astype(DTYPE)

    # conv2: [a*2+b, c_out, (r*2+s)*32 + c_in] with kernel index kh=2a+r, kw=2b+s.
    w2 = (raw["conv2_w"].reshape(64, 32, 2, 2, 2, 2)
          .transpose(2, 4, 0, 3, 5, 1).reshape(4, 64, 128).astype(DTYPE))
    # conv3: [i*3+j, c_out, c_in].
    w3 = raw["conv3_w"].transpose(2, 3, 0, 1).reshape(9, 32, 64).astype(DTYPE)

    # fc1: pre-transposed [32*SIMG, 256]; input index co*SIMG + y*GW + x with
    # zero rows everywhere outside the valid 7x7 conv3 grid (load-bearing: it
    # discards the finite garbage columns of the padded conv3 layout).
    wf = raw["fc1_w"].reshape(256, 32, 7, 7)
    wf = jnp.pad(wf, ((0, 0), (0, 0), (0, 0), (0, GW - 7)))
    wf = wf.reshape(256, 32, 7 * GW)
    wf = jnp.pad(wf, ((0, 0), (0, 0), (0, SIMG - 7 * GW)))
    fc1_w = wf.reshape(256, 32 * SIMG).T.astype(DTYPE)

    return {
        "w1": w1, "b1": raw["conv1_b"].reshape(32, 1).astype(jnp.float32),
        "w2": w2, "b2": raw["conv2_b"].reshape(64, 1).astype(jnp.float32),
        "w3": w3, "b3": raw["conv3_b"].reshape(32, 1).astype(jnp.float32),
        "fc1_w": fc1_w,
        "fc1_b": raw["fc1_b"].reshape(1, 256).astype(jnp.float32),
        "av_w": raw["av_w"].T.astype(DTYPE),
        "av_b": raw["av_b"].reshape(1, -1).astype(jnp.float32),
    }


# --------------------------------------------------------------------------
# Net.forward
# --------------------------------------------------------------------------
def net_forward(params, inputs):
    """inputs: [B, 4, 84, 84] (NCHW, raw pixels) -> action values [B, A] f32."""
    B = inputs.shape[0]
    tb = _conv_batch_tile(B)
    xs = _space_to_depth8(inputs, tb)        # 1/255 is folded into the conv1 taps
    conv_out = conv_stack(xs, params, tb)    # [B, 32, SIMG] bf16, lane-dense
    flat = conv_out.reshape(B, 32 * SIMG)    # small XLA relayout (~8 KB/image); see TODO above
    return fc_head(flat, params)             # [B, A] f32


# --------------------------------------------------------------------------
# Plain-JAX reference (f32) for a numerics sanity check
# --------------------------------------------------------------------------
def reference_forward(raw, x):
    x = x.astype(jnp.float32) / 255.0

    def conv(h, w, b, stride):
        y = jax.lax.conv_general_dilated(
            h, w, (stride, stride), "VALID",
            dimension_numbers=("NCHW", "OIHW", "NCHW"))
        return jax.nn.relu(y + b.reshape(1, -1, 1, 1))

    h = conv(x, raw["conv1_w"], raw["conv1_b"], 4)
    h = conv(h, raw["conv2_w"], raw["conv2_b"], 2)
    h = conv(h, raw["conv3_w"], raw["conv3_b"], 1)
    h = h.reshape(h.shape[0], 32 * 7 * 7)
    h = jax.nn.relu(h @ raw["fc1_w"].T + raw["fc1_b"])
    return h @ raw["av_w"].T + raw["av_b"]


if __name__ == "__main__":
    num_actions = 6
    batch = 2  # input spatial size is fixed at 84x84 by fc1 = Linear(32*7*7, 256)

    key = jax.random.PRNGKey(0)
    k_params, k_x = jax.random.split(key)
    raw = init_params(num_actions, k_params)
    params = prepare_params(raw)

    x = jax.random.randint(k_x, (batch, 4, 84, 84), 0, 256, dtype=jnp.int32)
    x = x.astype(jnp.float32)

    out = jax.jit(net_forward)(params, x)
    jax.block_until_ready(out)
    assert out.shape == (batch, num_actions), out.shape
    assert out.dtype == jnp.float32

    # numerics sanity check against the f32 reference (bf16 operand/storage tolerance)
    ref = reference_forward(raw, x)
    err = float(jnp.max(jnp.abs(out - ref)))
    scale = float(jnp.max(jnp.abs(ref))) + 1e-3
    assert err <= 0.07 * scale + 0.07, (err, scale)

    print("KERNEL_OK")
</pallas_src>

<mosaic_0001>
module attributes {stable_mosaic.version = 11 : i64} {
  func.func @_conv_stack_kernel(%arg0: i32, %arg1: memref<1x256x128xbf16, #tpu.memory_space<vmem>>, %arg2: memref<12x32x128xbf16, #tpu.memory_space<vmem>>, %arg3: memref<32x1xf32, #tpu.memory_space<vmem>>, %arg4: memref<4x64x128xbf16, #tpu.memory_space<vmem>>, %arg5: memref<64x1xf32, #tpu.memory_space<vmem>>, %arg6: memref<9x32x64xbf16, #tpu.memory_space<vmem>>, %arg7: memref<32x1xf32, #tpu.memory_space<vmem>>, %arg8: memref<1x32x128xbf16, #tpu.memory_space<vmem>>, %arg9: memref<128x128xbf16, #tpu.memory_space<vmem>>, %arg10: memref<64x128xbf16, #tpu.memory_space<vmem>>, %arg11: memref<32x128xbf16, #tpu.memory_space<vmem>>) attributes {dimension_semantics = [#tpu.dimension_semantics<parallel>], iteration_bounds = array<i64: 2>, scalar_prefetch = 0 : i64, scratch_operands = 3 : i64, tpu.core_type = #tpu.core_type<tc>, window_params = [{transform_indices = @transform_0, window_bounds = array<i64: 1, 256, 128>}, {pipeline_mode = #tpu.pipeline_mode<synchronous>, transform_indices = @transform_1, window_bounds = array<i64: 12, 32, 128>}, {pipeline_mode = #tpu.pipeline_mode<synchronous>, transform_indices = @transform_2, window_bounds = array<i64: 32, 1>}, {pipeline_mode = #tpu.pipeline_mode<synchronous>, transform_indices = @transform_3, window_bounds = array<i64: 4, 64, 128>}, {pipeline_mode = #tpu.pipeline_mode<synchronous>, transform_indices = @transform_4, window_bounds = array<i64: 64, 1>}, {pipeline_mode = #tpu.pipeline_mode<synchronous>, transform_indices = @transform_5, window_bounds = array<i64: 9, 32, 64>}, {pipeline_mode = #tpu.pipeline_mode<synchronous>, transform_indices = @transform_6, window_bounds = array<i64: 32, 1>}, {transform_indices = @transform_7, window_bounds = array<i64: 1, 32, 128>}]} {
    %cst = arith.constant 0.000000e+00 : bf16
    %0 = vector.broadcast %cst : bf16 to vector<128x16xbf16>
    %c0 = arith.constant 0 : index
    %c112 = arith.constant 112 : index
    %1 = vector.load %arg9[%c0, %c112] : memref<128x128xbf16, #tpu.memory_space<vmem>>, vector<128x16xbf16>
    tpu.vector_store %arg9[%c0, %c112], %0 {strides = array<i32>} : memref<128x128xbf16, #tpu.memory_space<vmem>>, vector<128x16xbf16>,
    %cst_0 = arith.constant 0.000000e+00 : bf16
    %2 = vector.broadcast %cst_0 : bf16 to vector<64x16xbf16>
    %c0_1 = arith.constant 0 : index
    %c112_2 = arith.constant 112 : index
    %3 = vector.load %arg10[%c0_1, %c112_2] : memref<64x128xbf16, #tpu.memory_space<vmem>>, vector<64x16xbf16>
    tpu.vector_store %arg10[%c0_1, %c112_2], %2 {strides = array<i32>} : memref<64x128xbf16, #tpu.memory_space<vmem>>, vector<64x16xbf16>,
    %cst_3 = arith.constant 0.000000e+00 : bf16
    %4 = vector.broadcast %cst_3 : bf16 to vector<32x32xbf16>
    %c0_4 = arith.constant 0 : index
    %c96 = arith.constant 96 : index
    %5 = vector.load %arg11[%c0_4, %c96] : memref<32x128xbf16, #tpu.memory_space<vmem>>, vector<32x32xbf16>
    tpu.vector_store %arg11[%c0_4, %c96], %4 {strides = array<i32>} : memref<32x128xbf16, #tpu.memory_space<vmem>>, vector<32x32xbf16>,
    %c0_5 = arith.constant 0 : index
    %c0_6 = arith.constant 0 : index
    %c0_7 = arith.constant 0 : index
    %6 = vector.load %arg2[%c0_5, %c0_6, %c0_7] : memref<12x32x128xbf16, #tpu.memory_space<vmem>>, vector<1x32x128xbf16>
    %7 = vector.shape_cast %6 : vector<1x32x128xbf16> to vector<32x128xbf16>
    %c0_8 = arith.constant 0 : index
    %c0_9 = arith.constant 0 : index
    %c0_10 = arith.constant 0 : index
    %8 = vector.load %arg1[%c0_8, %c0_9, %c0_10] : memref<1x256x128xbf16, #tpu.memory_space<vmem>>, vector<1x128x112xbf16>
    %9 = vector.shape_cast %8 : vector<1x128x112xbf16> to vector<128x112xbf16>
    %cst_11 = arith.constant dense<0.000000e+00> : vector<32x112xf32>
    %10 = tpu.matmul %7, %9, %cst_11 {dimension_numbers = #tpu.dot_dimension_numbers<[1], [0], [0], [1], [0, 0, 1, 1], [], []>} : vector<32x128xbf16>, vector<128x112xbf16>, vector<32x112xf32> -> vector<32x112xf32>
    %c1 = arith.constant 1 : index
    %c0_12 = arith.constant 0 : index
    %c0_13 = arith.constant 0 : index
    %11 = vector.load %arg2[%c1, %c0_12, %c0_13] : memref<12x32x128xbf16, #tpu.memory_space<vmem>>, vector<1x32x128xbf16>
    %12 = vector.shape_cast %11 : vector<1x32x128xbf16> to vector<32x128xbf16>
    %c0_14 = arith.constant 0 : index
    %c128 = arith.constant 128 : index
    %c0_15 = arith.constant 0 : index
    %13 = vector.load %arg1[%c0_14, %c128, %c0_15] : memref<1x256x128xbf16, #tpu.memory_space<vmem>>, vector<1x128x112xbf16>
    %14 = vector.shape_cast %13 : vector<1x128x112xbf16> to vector<128x112xbf16>
    %cst_16 = arith.constant dense<0.000000e+00> : vector<32x112xf32>
    %15 = tpu.matmul %12, %14, %cst_16 {dimension_numbers = #tpu.dot_dimension_numbers<[1], [0], [0], [1], [0, 0, 1, 1], [], []>} : vector<32x128xbf16>, vector<128x112xbf16>, vector<32x112xf32> -> vector<32x112xf32>
    %16 = arith.addf %10, %15 : vector<32x112xf32>
    %c0_17 = arith.constant 0 : index
    %c0_18 = arith.constant 0 : index
    %17 = vector.load %arg3[%c0_17, %c0_18] : memref<32x1xf32, #tpu.memory_space<vmem>>, vector<32x1xf32>
    %18 = vector.broadcast %17 : vector<32x1xf32> to vector<32x112xf32>
    %19 = arith.addf %16, %18 : vector<32x112xf32>
    %cst_19 = arith.constant 0.000000e+00 : f32
    %20 = vector.broadcast %cst_19 : f32 to vector<32x112xf32>
    %21 = arith.maximumf %19, %20 : vector<32x112xf32>
    %22 = arith.truncf %21 : vector<32x112xf32> to vector<32x112xbf16>
    %c0_20 = arith.constant 0 : index
    %c0_21 = arith.constant 0 : index
    %23 = vector.load %arg9[%c0_20, %c0_21] : memref<128x128xbf16, #tpu.memory_space<vmem>>, vector<32x112xbf16>
    tpu.vector_store %arg9[%c0_20, %c0_21], %22 {strides = array<i32>} : memref<128x128xbf16, #tpu.memory_space<vmem>>, vector<32x112xbf16>,
    %c2 = arith.constant 2 : index
    %c0_22 = arith.constant 0 : index
    %c0_23 = arith.constant 0 : index
    %24 = vector.load %arg2[%c2, %c0_22, %c0_23] : memref<12x32x128xbf16, #tpu.memory_space<vmem>>, vector<1x32x128xbf16>
    %25 = vector.shape_cast %24 : vector<1x32x128xbf16> to vector<32x128xbf16>
    %c0_24 = arith.constant 0 : index
    %c128_25 = arith.constant 128 : index
    %c0_26 = arith.constant 0 : index
    %26 = vector.load %arg1[%c0_24, %c128_25, %c0_26] : memref<1x256x128xbf16, #tpu.memory_space<vmem>>, vector<1x128x112xbf16>
    %27 = vector.shape_cast %26 : vector<1x128x112xbf16> to vector<128x112xbf16>
    %cst_27 = arith.constant dense<0.000000e+00> : vector<32x112xf32>
    %28 = tpu.matmul %25, %27, %cst_27 {dimension_numbers = #tpu.dot_dimension_numbers<[1], [0], [0], [1], [0, 0, 1, 1], [], []>} : vector<32x128xbf16>, vector<128x112xbf16>, vector<32x112xf32> -> vector<32x112xf32>
    %c3 = arith.constant 3 : index
    %c0_28 = arith.constant 0 : index
    %c0_29 = arith.constant 0 : index
    %29 = vector.load %arg2[%c3, %c0_28, %c0_29] : memref<12x32x128xbf16, #tpu.memory_space<vmem>>, vector<1x32x128xbf16>
    %30 = vector.shape_cast %29 : vector<1x32x128xbf16> to vector<32x128xbf16>
    %c0_30 = arith.constant 0 : index
    %c0_31 = arith.constant 0 : index
    %c1_32 = arith.constant 1 : index
    %31 = vector.load %arg1[%c0_30, %c0_31, %c1_32] : memref<1x256x128xbf16, #tpu.memory_space<vmem>>, vector<1x128x112xbf16>
    %32 = vector.shape_cast %31 : vector<1x128x112xbf16> to vector<128x112xbf16>
    %cst_33 = arith.constant dense<0.000000e+00> : vector<32x112xf32>
    %33 = tpu.matmul %30, %32, %cst_33 {dimension_numbers = #tpu.dot_dimension_numbers<[1], [0], [0], [1], [0, 0, 1, 1], [], []>} : vector<32x128xbf16>, vector<128x112xbf16>, vector<32x112xf32> -> vector<32x112xf32>
    %34 = arith.addf %28, %33 : vector<32x112xf32>
    %c0_34 = arith.constant 0 : index
    %c0_35 = arith.constant 0 : index
    %35 = vector.load %arg3[%c0_34, %c0_35] : memref<32x1xf32, #tpu.memory_space<vmem>>, vector<32x1xf32>
    %36 = vector.broadcast %35 : vector<32x1xf32> to vector<32x112xf32>
    %37 = arith.addf %34, %36 : vector<32x112xf32>
    %cst_36 = arith.constant 0.000000e+00 : f32
    %38 = vector.broadcast %cst_36 : f32 to vector<32x112xf32>
    %39 = arith.maximumf %37, %38 : vector<32x112xf32>
    %40 = arith.truncf %39 : vector<32x112xf32> to vector<32x112xbf16>
    %c32 = arith.constant 32 : index
    %c0_37 = arith.constant 0 : index
    %41 = vector.load %arg9[%c32, %c0_37] : memref<128x128xbf16, #tpu.memory_space<vmem>>, vector<32x112xbf16>
    tpu.vector_store %arg9[%c32, %c0_37], %40 {strides = array<i32>} : memref<128x128xbf16, #tpu.memory_space<vmem>>, vector<32x112xbf16>,
    %c4 = arith.constant 4 : index
    %c0_38 = arith.constant 0 : index
    %c0_39 = arith.constant 0 : index
    %42 = vector.load %arg2[%c4, %c0_38, %c0_39] : memref<12x32x128xbf16, #tpu.memory_space<vmem>>, vector<1x32x128xbf16>
    %43 = vector.shape_cast %42 : vector<1x32x128xbf16> to vector<32x128xbf16>
    %c0_40 = arith.constant 0 : index
    %c0_41 = arith.constant 0 : index
    %c0_42 = arith.constant 0 : index
    %44 = vector.load %arg1[%c0_40, %c0_41, %c0_42] : memref<1x256x128xbf16, #tpu.memory_space<vmem>>, vector<1x128x112xbf16>
    %45 = vector.shape_cast %44 : vector<1x128x112xbf16> to vector<128x112xbf16>
    %cst_43 = arith.constant dense<0.000000e+00> : vector<32x112xf32>
    %46 = tpu.matmul %43, %45, %cst_43 {dimension_numbers = #tpu.dot_dimension_numbers<[1], [0], [0], [1], [0, 0, 1, 1], [], []>} : vector<32x128xbf16>, vector<128x112xbf16>, vector<32x112xf32> -> vector<32x112xf32>
    %c5 = arith.constant 5 : index
    %c0_44 = arith.constant 0 : index
    %c0_45 = arith.constant 0 : index
    %47 = vector.load %arg2[%c5, %c0_44, %c0_45] : memref<12x32x128xbf16, #tpu.memory_space<vmem>>, vector<1x32x128xbf16>
    %48 = vector.shape_cast %47 : vector<1x32x128xbf16> to vector<32x128xbf16>
    %c0_46 = arith.constant 0 : index
    %c128_47 = arith.constant 128 : index
    %c0_48 = arith.constant 0 : index
    %49 = vector.load %arg1[%c0_46, %c128_47, %c0_48] : memref<1x256x128xbf16, #tpu.memory_space<vmem>>, vector<1x128x112xbf16>
    %50 = vector.shape_cast %49 : vector<1x128x112xbf16> to vector<128x112xbf16>
    %cst_49 = arith.constant dense<0.000000e+00> : vector<32x112xf32>
    %51 = tpu.matmul %48, %50, %cst_49 {dimension_numbers = #tpu.dot_dimension_numbers<[1], [0], [0], [1], [0, 0, 1, 1], [], []>} : vector<32x128xbf16>, vector<128x112xbf16>, vector<32x112xf32> -> vector<32x112xf32>
    %52 = arith.addf %46, %51 : vector<32x112xf32>
    %c6 = arith.constant 6 : index
    %c0_50 = arith.constant 0 : index
    %c0_51 = arith.constant 0 : index
    %53 = vector.load %arg2[%c6, %c0_50, %c0_51] : memref<12x32x128xbf16, #tpu.memory_space<vmem>>, vector<1x32x128xbf16>
    %54 = vector.shape_cast %53 : vector<1x32x128xbf16> to vector<32x128xbf16>
    %c0_52 = arith.constant 0 : index
    %c0_53 = arith.constant 0 : index
    %c11 = arith.constant 11 : index
    %55 = vector.load %arg1[%c0_52, %c0_53, %c11] : memref<1x256x128xbf16, #tpu.memory_space<vmem>>, vector<1x128x112xbf16>
    %56 = vector.shape_cast %55 : vector<1x128x112xbf16> to vector<128x112xbf16>
    %cst_54 = arith.constant dense<0.000000e+00> : vector<32x112xf32>
    %57 = tpu.matmul %54, %56, %cst_54 {dimension_numbers = #tpu.dot_dimension_numbers<[1], [0], [0], [1], [0, 0, 1, 1], [], []>} : vector<32x128xbf16>, vector<128x112xbf16>, vector<32x112xf32> -> vector<32x112xf32>
    %58 = arith.addf %52, %57 : vector<32x112xf32>
    %c7 = arith.constant 7 : index
    %c0_55 = arith.constant 0 : index
    %c0_56 = arith.constant 0 : index
    %59 = vector.load %arg2[%c7, %c0_55, %c0_56] : memref<12x32x128xbf16, #tpu.memory_space<vmem>>, vector<1x32x128xbf16>
    %60 = vector.shape_cast %59 : vector<1x32x128xbf16> to vector<32x128xbf16>
    %c0_57 = arith.constant 0 : index
    %c128_58 = arith.constant 128 : index
    %c11_59 = arith.constant 11 : index
    %61 = vector.load %arg1[%c0_57, %c128_58, %c11_59] : memref<1x256x128xbf16, #tpu.memory_space<vmem>>, vector<1x128x112xbf16>
    %62 = vector.shape_cast %61 : vector<1x128x112xbf16> to vector<128x112xbf16>
    %cst_60 = arith.constant dense<0.000000e+00> : vector<32x112xf32>
    %63 = tpu.matmul %60, %62, %cst_60 {dimension_numbers = #tpu.dot_dimension_numbers<[1], [0], [0], [1], [0, 0, 1, 1], [], []>} : vector<32x128xbf16>, vector<128x112xbf16>, vector<32x112xf32> -> vector<32x112xf32>
    %64 = arith.addf %58, %63 : vector<32x112xf32>
    %c0_61 = arith.constant 0 : index
    %c0_62 = arith.constant 0 : index
    %65 = vector.load %arg3[%c0_61, %c0_62] : memref<32x1xf32, #tpu.memory_space<vmem>>, vector<32x1xf32>
    %66 = vector.broadcast %65 : vector<32x1xf32> to vector<32x112xf32>
    %67 = arith.addf %64, %66 : vector<32x112xf32>
    %cst_63 = arith.constant 0.000000e+00 : f32
    %68 = vector.broadcast %cst_63 : f32 to vector<32x112xf32>
    %69 = arith.maximumf %67, %68 : vector<32x112xf32>
    %70 = arith.truncf %69 : vector<32x112xf32> to vector<32x112xbf16>
    %c64 = arith.constant 64 : index
    %c0_64 = arith.constant 0 : index
    %71 = vector.load %arg9[%c64, %c0_64] : memref<128x128xbf16, #tpu.memory_space<vmem>>, vector<32x112xbf16>
    tpu.vector_store %arg9[%c64, %c0_64], %70 {strides = array<i32>} : memref<128x128xbf16, #tpu.memory_space<vmem>>, vector<32x112xbf16>,
    %c8 = arith.constant 8 : index
    %c0_65 = arith.constant 0 : index
    %c0_66 = arith.constant 0 : index
    %72 = vector.load %arg2[%c8, %c0_65, %c0_66] : memref<12x32x128xbf16, #tpu.memory_space<vmem>>, vector<1x32x128xbf16>
    %73 = vector.shape_cast %72 : vector<1x32x128xbf16> to vector<32x128xbf16>
    %c0_67 = arith.constant 0 : index
    %c128_68 = arith.constant 128 : index
    %c0_69 = arith.constant 0 : index
    %74 = vector.load %arg1[%c0_67, %c128_68, %c0_69] : memref<1x256x128xbf16, #tpu.memory_space<vmem>>, vector<1x128x112xbf16>
    %75 = vector.shape_cast %74 : vector<1x128x112xbf16> to vector<128x112xbf16>
    %cst_70 = arith.constant dense<0.000000e+00> : vector<32x112xf32>
    %76 = tpu.matmul %73, %75, %cst_70 {dimension_numbers = #tpu.dot_dimension_numbers<[1], [0], [0], [1], [0, 0, 1, 1], [], []>} : vector<32x128xbf16>, vector<128x112xbf16>, vector<32x112xf32> -> vector<32x112xf32>
    %c9 = arith.constant 9 : index
    %c0_71 = arith.constant 0 : index
    %c0_72 = arith.constant 0 : index
    %77 = vector.load %arg2[%c9, %c0_71, %c0_72] : memref<12x32x128xbf16, #tpu.memory_space<vmem>>, vector<1x32x128xbf16>
    %78 = vector.shape_cast %77 : vector<1x32x128xbf16> to vector<32x128xbf16>
    %c0_73 = arith.constant 0 : index
    %c0_74 = arith.constant 0 : index
    %c1_75 = arith.constant 1 : index
    %79 = vector.load %arg1[%c0_73, %c0_74, %c1_75] : memref<1x256x128xbf16, #tpu.memory_space<vmem>>, vector<1x128x112xbf16>
    %80 = vector.shape_cast %79 : vector<1x128x112xbf16> to vector<128x112xbf16>
    %cst_76 = arith.constant dense<0.000000e+00> : vector<32x112xf32>
    %81 = tpu.matmul %78, %80, %cst_76 {dimension_numbers = #tpu.dot_dimension_numbers<[1], [0], [0], [1], [0, 0, 1, 1], [], []>} : vector<32x128xbf16>, vector<128x112xbf16>, vector<32x112xf32> -> vector<32x112xf32>
    %82 = arith.addf %76, %81 : vector<32x112xf32>
    %c10 = arith.constant 10 : index
    %c0_77 = arith.constant 0 : index
    %c0_78 = arith.constant 0 : index
    %83 = vector.load %arg2[%c10, %c0_77, %c0_78] : memref<12x32x128xbf16, #tpu.memory_space<vmem>>, vector<1x32x128xbf16>
    %84 = vector.shape_cast %83 : vector<1x32x128xbf16> to vector<32x128xbf16>
    %c0_79 = arith.constant 0 : index
    %c128_80 = arith.constant 128 : index
    %c11_81 = arith.constant 11 : index
    %85 = vector.load %arg1[%c0_79, %c128_80, %c11_81] : memref<1x256x128xbf16, #tpu.memory_space<vmem>>, vector<1x128x112xbf16>
    %86 = vector.shape_cast %85 : vector<1x128x112xbf16> to vector<128x112xbf16>
    %cst_82 = arith.constant dense<0.000000e+00> : vector<32x112xf32>
    %87 = tpu.matmul %84, %86, %cst_82 {dimension_numbers = #tpu.dot_dimension_numbers<[1], [0], [0], [1], [0, 0, 1, 1], [], []>} : vector<32x128xbf16>, vector<128x112xbf16>, vector<32x112xf32> -> vector<32x112xf32>
    %88 = arith.addf %82, %87 : vector<32x112xf32>
    %c11_83 = arith.constant 11 : index
    %c0_84 = arith.constant 0 : index
    %c0_85 = arith.constant 0 : index
    %89 = vector.load %arg2[%c11_83, %c0_84, %c0_85] : memref<12x32x128xbf16, #tpu.memory_space<vmem>>, vector<1x32x128xbf16>
    %90 = vector.shape_cast %89 : vector<1x32x128xbf16> to vector<32x128xbf16>
    %c0_86 = arith.constant 0 : index
    %c0_87 = arith.constant 0 : index
    %c12 = arith.constant 12 : index
    %91 = vector.load %arg1[%c0_86, %c0_87, %c12] : memref<1x256x128xbf16, #tpu.memory_space<vmem>>, vector<1x128x112xbf16>
    %92 = vector.shape_cast %91 : vector<1x128x112xbf16> to vector<128x112xbf16>
    %cst_88 = arith.constant dense<0.000000e+00> : vector<32x112xf32>
    %93 = tpu.matmul %90, %92, %cst_88 {dimension_numbers = #tpu.dot_dimension_numbers<[1], [0], [0], [1], [0, 0, 1, 1], [], []>} : vector<32x128xbf16>, vector<128x112xbf16>, vector<32x112xf32> -> vector<32x112xf32>
    %94 = arith.addf %88, %93 : vector<32x112xf32>
    %c0_89 = arith.constant 0 : index
    %c0_90 = arith.constant 0 : index
    %95 = vector.load %arg3[%c0_89, %c0_90] : memref<32x1xf32, #tpu.memory_space<vmem>>, vector<32x1xf32>
    %96 = vector.broadcast %95 : vector<32x1xf32> to vector<32x112xf32>
    %97 = arith.addf %94, %96 : vector<32x112xf32>
    %cst_91 = arith.constant 0.000000e+00 : f32
    %98 = vector.broadcast %cst_91 : f32 to vector<32x112xf32>
    %99 = arith.maximumf %97, %98 : vector<32x112xf32>
    %100 = arith.truncf %99 : vector<32x112xf32> to vector<32x112xbf16>
    %c96_92 = arith.constant 96 : index
    %c0_93 = arith.constant 0 : index
    %101 = vector.load %arg9[%c96_92, %c0_93] : memref<128x128xbf16, #tpu.memory_space<vmem>>, vector<32x112xbf16>
    tpu.vector_store %arg9[%c96_92, %c0_93], %100 {strides = array<i32>} : memref<128x128xbf16, #tpu.memory_space<vmem>>, vector<32x112xbf16>,
    %c0_94 = arith.constant 0 : index
    %c0_95 = arith.constant 0 : index
    %c0_96 = arith.constant 0 : index
    %102 = vector.load %arg4[%c0_94, %c0_95, %c0_96] : memref<4x64x128xbf16, #tpu.memory_space<vmem>>, vector<1x64x128xbf16>
    %103 = vector.shape_cast %102 : vector<1x64x128xbf16> to vector<64x128xbf16>
    %c0_97 = arith.constant 0 : index
    %c0_98 = arith.constant 0 : index
    %104 = vector.load %arg9[%c0_97, %c0_98] : memref<128x128xbf16, #tpu.memory_space<vmem>>, vector<128x112xbf16>
    %cst_99 = arith.constant dense<0.000000e+00> : vector<64x112xf32>
    %105 = tpu.matmul %103, %104, %cst_99 {dimension_numbers = #tpu.dot_dimension_numbers<[1], [0], [0], [1], [0, 0, 1, 1], [], []>} : vector<64x128xbf16>, vector<128x112xbf16>, vector<64x112xf32> -> vector<64x112xf32>
    %c1_100 = arith.constant 1 : index
    %c0_101 = arith.constant 0 : index
    %c0_102 = arith.constant 0 : index
    %106 = vector.load %arg4[%c1_100, %c0_101, %c0_102] : memref<4x64x128xbf16, #tpu.memory_space<vmem>>, vector<1x64x128xbf16>
    %107 = vector.shape_cast %106 : vector<1x64x128xbf16> to vector<64x128xbf16>
    %c0_103 = arith.constant 0 : index
    %c1_104 = arith.constant 1 : index
    %108 = vector.load %arg9[%c0_103, %c1_104] : memref<128x128xbf16, #tpu.memory_space<vmem>>, vector<128x112xbf16>
    %cst_105 = arith.constant dense<0.000000e+00> : vector<64x112xf32>
    %109 = tpu.matmul %107, %108, %cst_105 {dimension_numbers = #tpu.dot_dimension_numbers<[1], [0], [0], [1], [0, 0, 1, 1], [], []>} : vector<64x128xbf16>, vector<128x112xbf16>, vector<64x112xf32> -> vector<64x112xf32>
    %110 = arith.addf %105, %109 : vector<64x112xf32>
    %c2_106 = arith.constant 2 : index
    %c0_107 = arith.constant 0 : index
    %c0_108 = arith.constant 0 : index
    %111 = vector.load %arg4[%c2_106, %c0_107, %c0_108] : memref<4x64x128xbf16, #tpu.memory_space<vmem>>, vector<1x64x128xbf16>
    %112 = vector.shape_cast %111 : vector<1x64x128xbf16> to vector<64x128xbf16>
    %c0_109 = arith.constant 0 : index
    %c11_110 = arith.constant 11 : index
    %113 = vector.load %arg9[%c0_109, %c11_110] : memref<128x128xbf16, #tpu.memory_space<vmem>>, vector<128x112xbf16>
    %cst_111 = arith.constant dense<0.000000e+00> : vector<64x112xf32>
    %114 = tpu.matmul %112, %113, %cst_111 {dimension_numbers = #tpu.dot_dimension_numbers<[1], [0], [0], [1], [0, 0, 1, 1], [], []>} : vector<64x128xbf16>, vector<128x112xbf16>, vector<64x112xf32> -> vector<64x112xf32>
    %115 = arith.addf %110, %114 : vector<64x112xf32>
    %c3_112 = arith.constant 3 : index
    %c0_113 = arith.constant 0 : index
    %c0_114 = arith.constant 0 : index
    %116 = vector.load %arg4[%c3_112, %c0_113, %c0_114] : memref<4x64x128xbf16, #tpu.memory_space<vmem>>, vector<1x64x128xbf16>
    %117 = vector.shape_cast %116 : vector<1x64x128xbf16> to vector<64x128xbf16>
    %c0_115 = arith.constant 0 : index
    %c12_116 = arith.constant 12 : index
    %118 = vector.load %arg9[%c0_115, %c12_116] : memref<128x128xbf16, #tpu.memory_space<vmem>>, vector<128x112xbf16>
    %cst_117 = arith.constant dense<0.000000e+00> : vector<64x112xf32>
    %119 = tpu.matmul %117, %118, %cst_117 {dimension_numbers = #tpu.dot_dimension_numbers<[1], [0], [0], [1], [0, 0, 1, 1], [], []>} : vector<64x128xbf16>, vector<128x112xbf16>, vector<64x112xf32> -> vector<64x112xf32>
    %120 = arith.addf %115, %119 : vector<64x112xf32>
    %c0_118 = arith.constant 0 : index
    %c0_119 = arith.constant 0 : index
    %121 = vector.load %arg5[%c0_118, %c0_119] : memref<64x1xf32, #tpu.memory_space<vmem>>, vector<64x1xf32>
    %122 = vector.broadcast %121 : vector<64x1xf32> to vector<64x112xf32>
    %123 = arith.addf %120, %122 : vector<64x112xf32>
    %cst_120 = arith.constant 0.000000e+00 : f32
    %124 = vector.broadcast %cst_120 : f32 to vector<64x112xf32>
    %125 = arith.maximumf %123, %124 : vector<64x112xf32>
    %126 = arith.truncf %125 : vector<64x112xf32> to vector<64x112xbf16>
    %c0_121 = arith.constant 0 : index
    %c0_122 = arith.constant 0 : index
    %127 = vector.load %arg10[%c0_121, %c0_122] : memref<64x128xbf16, #tpu.memory_space<vmem>>, vector<64x112xbf16>
    tpu.vector_store %arg10[%c0_121, %c0_122], %126 {strides = array<i32>} : memref<64x128xbf16, #tpu.memory_space<vmem>>, vector<64x112xbf16>,
    %c0_123 = arith.constant 0 : index
    %c0_124 = arith.constant 0 : index
    %c0_125 = arith.constant 0 : index
    %128 = vector.load %arg6[%c0_123, %c0_124, %c0_125] : memref<9x32x64xbf16, #tpu.memory_space<vmem>>, vector<1x32x64xbf16>
    %129 = vector.shape_cast %128 : vector<1x32x64xbf16> to vector<32x64xbf16>
    %c0_126 = arith.constant 0 : index
    %c0_127 = arith.constant 0 : index
    %130 = vector.load %arg10[%c0_126, %c0_127] : memref<64x128xbf16, #tpu.memory_space<vmem>>, vector<64x96xbf16>
    %cst_128 = arith.constant dense<0.000000e+00> : vector<32x96xf32>
    %131 = tpu.matmul %129, %130, %cst_128 {dimension_numbers = #tpu.dot_dimension_numbers<[1], [0], [0], [1], [0, 0, 1, 1], [], []>} : vector<32x64xbf16>, vector<64x96xbf16>, vector<32x96xf32> -> vector<32x96xf32>
    %c1_129 = arith.constant 1 : index
    %c0_130 = arith.constant 0 : index
    %c0_131 = arith.constant 0 : index
    %132 = vector.load %arg6[%c1_129, %c0_130, %c0_131] : memref<9x32x64xbf16, #tpu.memory_space<vmem>>, vector<1x32x64xbf16>
    %133 = vector.shape_cast %132 : vector<1x32x64xbf16> to vector<32x64xbf16>
    %c0_132 = arith.constant 0 : index
    %c1_133 = arith.constant 1 : index
    %134 = vector.load %arg10[%c0_132, %c1_133] : memref<64x128xbf16, #tpu.memory_space<vmem>>, vector<64x96xbf16>
    %cst_134 = arith.constant dense<0.000000e+00> : vector<32x96xf32>
    %135 = tpu.matmul %133, %134, %cst_134 {dimension_numbers = #tpu.dot_dimension_numbers<[1], [0], [0], [1], [0, 0, 1, 1], [], []>} : vector<32x64xbf16>, vector<64x96xbf16>, vector<32x96xf32> -> vector<32x96xf32>
    %136 = arith.addf %131, %135 : vector<32x96xf32>
    %c2_135 = arith.constant 2 : index
    %c0_136 = arith.constant 0 : index
    %c0_137 = arith.constant 0 : index
    %137 = vector.load %arg6[%c2_135, %c0_136, %c0_137] : memref<9x32x64xbf16, #tpu.memory_space<vmem>>, vector<1x32x64xbf16>
    %138 = vector.shape_cast %137 : vector<1x32x64xbf16> to vector<32x64xbf16>
    %c0_138 = arith.constant 0 : index
    %c2_139 = arith.constant 2 : index
    %139 = vector.load %arg10[%c0_138, %c2_139] : memref<64x128xbf16, #tpu.memory_space<vmem>>, vector<64x96xbf16>
    %cst_140 = arith.constant dense<0.000000e+00> : vector<32x96xf32>
    %140 = tpu.matmul %138, %139, %cst_140 {dimension_numbers = #tpu.dot_dimension_numbers<[1], [0], [0], [1], [0, 0, 1, 1], [], []>} : vector<32x64xbf16>, vector<64x96xbf16>, vector<32x96xf32> -> vector<32x96xf32>
    %141 = arith.addf %136, %140 : vector<32x96xf32>
    %c3_141 = arith.constant 3 : index
    %c0_142 = arith.constant 0 : index
    %c0_143 = arith.constant 0 : index
    %142 = vector.load %arg6[%c3_141, %c0_142, %c0_143] : memref<9x32x64xbf16, #tpu.memory_space<vmem>>, vector<1x32x64xbf16>
    %143 = vector.shape_cast %142 : vector<1x32x64xbf16> to vector<32x64xbf16>
    %c0_144 = arith.constant 0 : index
    %c11_145 = arith.constant 11 : index
    %144 = vector.load %arg10[%c0_144, %c11_145] : memref<64x128xbf16, #tpu.memory_space<vmem>>, vector<64x96xbf16>
    %cst_146 = arith.constant dense<0.000000e+00> : vector<32x96xf32>
    %145 = tpu.matmul %143, %144, %cst_146 {dimension_numbers = #tpu.dot_dimension_numbers<[1], [0], [0], [1], [0, 0, 1, 1], [], []>} : vector<32x64xbf16>, vector<64x96xbf16>, vector<32x96xf32> -> vector<32x96xf32>
    %146 = arith.addf %141, %145 : vector<32x96xf32>
    %c4_147 = arith.constant 4 : index
    %c0_148 = arith.constant 0 : index
    %c0_149 = arith.constant 0 : index
    %147 = vector.load %arg6[%c4_147, %c0_148, %c0_149] : memref<9x32x64xbf16, #tpu.memory_space<vmem>>, vector<1x32x64xbf16>
    %148 = vector.shape_cast %147 : vector<1x32x64xbf16> to vector<32x64xbf16>
    %c0_150 = arith.constant 0 : index
    %c12_151 = arith.constant 12 : index
    %149 = vector.load %arg10[%c0_150, %c12_151] : memref<64x128xbf16, #tpu.memory_space<vmem>>, vector<64x96xbf16>
    %cst_152 = arith.constant dense<0.000000e+00> : vector<32x96xf32>
    %150 = tpu.matmul %148, %149, %cst_152 {dimension_numbers = #tpu.dot_dimension_numbers<[1], [0], [0], [1], [0, 0, 1, 1], [], []>} : vector<32x64xbf16>, vector<64x96xbf16>, vector<32x96xf32> -> vector<32x96xf32>
    %151 = arith.addf %146, %150 : vector<32x96xf32>
    %c5_153 = arith.constant 5 : index
    %c0_154 = arith.constant 0 : index
    %c0_155 = arith.constant 0 : index
    %152 = vector.load %arg6[%c5_153, %c0_154, %c0_155] : memref<9x32x64xbf16, #tpu.memory_space<vmem>>, vector<1x32x64xbf16>
    %153 = vector.shape_cast %152 : vector<1x32x64xbf16> to vector<32x64xbf16>
    %c0_156 = arith.constant 0 : index
    %c13 = arith.constant 13 : index
    %154 = vector.load %arg10[%c0_156, %c13] : memref<64x128xbf16, #tpu.memory_space<vmem>>, vector<64x96xbf16>
    %cst_157 = arith.constant dense<0.000000e+00> : vector<32x96xf32>
    %155 = tpu.matmul %153, %154, %cst_157 {dimension_numbers = #tpu.dot_dimension_numbers<[1], [0], [0], [1], [0, 0, 1, 1], [], []>} : vector<32x64xbf16>, vector<64x96xbf16>, vector<32x96xf32> -> vector<32x96xf32>
    %156 = arith.addf %151, %155 : vector<32x96xf32>
    %c6_158 = arith.constant 6 : index
    %c0_159 = arith.constant 0 : index
    %c0_160 = arith.constant 0 : index
    %157 = vector.load %arg6[%c6_158, %c0_159, %c0_160] : memref<9x32x64xbf16, #tpu.memory_space<vmem>>, vector<1x32x64xbf16>
    %158 = vector.shape_cast %157 : vector<1x32x64xbf16> to vector<32x64xbf16>
    %c0_161 = arith.constant 0 : index
    %c22 = arith.constant 22 : index
    %159 = vector.load %arg10[%c0_161, %c22] : memref<64x128xbf16, #tpu.memory_space<vmem>>, vector<64x96xbf16>
    %cst_162 = arith.constant dense<0.000000e+00> : vector<32x96xf32>
    %160 = tpu.matmul %158, %159, %cst_162 {dimension_numbers = #tpu.dot_dimension_numbers<[1], [0], [0], [1], [0, 0, 1, 1], [], []>} : vector<32x64xbf16>, vector<64x96xbf16>, vector<32x96xf32> -> vector<32x96xf32>
    %161 = arith.addf %156, %160 : vector<32x96xf32>
    %c7_163 = arith.constant 7 : index
    %c0_164 = arith.constant 0 : index
    %c0_165 = arith.constant 0 : index
    %162 = vector.load %arg6[%c7_163, %c0_164, %c0_165] : memref<9x32x64xbf16, #tpu.memory_space<vmem>>, vector<1x32x64xbf16>
    %163 = vector.shape_cast %162 : vector<1x32x64xbf16> to vector<32x64xbf16>
    %c0_166 = arith.constant 0 : index
    %c23 = arith.constant 23 : index
    %164 = vector.load %arg10[%c0_166, %c23] : memref<64x128xbf16, #tpu.memory_space<vmem>>, vector<64x96xbf16>
    %cst_167 = arith.constant dense<0.000000e+00> : vector<32x96xf32>
    %165 = tpu.matmul %163, %164, %cst_167 {dimension_numbers = #tpu.dot_dimension_numbers<[1], [0], [0], [1], [0, 0, 1, 1], [], []>} : vector<32x64xbf16>, vector<64x96xbf16>, vector<32x96xf32> -> vector<32x96xf32>
    %166 = arith.addf %161, %165 : vector<32x96xf32>
    %c8_168 = arith.constant 8 : index
    %c0_169 = arith.constant 0 : index
    %c0_170 = arith.constant 0 : index
    %167 = vector.load %arg6[%c8_168, %c0_169, %c0_170] : memref<9x32x64xbf16, #tpu.memory_space<vmem>>, vector<1x32x64xbf16>
    %168 = vector.shape_cast %167 : vector<1x32x64xbf16> to vector<32x64xbf16>
    %c0_171 = arith.constant 0 : index
    %c24 = arith.constant 24 : index
    %169 = vector.load %arg10[%c0_171, %c24] : memref<64x128xbf16, #tpu.memory_space<vmem>>, vector<64x96xbf16>
    %cst_172 = arith.constant dense<0.000000e+00> : vector<32x96xf32>
    %170 = tpu.matmul %168, %169, %cst_172 {dimension_numbers = #tpu.dot_dimension_numbers<[1], [0], [0], [1], [0, 0, 1, 1], [], []>} : vector<32x64xbf16>, vector<64x96xbf16>, vector<32x96xf32> -> vector<32x96xf32>
    %171 = arith.addf %166, %170 : vector<32x96xf32>
    %c0_173 = arith.constant 0 : index
    %c0_174 = arith.constant 0 : index
    %172 = vector.load %arg7[%c0_173, %c0_174] : memref<32x1xf32, #tpu.memory_space<vmem>>, vector<32x1xf32>
    %173 = vector.broadcast %172 : vector<32x1xf32> to vector<32x96xf32>
    %174 = arith.addf %171, %173 : vector<32x96xf32>
    %cst_175 = arith.constant 0.000000e+00 : f32
    %175 = vector.broadcast %cst_175 : f32 to vector<32x96xf32>
    %176 = arith.maximumf %174, %175 : vector<32x96xf32>
    %177 = arith.truncf %176 : vector<32x96xf32> to vector<32x96xbf16>
    %c0_176 = arith.constant 0 : index
    %c0_177 = arith.constant 0 : index
    %178 = vector.load %arg11[%c0_176, %c0_177] : memref<32x128xbf16, #tpu.memory_space<vmem>>, vector<32x96xbf16>
    tpu.vector_store %arg11[%c0_176, %c0_177], %177 {strides = array<i32>} : memref<32x128xbf16, #tpu.memory_space<vmem>>, vector<32x96xbf16>,
    %c0_178 = arith.constant 0 : index
    %c0_179 = arith.constant 0 : index
    %179 = vector.load %arg11[%c0_178, %c0_179] : memref<32x128xbf16, #tpu.memory_space<vmem>>, vector<32x128xbf16>
    %c0_180 = arith.constant 0 : index
    %c0_181 = arith.constant 0 : index
    %c0_182 = arith.constant 0 : index
    %180 = vector.load %arg8[%c0_180, %c0_181, %c0_182] : memref<1x32x128xbf16, #tpu.memory_space<vmem>>, vector<1x32x128xbf16>
    %181 = vector.shape_cast %180 : vector<1x32x128xbf16> to vector<32x128xbf16>
    %182 = vector.shape_cast %179 : vector<32x128xbf16> to vector<1x32x128xbf16>
    tpu.vector_store %arg8[%c0_180, %c0_181, %c0_182], %182 {strides = array<i32>} : memref<1x32x128xbf16, #tpu.memory_space<vmem>>, vector<1x32x128xbf16>,
    return
  }
  func.func @transform_0(%arg0: i32) -> (i32, i32, i32) {
    %c0_i32 = arith.constant 0 : i32
    %c0_i32_0 = arith.constant 0 : i32
    %c0_i32_1 = arith.constant 0 : i32
    return %arg0, %c0_i32, %c0_i32_0 : i32, i32, i32
  }
  func.func @transform_1(%arg0: i32) -> (i32, i32, i32) {
    %c0_i32 = arith.constant 0 : i32
    %c0_i32_0 = arith.constant 0 : i32
    %c0_i32_1 = arith.constant 0 : i32
    %c0_i32_2 = arith.constant 0 : i32
    return %c0_i32, %c0_i32_0, %c0_i32_1 : i32, i32, i32
  }
  func.func @transform_2(%arg0: i32) -> (i32, i32) {
    %c0_i32 = arith.constant 0 : i32
    %c0_i32_0 = arith.constant 0 : i32
    %c0_i32_1 = arith.constant 0 : i32
    return %c0_i32, %c0_i32_0 : i32, i32
  }
  func.func @transform_3(%arg0: i32) -> (i32, i32, i32) {
    %c0_i32 = arith.constant 0 : i32
    %c0_i32_0 = arith.constant 0 : i32
    %c0_i32_1 = arith.constant 0 : i32
    %c0_i32_2 = arith.constant 0 : i32
    return %c0_i32, %c0_i32_0, %c0_i32_1 : i32, i32, i32
  }
  func.func @transform_4(%arg0: i32) -> (i32, i32) {
    %c0_i32 = arith.constant 0 : i32
    %c0_i32_0 = arith.constant 0 : i32
    %c0_i32_1 = arith.constant 0 : i32
    return %c0_i32, %c0_i32_0 : i32, i32
  }
  func.func @transform_5(%arg0: i32) -> (i32, i32, i32) {
    %c0_i32 = arith.constant 0 : i32
    %c0_i32_0 = arith.constant 0 : i32
    %c0_i32_1 = arith.constant 0 : i32
    %c0_i32_2 = arith.constant 0 : i32
    return %c0_i32, %c0_i32_0, %c0_i32_1 : i32, i32, i32
  }
  func.func @transform_6(%arg0: i32) -> (i32, i32) {
    %c0_i32 = arith.constant 0 : i32
    %c0_i32_0 = arith.constant 0 : i32
    %c0_i32_1 = arith.constant 0 : i32
    return %c0_i32, %c0_i32_0 : i32, i32
  }
  func.func @transform_7(%arg0: i32) -> (i32, i32, i32) {
    %c0_i32 = arith.constant 0 : i32
    %c0_i32_0 = arith.constant 0 : i32
    %c0_i32_1 = arith.constant 0 : i32
    return %arg0, %c0_i32, %c0_i32_0 : i32, i32, i32
  }
}

module attributes {stable_mosaic.version = 11 : i64} {
  func.func @_fc_head_kernel(%arg0: i32, %arg1: memref<2x4096xbf16, #tpu.memory_space<vmem>>, %arg2: memref<4096x256xbf16, #tpu.memory_space<vmem>>, %arg3: memref<1x256xf32, #tpu.memory_space<vmem>>, %arg4: memref<256x6xbf16, #tpu.memory_space<vmem>>, %arg5: memref<1x6xf32, #tpu.memory_space<vmem>>, %arg6: memref<2x6xf32, #tpu.memory_space<vmem>>) attributes {dimension_semantics = [#tpu.dimension_semantics<parallel>], iteration_bounds = array<i64: 1>, scalar_prefetch = 0 : i64, scratch_operands = 0 : i64, tpu.core_type = #tpu.core_type<tc>, window_params = [{transform_indices = @transform_0, window_bounds = array<i64: 2, 4096>}, {pipeline_mode = #tpu.pipeline_mode<synchronous>, transform_indices = @transform_1, window_bounds = array<i64: 4096, 256>}, {pipeline_mode = #tpu.pipeline_mode<synchronous>, transform_indices = @transform_2, window_bounds = array<i64: 1, 256>}, {pipeline_mode = #tpu.pipeline_mode<synchronous>, transform_indices = @transform_3, window_bounds = array<i64: 256, 6>}, {pipeline_mode = #tpu.pipeline_mode<synchronous>, transform_indices = @transform_4, window_bounds = array<i64: 1, 6>}, {transform_indices = @transform_5, window_bounds = array<i64: 2, 6>}]} {
    %c0 = arith.constant 0 : index
    %c0_0 = arith.constant 0 : index
    %0 = vector.load %arg1[%c0, %c0_0] : memref<2x4096xbf16, #tpu.memory_space<vmem>>, vector<2x4096xbf16>
    %c0_1 = arith.constant 0 : index
    %c0_2 = arith.constant 0 : index
    %1 = vector.load %arg2[%c0_1, %c0_2] : memref<4096x256xbf16, #tpu.memory_space<vmem>>, vector<4096x256xbf16>
    %cst = arith.constant dense<0.000000e+00> : vector<2x256xf32>
    %2 = tpu.matmul %0, %1, %cst {dimension_numbers = #tpu.dot_dimension_numbers<[1], [0], [0], [1], [0, 0, 1, 1], [], []>} : vector<2x4096xbf16>, vector<4096x256xbf16>, vector<2x256xf32> -> vector<2x256xf32>
    %c0_3 = arith.constant 0 : index
    %c0_4 = arith.constant 0 : index
    %3 = vector.load %arg3[%c0_3, %c0_4] : memref<1x256xf32, #tpu.memory_space<vmem>>, vector<1x256xf32>
    %4 = vector.broadcast %3 : vector<1x256xf32> to vector<2x256xf32>
    %5 = arith.addf %2, %4 : vector<2x256xf32>
    %cst_5 = arith.constant 0.000000e+00 : f32
    %6 = vector.broadcast %cst_5 : f32 to vector<2x256xf32>
    %7 = arith.maximumf %5, %6 : vector<2x256xf32>
    %8 = arith.truncf %7 : vector<2x256xf32> to vector<2x256xbf16>
    %c0_6 = arith.constant 0 : index
    %c0_7 = arith.constant 0 : index
    %9 = vector.load %arg4[%c0_6, %c0_7] : memref<256x6xbf16, #tpu.memory_space<vmem>>, vector<256x6xbf16>
    %cst_8 = arith.constant dense<0.000000e+00> : vector<2x6xf32>
    %10 = tpu.matmul %8, %9, %cst_8 {dimension_numbers = #tpu.dot_dimension_numbers<[1], [0], [0], [1], [0, 0, 1, 1], [], []>} : vector<2x256xbf16>, vector<256x6xbf16>, vector<2x6xf32> -> vector<2x6xf32>
    %c0_9 = arith.constant 0 : index
    %c0_10 = arith.constant 0 : index
    %11 = vector.load %arg5[%c0_9, %c0_10] : memref<1x6xf32, #tpu.memory_space<vmem>>, vector<1x6xf32>
    %12 = vector.broadcast %11 : vector<1x6xf32> to vector<2x6xf32>
    %13 = arith.addf %10, %12 : vector<2x6xf32>
    %c0_11 = arith.constant 0 : index
    %c0_12 = arith.constant 0 : index
    %14 = vector.load %arg6[%c0_11, %c0_12] : memref<2x6xf32, #tpu.memory_space<vmem>>, vector<2x6xf32>
    tpu.vector_store %arg6[%c0_11, %c0_12], %13 {strides = array<i32>} : memref<2x6xf32, #tpu.memory_space<vmem>>, vector<2x6xf32>,
    return
  }
  func.func @transform_0(%arg0: i32) -> (i32, i32) {
    %c0_i32 = arith.constant 0 : i32
    %c0_i32_0 = arith.constant 0 : i32
    return %arg0, %c0_i32 : i32, i32
  }
  func.func @transform_1(%arg0: i32) -> (i32, i32) {
    %c0_i32 = arith.constant 0 : i32
    %c0_i32_0 = arith.constant 0 : i32
    %c0_i32_1 = arith.constant 0 : i32
    return %c0_i32, %c0_i32_0 : i32, i32
  }
  func.func @transform_2(%arg0: i32) -> (i32, i32) {
    %c0_i32 = arith.constant 0 : i32
    %c0_i32_0 = arith.constant 0 : i32
    %c0_i32_1 = arith.constant 0 : i32
    return %c0_i32, %c0_i32_0 : i32, i32
  }
  func.func @transform_3(%arg0: i32) -> (i32, i32) {
    %c0_i32 = arith.constant 0 : i32
    %c0_i32_0 = arith.constant 0 : i32
    %c0_i32_1 = arith.constant 0 : i32
    return %c0_i32, %c0_i32_0 : i32, i32
  }
  func.func @transform_4(%arg0: i32) -> (i32, i32) {
    %c0_i32 = arith.constant 0 : i32
    %c0_i32_0 = arith.constant 0 : i32
    %c0_i32_1 = arith.constant 0 : i32
    return %c0_i32, %c0_i32_0 : i32, i32
  }
  func.func @transform_5(%arg0: i32) -> (i32, i32) {
    %c0_i32 = arith.constant 0 : i32
    %c0_i32_0 = arith.constant 0 : i32
    return %arg0, %c0_i32 : i32, i32
  }
}

</mosaic_0001>

<bundles_post_ra>
// kernel: net_forward.2
= control target key start
LH: loop header
LB: loop body
LE: loop exit
PB: predicated region body
PF: predicated region fallthrough
CT: control target
= control target key end

     0   :  { %s4708_s24 = smov 0   ;;  %s5459_s0 = inlined_call_operand.vmem [shape: bf16[2,256,128], index: 0, kind: input, shape index: {}]   ;;  %s5460_s1 = inlined_call_operand.vmem [shape: bf16[12,32,128], index: 1, kind: input, shape index: {}]   ;;  %s5461_s2 = inlined_call_operand.vmem [shape: f32[32,1], index: 2, kind: input, shape index: {}]   ;;  %s5462_s3 = inlined_call_operand.vmem [shape: bf16[4,64,128], index: 3, kind: input, shape index: {}]   ;;  %s5463_s4 = inlined_call_operand.vmem [shape: f32[64,1], index: 4, kind: input, shape index: {}]   ;;  %s5464_s5 = inlined_call_operand.vmem [shape: bf16[9,32,64], index: 5, kind: input, shape index: {}]   ;;  %s5465_s6 = inlined_call_operand.vmem [shape: f32[32,1], index: 6, kind: input, shape index: {}]   ;;  %s5466_s7 = inlined_call_operand.vmem [shape: bf16[2,32,128], index: 7, kind: output, shape index: {}]  }
   0x1 LB: > { %s3515_s25 = sadd.s32 4294967295, %s4657_s24   ;;  %p3519_p0 = scmp.ge.s32.totalorder %s4657_s24, 1  ;;  %s4657_s24 = sphi %s4708_s24, %s17_s24  }
   0x2   : > { %p237_p1 = scmp.lt.s32.totalorder %s4657_s24, 3 }
   0x4   : > { %p238_p2 = pnand %p3519_p0, %p237_p1 }
   0x5   : > { %p269_p3 = scmp.lt.s32.totalorder (!%p238_p2), %s3515_s25, 1  ;;  %s4659_s11 = smov (!%p238_p2), 127  }
   0x6   : > { %241 = sbr.rel (%p238_p2) target bundleno = 1320 (0x528), region = 48  ;;  %s4660_s12 = smov (!%p238_p2), 117  }
   0x7   : > { %s4662_s21 = smov (!%p238_p2), 116   ;;  %s4664_s13 = smov (!%p238_p2), 115  }
   0x8   : > { %s4665_s14 = smov (!%p238_p2), 106   ;;  %s4666_s15 = smov (!%p238_p2), 105  }
   0x9   : > { %s4667_s16 = smov (!%p238_p2), 104  }
   0xb   : > { %v4565_v0 = vld [vmem:[%s5460_s1 + $0x10] sm:$0xff]   ;;  %s5468_s25 = smov (!%p269_p3, %s3515_s25), 1  ;;  %v4566_v1 = vld [vmem:[%s5460_s1] sm:$0xff]   ;;  %v4661_v28 = vmov 0   ;;  %v4567_v45 = vld [vmem:[%s5460_s1 + $0x18] sm:$0xff]   ;;  %vm280_vm0 = vcmask 1044352  }
   0xc   : > { %4074 = vmatprep.mubr.bf16.mxu0 %v4565_v0  ;;  %s3806_s30 = sshll.u32 %s5468_s25, 7  ;;  %4094 = vmatprep.mubr.bf16.mxu1 %v4566_v1  ;;  %v4568_v47 = vld [vmem:[%s5460_s1 + $0x8] sm:$0xff]   ;;  %v4586_v58 = vld [vmem:[%s5460_s1 + $0x20] sm:$0xff]   ;;  %v4588_v59 = vld [vmem:[%s5460_s1 + $0x30] sm:$0xff]   ;;  %283 = vst.msk [vmem:[#allocation2 + $0x8] sm:$0xf] %vm280_vm0, %v4661_v28 }
   0xd   : > { %s4728_s10 = scalar_lea.vmem %s5459_s0, %s3806_s30  ;;  %4520 = vset.pattern.permute.xlu1 %v4661_v28  ;;  %4519 = vset.pattern.permute.xlu0 %v4661_v28  ;;  %281 = vst.msk [vmem:[#allocation2] sm:$0xf] %vm280_vm0, %v4661_v28  ;;  %282 = vst.msk [vmem:[#allocation2 + $0x4] sm:$0xf] %vm280_vm0, %v4661_v28  ;;  %vm617_vm1 = vcmask 912384   ;;  %vm2672_vm2 = vcmask 523264  }
   0xe   : > { %v4521_v2 = vld [vmem:[%s4728_s10 + $0x38] sm:$0xff]   ;;  %v4522_v3 = vld [vmem:[%s4728_s10 + $0x30] sm:$0xff]   ;;  %v4523_v4 = vld [vmem:[%s4728_s10 + $0x28] sm:$0xff]   ;;  %284 = vst.msk [vmem:[#allocation2 + $0xc] sm:$0xf] %vm280_vm0, %v4661_v28  ;;  %s4663_s30 = smov 126  }
   0xf   : > { %730 = vrot.lane.b32.xlu0 %v4521_v2, %s4659_s11  ;;  %726 = vrot.lane.b32.xlu1 %v4523_v4, %s4659_s11  ;;  %v4524_v5 = vld [vmem:[%s4728_s10 + $0x20] sm:$0xff]   ;;  %v4525_v6 = vld [vmem:[%s4728_s10 + $0x18] sm:$0xff]   ;;  %285 = vst.msk [vmem:[#allocation2 + $0x10] sm:$0xf] %vm280_vm0, %v4661_v28  ;;  %286 = vst.msk [vmem:[#allocation2 + $0x14] sm:$0xf] %vm280_vm0, %v4661_v28 }
  0x10   : > { %v4526_v7 = vld [vmem:[%s4728_s10 + $0x10] sm:$0xff]   ;;  %v4527_v8 = vld [vmem:[%s4728_s10 + $0x8] sm:$0xff]   ;;  %v4528_v9 = vld [vmem:[%s4728_s10] sm:$0xff]   ;;  %287 = vst.msk [vmem:[#allocation2 + $0x18] sm:$0xf] %vm280_vm0, %v4661_v28  ;;  %vm305_vm3 = vcmask 1044224  }
  0x11   : > { %v4746_v10 = vld [vmem:[%s4728_s10 + $0x38] sm:$0xff]   ;;  %v4753_v12 = vld [vmem:[%s4728_s10 + $0x30] sm:$0xff]   ;;  %v4765_v16 = vld [vmem:[%s4728_s10 + $0x28] sm:$0xff]   ;;  %288 = vst.msk [vmem:[#allocation2 + $0x1c] sm:$0xf] %vm280_vm0, %v4661_v28  ;;  %vm3447_vm4 = vcmask 781312  }
  0x12   : > { %v4749_v11 = vld [vmem:[%s4728_s10 + $0x78] sm:$0xff]   ;;  %v4760_v15 = vld [vmem:[%s4728_s10 + $0x70] sm:$0xff]   ;;  %v4772_v19 = vld [vmem:[%s4728_s10 + $0x68] sm:$0xff]   ;;  %289 = vst.msk [vmem:[#allocation2 + $0x20] sm:$0xf] %vm280_vm0, %v4661_v28 }
  0x13   : > { %728 = vrot.lane.b32.xlu0 %v4522_v3, %s4659_s11  ;;  %724 = vrot.lane.b32.xlu1 %v4524_v5, %s4659_s11  ;;  %v4538_v13 = vld [vmem:[%s4728_s10 + $0x78] sm:$0xff]   ;;  %v4542_v17 = vld [vmem:[%s4728_s10 + $0x70] sm:$0xff]   ;;  %290 = vst.msk [vmem:[#allocation2 + $0x24] sm:$0xf] %vm280_vm0, %v4661_v28  ;;  %291 = vst.msk [vmem:[#allocation2 + $0x28] sm:$0xf] %vm280_vm0, %v4661_v28 }
  0x14   : > { %v4539_v14 = vld [vmem:[%s4728_s10 + $0x38] sm:$0xff]   ;;  %4058 = vmatprep.subr.bf16.mxu0 %v4538_v13  ;;  %v4543_v18 = vld [vmem:[%s4728_s10 + $0x30] sm:$0xff]   ;;  %v4777_v20 = vld [vmem:[%s4728_s10 + $0x20] sm:$0xff]   ;;  %292 = vst.msk [vmem:[#allocation2 + $0x2c] sm:$0xf] %vm280_vm0, %v4661_v28 }
  0x15   : > { %4078 = vmatprep.subr.bf16.mxu1 %v4539_v14  ;;  %4059 = vmatpush3.bf16.msra.mxu0 %v4538_v13  ;;  %v4546_v21 = vld [vmem:[%s4728_s10 + $0x68] sm:$0xff]   ;;  %v4784_v23 = vld [vmem:[%s4728_s10 + $0x60] sm:$0xff]   ;;  %v4789_v24 = vld [vmem:[%s4728_s10 + $0x18] sm:$0xff]   ;;  %293 = vst.msk [vmem:[#allocation2 + $0x30] sm:$0xf] %vm280_vm0, %v4661_v28 }
  0x16   : > { %4079 = vmatpush3.bf16.msra.mxu1 %v4539_v14  ;;  %4060 = vmatprep.subr.bf16.mxu0 %v4542_v17  ;;  %v4547_v22 = vld [vmem:[%s4728_s10 + $0x28] sm:$0xff]   ;;  %v4550_v25 = vld [vmem:[%s4728_s10 + $0x60] sm:$0xff]   ;;  %v4796_v27 = vld [vmem:[%s4728_s10 + $0x58] sm:$0xff]   ;;  %294 = vst.msk [vmem:[#allocation2 + $0x34] sm:$0xf] %vm280_vm0, %v4661_v28 }
  0x17   : > { %722 = vrot.lane.b32.xlu0 %v4525_v6, %s4659_s11  ;;  %720 = vrot.lane.b32.xlu1 %v4526_v7, %s4659_s11  ;;  %v4551_v26 = vld [vmem:[%s4728_s10 + $0x20] sm:$0xff]   ;;  %v4553_v29 = vld [vmem:[%s4728_s10 + $0x58] sm:$0xff]   ;;  %295 = vst.msk [vmem:[#allocation2 + $0x38] sm:$0xf] %vm280_vm0, %v4661_v28  ;;  %296 = vst.msk [vmem:[#allocation2 + $0x3c] sm:$0xf] %vm280_vm0, %v4661_v28 }
  0x18   : > { %4080 = vmatprep.subr.bf16.mxu1 %v4543_v18  ;;  %v4554_v30 = vld [vmem:[%s4728_s10 + $0x18] sm:$0xff]   ;;  %v4806_v31 = vld [vmem:[%s4728_s10 + $0x50] sm:$0xff]   ;;  %v4817_v35 = vld [vmem:[%s4728_s10 + $0x8] sm:$0xff]   ;;  %297 = vst.msk [vmem:[#allocation3] sm:$0xf] %vm280_vm0, %v4661_v28 }
  0x19   : > { %4061 = vmatpush3.bf16.msra.mxu0 %v4542_v17  ;;  %v4809_v32 = vld [vmem:[%s4728_s10 + $0x10] sm:$0xff]   ;;  %v4559_v36 = vld [vmem:[%s4728_s10 + $0x48] sm:$0xff]   ;;  %v4829_v39 = vld [vmem:[%s4728_s10] sm:$0xff]   ;;  %298 = vst.msk [vmem:[#allocation3 + $0x4] sm:$0xf] %vm280_vm0, %v4661_v28 }
  0x1a   : > { %4081 = vmatpush3.bf16.msra.mxu1 %v4543_v18  ;;  %4062 = vmatprep.subr.bf16.mxu0 %v4546_v21  ;;  %v4556_v33 = vld [vmem:[%s4728_s10 + $0x50] sm:$0xff]   ;;  %v4560_v37 = vld [vmem:[%s4728_s10 + $0x8] sm:$0xff]   ;;  %v4562_v40 = vld [vmem:[%s4728_s10 + $0x40] sm:$0xff]   ;;  %299 = vst.msk [vmem:[#allocation3 + $0x8] sm:$0xf] %vm280_vm0, %v4661_v28 }
  0x1b   : > { %718 = vrot.lane.b32.xlu0 %v4527_v8, %s4659_s11  ;;  %716 = vrot.lane.b32.xlu1 %v4528_v9, %s4659_s11  ;;  %v4557_v34 = vld [vmem:[%s4728_s10 + $0x10] sm:$0xff]   ;;  %v4826_v38 = vld [vmem:[%s4728_s10 + $0x48] sm:$0xff]   ;;  %300 = vst.msk [vmem:[#allocation3 + $0xc] sm:$0xf] %vm280_vm0, %v4661_v28  ;;  %301 = vst.msk [vmem:[#allocation3 + $0x10] sm:$0xf] %vm280_vm0, %v4661_v28 }
  0x1c   : > { %4082 = vmatprep.subr.bf16.mxu1 %v4547_v22  ;;  %v4563_v41 = vld [vmem:[%s4728_s10] sm:$0xff]   ;;  %v4555_v43 = vld [vmem:[%s4728_s10 + $0x38] sm:$0xff]   ;;  %v4558_v46 = vld [vmem:[%s4728_s10 + $0x30] sm:$0xff]   ;;  %302 = vst.msk [vmem:[#allocation3 + $0x14] sm:$0xf] %vm280_vm0, %v4661_v28 }
  0x1d   : > { %4063 = vmatpush3.bf16.msra.mxu0 %v4546_v21  ;;  %v4838_v42 = vld [vmem:[%s4728_s10 + $0x40] sm:$0xff]   ;;  %v4569_v44 = vld [vmem:[%s4728_s10 + $0x78] sm:$0xff]   ;;  %v4561_v48 = vld [vmem:[%s4728_s10 + $0x28] sm:$0xff]   ;;  %303 = vst.msk [vmem:[#allocation3 + $0x18] sm:$0xf] %vm280_vm0, %v4661_v28 }
  0x1e   : > { %4083 = vmatpush3.bf16.msra.mxu1 %v4547_v22  ;;  %4064 = vmatprep.subr.bf16.mxu0 %v4550_v25  ;;  %v4571_v49 = vld [vmem:[%s4728_s10 + $0x70] sm:$0xff]   ;;  %v4564_v50 = vld [vmem:[%s4728_s10 + $0x20] sm:$0xff]   ;;  %v4570_v51 = vld [vmem:[%s4728_s10 + $0x18] sm:$0xff]   ;;  %304 = vst.msk [vmem:[#allocation3 + $0x1c] sm:$0xf] %vm280_vm0, %v4661_v28 }
  0x1f   : > { %1241 = vrot.lane.b32.xlu0 %v4746_v10, %s4660_s12  ;;  %1335 = vrot.lane.b32.xlu1 %v4749_v11, %s4660_s12  ;;  %v4573_v52 = vld [vmem:[%s4728_s10 + $0x68] sm:$0xff]   ;;  %v4572_v53 = vld [vmem:[%s4728_s10 + $0x10] sm:$0xff]   ;;  %308 = vst.msk [vmem:[#allocation4 + $0x8] sm:$0xf] %vm305_vm3, %v4661_v28  ;;  %306 = vst.msk [vmem:[#allocation4] sm:$0xf] %vm305_vm3, %v4661_v28 }
  0x20   : > { %4084 = vmatprep.subr.bf16.mxu1 %v4551_v26  ;;  %v4574_v54 = vld [vmem:[%s4728_s10 + $0x8] sm:$0xff]   ;;  %v4576_v55 = vld [vmem:[%s4728_s10 + $0x60] sm:$0xff]   ;;  %v4869_v57 = vld [vmem:[%s4728_s10 + $0x78] sm:$0xff]   ;;  %307 = vst.msk [vmem:[#allocation4 + $0x4] sm:$0xf] %vm305_vm3, %v4661_v28 }
  0x21   : > { %4065 = vmatpush3.bf16.msra.mxu0 %v4550_v25  ;;  %v4575_v56 = vld [vmem:[%s4728_s10] sm:$0xff]   ;;  %v4578_v60 = vld [vmem:[%s4728_s10 + $0x58] sm:$0xff]   ;;  %v4883_v61 = vld [vmem:[%s4728_s10 + $0x70] sm:$0xff]   ;;  %309 = vst.msk [vmem:[#allocation4 + $0xc] sm:$0xf] %vm305_vm3, %v4661_v28 }
  0x22   : > { %4085 = vmatpush3.bf16.msra.mxu1 %v4551_v26  ;;  %4066 = vmatprep.subr.bf16.mxu0 %v4553_v29  ;;  %v4580_v62 = vld [vmem:[%s4728_s10 + $0x50] sm:$0xff]   ;;  %v4890_v63 = vld [vmem:[%s4728_s10 + $0x68] sm:$0xff]   ;;  %v4895_v1 = vld [vmem:[%s4728_s10 + $0x60] sm:$0xff]  }
  0x23   : > { %1239 = vrot.lane.b32.xlu0 %v4753_v12, %s4660_s12  ;;  %1333 = vrot.lane.b32.xlu1 %v4760_v15, %s4660_s12  ;;  %v4582_v0 = vld [vmem:[%s4728_s10 + $0x48] sm:$0xff]   ;;  %v4584_v2 = vld [vmem:[%s4728_s10 + $0x40] sm:$0xff]  }
  0x24   : > { %4086 = vmatprep.subr.bf16.mxu1 %v4554_v30  ;;  %v4902_v3 = vld [vmem:[%s4728_s10 + $0x58] sm:$0xff]   ;;  %v4587_v4 = vld [vmem:[%s5460_s1 + $0x28] sm:$0xff]   ;;  %v4913_v5 = vld [vmem:[%s4728_s10 + $0x50] sm:$0xff]  }
  0x25   : > { %4067 = vmatpush3.bf16.msra.mxu0 %v4553_v29  ;;  %v4593_v6 = vld [vmem:[%s5460_s1 + $0x40] sm:$0xff]   ;;  %v4921_v7 = vld [vmem:[%s4728_s10 + $0x48] sm:$0xff]   ;;  %v1916_v9 = vld [vmem:[%s5461_s2 + $0x10] sm:$0xff] }
  0x26   : > { %4087 = vmatpush3.bf16.msra.mxu1 %v4554_v30  ;;  %4068 = vmatprep.subr.bf16.mxu0 %v4556_v33  ;;  %v4929_v8 = vld [vmem:[%s4728_s10 + $0x40] sm:$0xff]   ;;  %v4594_v14 = vld [vmem:[%s5460_s1 + $0x48] sm:$0xff]   ;;  %s3807_s10 = sshll.u32 %s5468_s25, 4 }
  0x27   : > { %1237 = vrot.lane.b32.xlu0 %v4765_v16, %s4660_s12  ;;  %1331 = vrot.lane.b32.xlu1 %v4772_v19, %s4660_s12  ;;  %v1914_v13 = vld [vmem:[%s5461_s2] sm:$0xff] }
  0x28   : > { %4088 = vmatprep.subr.bf16.mxu1 %v4557_v34 }
  0x29   : > { %4069 = vmatpush3.bf16.msra.mxu0 %v4556_v33 }
  0x2a   : > { %4089 = vmatpush3.bf16.msra.mxu1 %v4557_v34  ;;  %4070 = vmatprep.subr.bf16.mxu0 %v4559_v36 }
  0x2b   : > { %1235 = vrot.lane.b32.xlu0 %v4777_v20, %s4660_s12  ;;  %1329 = vrot.lane.b32.xlu1 %v4784_v23, %s4660_s12 }
  0x2c   : > { %4090 = vmatprep.subr.bf16.mxu1 %v4560_v37 }
  0x2d   : > { %4071 = vmatpush3.bf16.msra.mxu0 %v4559_v36 }
  0x2e   : > { %4091 = vmatpush3.bf16.msra.mxu1 %v4560_v37  ;;  %4072 = vmatprep.subr.bf16.mxu0 %v4562_v40  ;;  %v4590_v37 = vld [vmem:[%s5460_s1 + $0x38] sm:$0xff]  }
  0x2f   : > { %1233 = vrot.lane.b32.xlu0 %v4789_v24, %s4660_s12  ;;  %1327 = vrot.lane.b32.xlu1 %v4796_v27, %s4660_s12 }
  0x30   : > { %4092 = vmatprep.subr.bf16.mxu1 %v4563_v41 }
  0x31   : > { %4073 = vmatpush3.bf16.msra.mxu0 %v4562_v40 }
  0x32   : > { %4093 = vmatpush3.bf16.msra.mxu1 %v4563_v41 }
  0x33   : > { %1231 = vrot.lane.b32.xlu0 %v4809_v32, %s4660_s12  ;;  %1325 = vrot.lane.b32.xlu1 %v4806_v31, %s4660_s12 }
  0x34   : > { %4118 = vmatprep.subr.bf16.mxu1 %v4569_v44  ;;  %4075 = vmatmul.mubr.bf16.vlgmr.msra.gmra.mxu0 %v4567_v45 }
  0x35   : > { %4095 = vmatmul.mubr.bf16.vlgmr.msra.gmra.mxu1 %v4568_v47  ;;  %4114 = vmatprep.mubr.bf16.mxu0 %v4588_v59 }
  0x36   : > { %4119 = vmatpush3.bf16.msra.mxu1 %v4569_v44  ;;  %4134 = vmatprep.mubr.bf16.mxu1 %v4586_v58 }
  0x37   : > { %1229 = vrot.lane.b32.xlu0 %v4817_v35, %s4660_s12  ;;  %1323 = vrot.lane.b32.xlu1 %v4826_v38, %s4660_s12 }
  0x38   : > { %4120 = vmatprep.subr.bf16.mxu1 %v4571_v49 }
  0x3a   : > { %4121 = vmatpush3.bf16.msra.mxu1 %v4571_v49 }
  0x3b   : > { %1227 = vrot.lane.b32.xlu0 %v4829_v39, %s4660_s12  ;;  %1321 = vrot.lane.b32.xlu1 %v4838_v42, %s4660_s12 }
  0x3c   : > { %4122 = vmatprep.subr.bf16.mxu1 %v4573_v52 }
  0x3e   : > { %4123 = vmatpush3.bf16.msra.mxu1 %v4573_v52 }
  0x3f   : > { %1558 = vrot.lane.b32.xlu0 %v4555_v43, %s4659_s11  ;;  %1556 = vrot.lane.b32.xlu1 %v4558_v46, %s4659_s11 }
  0x40   : > { %4124 = vmatprep.subr.bf16.mxu1 %v4576_v55 }
  0x42   : > { %4125 = vmatpush3.bf16.msra.mxu1 %v4576_v55 }
  0x43   : > { %1554 = vrot.lane.b32.xlu0 %v4561_v48, %s4659_s11  ;;  %1552 = vrot.lane.b32.xlu1 %v4564_v50, %s4659_s11 }
  0x44   : > { %4126 = vmatprep.subr.bf16.mxu1 %v4578_v60 }
  0x46   : > { %4127 = vmatpush3.bf16.msra.mxu1 %v4578_v60 }
  0x47   : > { %1550 = vrot.lane.b32.xlu0 %v4570_v51, %s4659_s11  ;;  %1548 = vrot.lane.b32.xlu1 %v4572_v53, %s4659_s11 }
  0x48   : > { %4128 = vmatprep.subr.bf16.mxu1 %v4580_v62 }
  0x4a   : > { %4129 = vmatpush3.bf16.msra.mxu1 %v4580_v62 }
  0x4b   : > { %1546 = vrot.lane.b32.xlu0 %v4574_v54, %s4659_s11  ;;  %1544 = vrot.lane.b32.xlu1 %v4575_v56, %s4659_s11 }
  0x4c   : > { %4130 = vmatprep.subr.bf16.mxu1 %v4582_v0 }
  0x4e   : > { %4131 = vmatpush3.bf16.msra.mxu1 %v4582_v0 }
  0x4f   : > { %1757 = vrot.lane.b32.xlu0 %v4869_v57, %s4660_s12  ;;  %1851 = vrot.lane.b32.xlu1 %v4555_v43, %s4662_s21 }
  0x50   : > { %4132 = vmatprep.subr.bf16.mxu1 %v4584_v2 }
  0x52   : > { %4133 = vmatpush3.bf16.msra.mxu1 %v4584_v2 }
  0x53   : > { %1755 = vrot.lane.b32.xlu0 %v4883_v61, %s4660_s12  ;;  %1849 = vrot.lane.b32.xlu1 %v4558_v46, %s4662_s21 }
  0x54   : > { %4158 = vmatprep.subr.bf16.mxu1 %v4746_v10 }
  0x55   : > { %4135 = vmatmul.mubr.bf16.vlgmr.msra.gmra.mxu1 %v4587_v4  ;;  %v4600_v4 = vld [vmem:[%s5460_s1 + $0x68] sm:$0xff]  }
  0x56   : > { %4159 = vmatpush3.bf16.msra.mxu1 %v4746_v10  ;;  %4174 = vmatprep.mubr.bf16.mxu1 %v4593_v6  ;;  %v1917_v10 = vld [vmem:[%s5461_s2 + $0x18] sm:$0xff] }
  0x57   : > { %1753 = vrot.lane.b32.xlu0 %v4890_v63, %s4660_s12  ;;  %1847 = vrot.lane.b32.xlu1 %v4561_v48, %s4662_s21 }
  0x58   : > { %4160 = vmatprep.subr.bf16.mxu1 %v4753_v12 }
  0x5a   : > { %4161 = vmatpush3.bf16.msra.mxu1 %v4753_v12  ;;  %v1915_v12 = vld [vmem:[%s5461_s2 + $0x8] sm:$0xff] }
  0x5b   : > { %1751 = vrot.lane.b32.xlu0 %v4895_v1, %s4660_s12  ;;  %1845 = vrot.lane.b32.xlu1 %v4564_v50, %s4662_s21 }
  0x5c   : > { %4162 = vmatprep.subr.bf16.mxu1 %v4765_v16 }
  0x5e   : > { %4163 = vmatpush3.bf16.msra.mxu1 %v4765_v16  ;;  %v4597_v16 = vld [vmem:[%s5460_s1 + $0x70] sm:$0xff]  }
  0x5f   : > { %1749 = vrot.lane.b32.xlu0 %v4902_v3, %s4660_s12  ;;  %1843 = vrot.lane.b32.xlu1 %v4570_v51, %s4662_s21 }
  0x60   : > { %4164 = vmatprep.subr.bf16.mxu1 %v4777_v20 }
  0x62   : > { %4165 = vmatpush3.bf16.msra.mxu1 %v4777_v20 }
  0x63   : > { %1747 = vrot.lane.b32.xlu0 %v4913_v5, %s4660_s12  ;;  %1841 = vrot.lane.b32.xlu1 %v4572_v53, %s4662_s21 }
  0x64   : > { %4166 = vmatprep.subr.bf16.mxu1 %v4789_v24 }
  0x66   : > { %4167 = vmatpush3.bf16.msra.mxu1 %v4789_v24 }
  0x67   : > { %1745 = vrot.lane.b32.xlu0 %v4921_v7, %s4660_s12  ;;  %1839 = vrot.lane.b32.xlu1 %v4574_v54, %s4662_s21 }
  0x68   : > { %4168 = vmatprep.subr.bf16.mxu1 %v4809_v32 }
  0x6a   : > { %4169 = vmatpush3.bf16.msra.mxu1 %v4809_v32 }
  0x6b   : > { %1743 = vrot.lane.b32.xlu0 %v4929_v8, %s4660_s12  ;;  %1837 = vrot.lane.b32.xlu1 %v4575_v56, %s4662_s21 }
  0x6c   : > { %4170 = vmatprep.subr.bf16.mxu1 %v4817_v35 }
  0x6e   : > { %4171 = vmatpush3.bf16.msra.mxu1 %v4817_v35 }
  0x6f   : > { %1930 = vperm.xlu0 %4519, %v1916_v9   ;;  %1935 = vperm.xlu1 %4520, %v1917_v10  }
  0x70   : > { %4172 = vmatprep.subr.bf16.mxu1 %v4829_v39 }
  0x72   : > { %4173 = vmatpush3.bf16.msra.mxu1 %v4829_v39  ;;  %v4595_v39 = vld [vmem:[%s5460_s1 + $0x50] sm:$0xff]  }
  0x73   : > { %1925 = vperm.xlu0 %4519, %v1915_v12   ;;  %1920 = vperm.xlu1 %4520, %v1914_v13  }
  0x75   : > { %4175 = vmatmul.mubr.bf16.vlgmr.msra.gmra.mxu1 %v4594_v14  ;;  %v4606_v14 = vld [vmem:[%s5460_s1 + $0xb8] sm:$0xff]  }
  0x76   : > { %4214 = vmatprep.mubr.bf16.mxu1 %v4597_v16 }
  0x77   : > { %1419 = vperm.xlu0 %4519, %v1917_v10   ;;  %1414 = vperm.xlu1 %4520, %v1916_v9  }
  0x7b   : > { %1409 = vperm.xlu0 %4519, %v1915_v12   ;;  %1404 = vperm.xlu1 %4520, %v1914_v13  }
  0x7f   : > { %919 = vperm.xlu0 %4519, %v1917_v10   ;;  %914 = vperm.xlu1 %4520, %v1916_v9  }
  0x81   : > { %v731_v17 = vpop.permute.xlu0 %730  ;;  %v727_v18 = vpop.permute.xlu1 %726 }
  0x82   : > { %4098 = vmatprep.subr.bf16.mxu0 %v731_v17 }
  0x83   : > { %4099 = vmatpush3.bf16.msra.mxu0 %v731_v17  ;;  %909 = vperm.xlu0 %4519, %v1915_v12  }
  0x84   : > { %904 = vperm.xlu1 %4520, %v1914_v13  }
  0x85   : > { %v729_v20 = vpop.permute.xlu0 %728  ;;  %v725_v21 = vpop.permute.xlu1 %724 }
  0x86   : > { %4100 = vmatprep.subr.bf16.mxu0 %v729_v20 }
  0x87   : > { %4101 = vmatpush3.bf16.msra.mxu0 %v729_v20  ;;  %590 = vperm.xlu0 %4519, %v1917_v10  }
  0x88   : > { %4102 = vmatprep.subr.bf16.mxu0 %v727_v18  ;;  %585 = vperm.xlu1 %4520, %v1916_v9  }
  0x89   : > { %v723_v22 = vpop.permute.xlu0 %722  ;;  %v721_v24 = vpop.permute.xlu1 %720 }
  0x8b   : > { %4103 = vmatpush3.bf16.msra.mxu0 %v727_v18  ;;  %580 = vperm.xlu0 %4519, %v1915_v12  }
  0x8c   : > { %4104 = vmatprep.subr.bf16.mxu0 %v725_v21  ;;  %575 = vperm.xlu1 %4520, %v1914_v13  }
  0x8d   : > { %v719_v25 = vpop.permute.xlu0 %718  ;;  %v717_v26 = vpop.permute.xlu1 %716 }
  0x8f   : > { %4105 = vmatpush3.bf16.msra.mxu0 %v725_v21 }
  0x90   : > { %4106 = vmatprep.subr.bf16.mxu0 %v723_v22 }
  0x91   : > { %v4968_v29 = vpop.permute.xlu0 %1241  ;;  %v1336_v30 = vpop.permute.xlu1 %1335 }
  0x92   : > { %4198 = vmatprep.subr.bf16.mxu1 %v1336_v30 }
  0x93   : > { %4107 = vmatpush3.bf16.msra.mxu0 %v723_v22  ;;  %4199 = vmatpush3.bf16.msra.mxu1 %v1336_v30 }
  0x94   : > { %4108 = vmatprep.subr.bf16.mxu0 %v721_v24 }
  0x95   : > { %v4970_v32 = vpop.permute.xlu0 %1239  ;;  %v1334_v33 = vpop.permute.xlu1 %1333 }
  0x96   : > { %4200 = vmatprep.subr.bf16.mxu1 %v1334_v33 }
  0x97   : > { %4109 = vmatpush3.bf16.msra.mxu0 %v721_v24  ;;  %4201 = vmatpush3.bf16.msra.mxu1 %v1334_v33 }
  0x98   : > { %4110 = vmatprep.subr.bf16.mxu0 %v719_v25 }
  0x99   : > { %v4972_v34 = vpop.permute.xlu0 %1237  ;;  %v1332_v35 = vpop.permute.xlu1 %1331 }
  0x9a   : > { %4202 = vmatprep.subr.bf16.mxu1 %v1332_v35 }
  0x9b   : > { %4111 = vmatpush3.bf16.msra.mxu0 %v719_v25  ;;  %4203 = vmatpush3.bf16.msra.mxu1 %v1332_v35  ;;  %v4604_v25 = vld [vmem:[%s5460_s1 + $0x98] sm:$0xff]  }
  0x9c   : > { %4112 = vmatprep.subr.bf16.mxu0 %v717_v26 }
  0x9d   : > { %v4974_v36 = vpop.permute.xlu0 %1235  ;;  %v1330_v40 = vpop.permute.xlu1 %1329 }
  0x9e   : > { %4204 = vmatprep.subr.bf16.mxu1 %v1330_v40 }
  0x9f   : > { %4113 = vmatpush3.bf16.msra.mxu0 %v717_v26  ;;  %4205 = vmatpush3.bf16.msra.mxu1 %v1330_v40 }
  0xa0   : > { %4138 = vmatprep.subr.bf16.mxu0 %v4749_v11 }
  0xa1   : > { %v4983_v41 = vpop.permute.xlu0 %1233  ;;  %v1328_v43 = vpop.permute.xlu1 %1327 }
  0xa2   : > { %4115 = vmatmul.mubr.bf16.vlgmr.msra.gmra.mxu0 %v4590_v37  ;;  %4206 = vmatprep.subr.bf16.mxu1 %v1328_v43 }
  0xa3   : > { %4139 = vmatpush3.bf16.msra.mxu0 %v4749_v11  ;;  %4154 = vmatprep.mubr.bf16.mxu0 %v4595_v39 }
  0xa4   : > { %4140 = vmatprep.subr.bf16.mxu0 %v4760_v15  ;;  %4207 = vmatpush3.bf16.msra.mxu1 %v1328_v43 }
  0xa5   : > { %v5035_v11 = vpop.permute.xlu0 %1231  ;;  %v1326_v44 = vpop.permute.xlu1 %1325 }
  0xa6   : > { %4208 = vmatprep.subr.bf16.mxu1 %v1326_v44 }
  0xa7   : > { %4141 = vmatpush3.bf16.msra.mxu0 %v4760_v15  ;;  %v4598_v15 = vld [vmem:[%s5460_s1 + $0x78] sm:$0xff]  }
  0xa8   : > { %4142 = vmatprep.subr.bf16.mxu0 %v4772_v19  ;;  %4209 = vmatpush3.bf16.msra.mxu1 %v1326_v44 }
  0xa9   : > { %v5039_v45 = vpop.permute.xlu0 %1229  ;;  %v1324_v46 = vpop.permute.xlu1 %1323 }
  0xaa   : > { %4210 = vmatprep.subr.bf16.mxu1 %v1324_v46 }
  0xab   : > { %4143 = vmatpush3.bf16.msra.mxu0 %v4772_v19  ;;  %v4601_v19 = vld [vmem:[%s5460_s1 + $0x80] sm:$0xff]  }
  0xac   : > { %4144 = vmatprep.subr.bf16.mxu0 %v4784_v23  ;;  %4211 = vmatpush3.bf16.msra.mxu1 %v1324_v46 }
  0xad   : > { %v5043_v47 = vpop.permute.xlu0 %1227  ;;  %v1322_v48 = vpop.permute.xlu1 %1321 }
  0xae   : > { %4212 = vmatprep.subr.bf16.mxu1 %v1322_v48 }
  0xaf   : > { %4145 = vmatpush3.bf16.msra.mxu0 %v4784_v23 }
  0xb0   : > { %4146 = vmatprep.subr.bf16.mxu0 %v4796_v27  ;;  %4213 = vmatpush3.bf16.msra.mxu1 %v1322_v48 }
  0xb1   : > { %v5050_v49 = vpop.permute.xlu0 %1558  ;;  %4238 = vmatprep.subr.bf16.mxu1 %v4869_v57  ;;  %v5057_v23 = vpop.permute.xlu1 %1556 }
  0xb3   : > { %4147 = vmatpush3.bf16.msra.mxu0 %v4796_v27  ;;  %4215 = vmatmul.mubr.bf16.vlgmr.msra.gmra.mxu1 %v4598_v15 }
  0xb4   : > { %4148 = vmatprep.subr.bf16.mxu0 %v4806_v31  ;;  %4239 = vmatpush3.bf16.msra.mxu1 %v4869_v57 }
  0xb5   : > { %v5061_v50 = vpop.permute.xlu0 %1554  ;;  %4254 = vmatprep.mubr.bf16.mxu1 %v4601_v19  ;;  %4240 = vmatprep.subr.bf16.mxu1 %v4883_v61  ;;  %v5065_v51 = vpop.permute.xlu1 %1552 }
  0xb7   : > { %4149 = vmatpush3.bf16.msra.mxu0 %v4806_v31  ;;  %v4596_v31 = vld [vmem:[%s5460_s1 + $0x58] sm:$0xff]  }
  0xb8   : > { %4150 = vmatprep.subr.bf16.mxu0 %v4826_v38  ;;  %4241 = vmatpush3.bf16.msra.mxu1 %v4883_v61  ;;  %v4602_v61 = vld [vmem:[%s5460_s1 + $0x88] sm:$0xff]  }
  0xb9   : > { %v5069_v27 = vpop.permute.xlu0 %1550  ;;  %4242 = vmatprep.subr.bf16.mxu1 %v4890_v63  ;;  %v5073_v52 = vpop.permute.xlu1 %1548 }
  0xbb   : > { %4151 = vmatpush3.bf16.msra.mxu0 %v4826_v38  ;;  %v4599_v38 = vld [vmem:[%s5460_s1 + $0x60] sm:$0xff]  }
  0xbc   : > { %4152 = vmatprep.subr.bf16.mxu0 %v4838_v42  ;;  %4243 = vmatpush3.bf16.msra.mxu1 %v4890_v63  ;;  %v4605_v63 = vld [vmem:[%s5460_s1 + $0xb0] sm:$0xff]  }
  0xbd   : > { %v5077_v53 = vpop.permute.xlu0 %1546  ;;  %4244 = vmatprep.subr.bf16.mxu1 %v4895_v1  ;;  %v5087_v54 = vpop.permute.xlu1 %1544 }
  0xbf   : > { %4153 = vmatpush3.bf16.msra.mxu0 %v4838_v42 }
  0xc0   : > { %4178 = vmatprep.subr.bf16.mxu0 %v4968_v29  ;;  %4245 = vmatpush3.bf16.msra.mxu1 %v4895_v1 }
  0xc1   : > { %v5091_v55 = vpop.permute.xlu0 %1757  ;;  %4246 = vmatprep.subr.bf16.mxu1 %v4902_v3  ;;  %v1852_v56 = vpop.permute.xlu1 %1851 }
  0xc2   : > { %4155 = vmatmul.mubr.bf16.vlgmr.msra.gmra.mxu0 %v4596_v31 }
  0xc3   : > { %4179 = vmatpush3.bf16.msra.mxu0 %v4968_v29  ;;  %4194 = vmatprep.mubr.bf16.mxu0 %v4599_v38  ;;  %v4607_v29 = vld [vmem:[%s5460_s1 + $0xa0] sm:$0xff]  }
  0xc4   : > { %4180 = vmatprep.subr.bf16.mxu0 %v4970_v32  ;;  %4247 = vmatpush3.bf16.msra.mxu1 %v4902_v3 }
  0xc5   : > { %v5097_v42 = vpop.permute.xlu0 %1755  ;;  %4248 = vmatprep.subr.bf16.mxu1 %v4913_v5  ;;  %v1850_v57 = vpop.permute.xlu1 %1849 }
  0xc7   : > { %4181 = vmatpush3.bf16.msra.mxu0 %v4970_v32 }
  0xc8   : > { %4182 = vmatprep.subr.bf16.mxu0 %v4972_v34  ;;  %4249 = vmatpush3.bf16.msra.mxu1 %v4913_v5  ;;  %v4603_v5 = vld [vmem:[%s5460_s1 + $0x90] sm:$0xff]  }
  0xc9   : > { %v5103_v58 = vpop.permute.xlu0 %1753  ;;  %4250 = vmatprep.subr.bf16.mxu1 %v4921_v7  ;;  %v1848_v59 = vpop.permute.xlu1 %1847 }
  0xcb   : > { %4183 = vmatpush3.bf16.msra.mxu0 %v4972_v34 }
  0xcc   : > { %4184 = vmatprep.subr.bf16.mxu0 %v4974_v36  ;;  %4251 = vmatpush3.bf16.msra.mxu1 %v4921_v7 }
  0xcd   : > { %4252 = vmatprep.subr.bf16.mxu1 %v4929_v8  ;;  %v5110_v60 = vpop.permute.xlu0 %1751  ;;  %v1846_v62 = vpop.permute.xlu1 %1845 }
  0xcf   : > { %4185 = vmatpush3.bf16.msra.mxu0 %v4974_v36 }
  0xd0   : > { %4186 = vmatprep.subr.bf16.mxu0 %v4983_v41  ;;  %4253 = vmatpush3.bf16.msra.mxu1 %v4929_v8 }
  0xd1   : > { %4278 = vmatprep.subr.bf16.mxu1 %v1852_v56  ;;  %v5123_v0 = vpop.permute.xlu0 %1749  ;;  %v1844_v1 = vpop.permute.xlu1 %1843 }
  0xd3   : > { %4187 = vmatpush3.bf16.msra.mxu0 %v4983_v41  ;;  %4255 = vmatmul.mubr.bf16.vlgmr.msra.gmra.mxu1 %v4602_v61 }
  0xd4   : > { %4188 = vmatprep.subr.bf16.mxu0 %v5035_v11  ;;  %4279 = vmatpush3.bf16.msra.mxu1 %v1852_v56 }
  0xd5   : > { %4294 = vmatprep.mubr.bf16.mxu1 %v4605_v63  ;;  %4280 = vmatprep.subr.bf16.mxu1 %v1850_v57  ;;  %v5127_v2 = vpop.permute.xlu0 %1747  ;;  %v1842_v3 = vpop.permute.xlu1 %1841 }
  0xd7   : > { %4189 = vmatpush3.bf16.msra.mxu0 %v5035_v11 }
  0xd8   : > { %4190 = vmatprep.subr.bf16.mxu0 %v5039_v45  ;;  %4281 = vmatpush3.bf16.msra.mxu1 %v1850_v57 }
  0xd9   : > { %4282 = vmatprep.subr.bf16.mxu1 %v1848_v59  ;;  %v5139_v6 = vpop.permute.xlu0 %1745  ;;  %v1840_v7 = vpop.permute.xlu1 %1839 }
  0xdb   : > { %4191 = vmatpush3.bf16.msra.mxu0 %v5039_v45 }
  0xdc   : > { %4192 = vmatprep.subr.bf16.mxu0 %v5043_v47  ;;  %4283 = vmatpush3.bf16.msra.mxu1 %v1848_v59 }
  0xdd   : > { %4284 = vmatprep.subr.bf16.mxu1 %v1846_v62  ;;  %v5143_v8 = vpop.permute.xlu0 %1743  ;;  %v1838_v9 = vpop.permute.xlu1 %1837 }
  0xdf   : > { %4193 = vmatpush3.bf16.msra.mxu0 %v5043_v47 }
  0xe0   : > { %4218 = vmatprep.subr.bf16.mxu0 %v5050_v49  ;;  %4285 = vmatpush3.bf16.msra.mxu1 %v1846_v62 }
  0xe1   : > { %4286 = vmatprep.subr.bf16.mxu1 %v1844_v1 }
  0xe2   : > { %4195 = vmatmul.mubr.bf16.vlgmr.msra.gmra.mxu0 %v4600_v4 }
  0xe3   : > { %4219 = vmatpush3.bf16.msra.mxu0 %v5050_v49  ;;  %4234 = vmatprep.mubr.bf16.mxu0 %v4603_v5 }
  0xe4   : > { %4220 = vmatprep.subr.bf16.mxu0 %v5057_v23  ;;  %4287 = vmatpush3.bf16.msra.mxu1 %v1844_v1 }
  0xe5   : > { %4288 = vmatprep.subr.bf16.mxu1 %v1842_v3 }
  0xe7   : > { %4221 = vmatpush3.bf16.msra.mxu0 %v5057_v23 }
  0xe8   : > { %4222 = vmatprep.subr.bf16.mxu0 %v5061_v50  ;;  %4289 = vmatpush3.bf16.msra.mxu1 %v1842_v3 }
  0xe9   : > { %4290 = vmatprep.subr.bf16.mxu1 %v1840_v7 }
  0xea   : > { %v5147_v10 = vpop.permute.xlu0 %1930  ;;  %v5151_v12 = vpop.permute.xlu1 %1935 }
  0xeb   : > { %4223 = vmatpush3.bf16.msra.mxu0 %v5061_v50 }
  0xec   : > { %4224 = vmatprep.subr.bf16.mxu0 %v5065_v51  ;;  %4291 = vmatpush3.bf16.msra.mxu1 %v1840_v7 }
  0xed   : > { %4292 = vmatprep.subr.bf16.mxu1 %v1838_v9 }
  0xee   : > { %v5153_v13 = vpop.permute.xlu0 %1925  ;;  %v5160_v16 = vpop.permute.xlu1 %1920 }
  0xef   : > { %4225 = vmatpush3.bf16.msra.mxu0 %v5065_v51 }
  0xf0   : > { %4226 = vmatprep.subr.bf16.mxu0 %v5069_v27  ;;  %4293 = vmatpush3.bf16.msra.mxu1 %v1838_v9 }
  0xf2   : > { %v5162_v17 = vpop.permute.xlu0 %1419  ;;  %v5166_v18 = vpop.permute.xlu1 %1414 }
  0xf3   : > { %4227 = vmatpush3.bf16.msra.mxu0 %v5069_v27  ;;  %4295 = vmatmul.mubr.bf16.vlgmr.msra.gmra.mxu1 %v4606_v14 }
  0xf4   : > { %4228 = vmatprep.subr.bf16.mxu0 %v5073_v52  ;;  %v4076_v32 = vpop.f32.mrf.mxu0 }
  0xf5   : > { %v4096_v33 = vpop.f32.mrf.mxu1 }
  0xf6   : > { %v5168_v20 = vpop.permute.xlu0 %1409  ;;  %v5172_v21 = vpop.permute.xlu1 %1404  ;;  %v563_v35 = vadd.f32 %v4096_v33, %v4076_v32 }
  0xf7   : > { %4229 = vmatpush3.bf16.msra.mxu0 %v5073_v52  ;;  %v445_v36 = vpop.f32.mrf.mxu0  ;;  %v554_v37 = vpop.f32.mrf.mxu1 }
  0xf8   : > { %4230 = vmatprep.subr.bf16.mxu0 %v5077_v53  ;;  %v555_v40 = vadd.f32 %v554_v37, %v445_v36 }
  0xf9   : > { %v4077_v43 = vpop.f32.mrf.mxu0  ;;  %v4097_v11 = vpop.f32.mrf.mxu1 }
  0xfa   : > { %v5174_v22 = vpop.permute.xlu0 %919  ;;  %v5178_v24 = vpop.permute.xlu1 %914  ;;  %v566_v45 = vadd.f32 %v4097_v11, %v4077_v43 }
  0xfb   : > { %4231 = vmatpush3.bf16.msra.mxu0 %v5077_v53  ;;  %v448_v46 = vpop.f32.mrf.mxu0  ;;  %v557_v48 = vpop.f32.mrf.mxu1 }
  0xfc   : > { %4232 = vmatprep.subr.bf16.mxu0 %v5087_v54  ;;  %v558_v23 = vadd.f32 %v557_v48, %v448_v46 }
  0xfe   : > { %v5183_v26 = vpop.permute.xlu0 %909 }
  0xff   : > { %4233 = vmatpush3.bf16.msra.mxu0 %v5087_v54  ;;  %v5190_v30 = vpop.permute.xlu1 %904 }
 0x100   : > { %4258 = vmatprep.subr.bf16.mxu0 %v5091_v55 }
 0x102   : > { %4235 = vmatmul.mubr.bf16.vlgmr.msra.gmra.mxu0 %v4604_v25  ;;  %v591_v34 = vpop.permute.xlu0 %590 }
 0x103   : > { %4259 = vmatpush3.bf16.msra.mxu0 %v5091_v55  ;;  %4274 = vmatprep.mubr.bf16.mxu0 %v4607_v29  ;;  %v586_v39 = vpop.permute.xlu1 %585  ;;  %v596_v19 = vadd.f32 %v591_v34, %v566_v45  ;;  %v4608_v55 = vld [vmem:[%s5460_s1 + $0xa8] sm:$0xff]  }
 0x104   : > { %4260 = vmatprep.subr.bf16.mxu0 %v5097_v42  ;;  %v595_v41 = vadd.f32 %v586_v39, %v563_v35 }
 0x105   : > { %v600_v51 = vmax.f32 %v596_v19, 0.0 }
 0x106   : > { %v599_v44 = vmax.f32 %v595_v41, 0.0  ;;  %v581_v47 = vpop.permute.xlu0 %580 }
 0x107   : > { %4261 = vmatpush3.bf16.msra.mxu0 %v5097_v42  ;;  %v576_v15 = vpop.permute.xlu1 %575  ;;  %v594_v27 = vadd.f32 %v581_v47, %v558_v23  ;;  %v3811_v53 = vpack.c.bf16 %v600_v51, %v600_v51 }
 0x108   : > { %4262 = vmatprep.subr.bf16.mxu0 %v5103_v58  ;;  %v3810_v49 = vpack.c.bf16 %v599_v44, %v599_v44  ;;  %v593_v50 = vadd.f32 %v576_v15, %v555_v40 }
 0x109   : > { %v598_v31 = vmax.f32 %v594_v27, 0.0  ;;  %621 = vst.msk [vmem:[#allocation2 + $0xc] sm:$0xf] %vm617_vm1, %v3811_v53 }
 0x10a   : > { %620 = vst.msk [vmem:[#allocation2 + $0x8] sm:$0xf] %vm617_vm1, %v3810_v49  ;;  %v597_v52 = vmax.f32 %v593_v50, 0.0 }
 0x10b   : > { %4263 = vmatpush3.bf16.msra.mxu0 %v5103_v58  ;;  %v3809_v54 = vpack.c.bf16 %v598_v31, %v598_v31 }
 0x10c   : > { %4264 = vmatprep.subr.bf16.mxu0 %v5110_v60  ;;  %v3808_v38 = vpack.c.bf16 %v597_v52, %v597_v52 }
 0x10d   : > { %619 = vst.msk [vmem:[#allocation2 + $0x4] sm:$0xf] %vm617_vm1, %v3809_v54 }
 0x10e   : > { %618 = vst.msk [vmem:[#allocation2] sm:$0xf] %vm617_vm1, %v3808_v38 }
 0x10f   : > { %4265 = vmatpush3.bf16.msra.mxu0 %v5110_v60 }
 0x110   : > { %4266 = vmatprep.subr.bf16.mxu0 %v5123_v0 }
 0x113   : > { %4267 = vmatpush3.bf16.msra.mxu0 %v5123_v0 }
 0x114   : > { %4268 = vmatprep.subr.bf16.mxu0 %v5127_v2 }
 0x115   : > { %v4136_v56 = vpop.f32.mrf.mxu1 }
 0x117   : > { %4269 = vmatpush3.bf16.msra.mxu0 %v5127_v2  ;;  %v883_v42 = vpop.f32.mrf.mxu1 }
 0x118   : > { %4270 = vmatprep.subr.bf16.mxu0 %v5139_v6 }
 0x119   : > { %v4137_v59 = vpop.f32.mrf.mxu1 }
 0x11b   : > { %4271 = vmatpush3.bf16.msra.mxu0 %v5139_v6  ;;  %v886_v3 = vpop.f32.mrf.mxu1 }
 0x11c   : > { %4272 = vmatprep.subr.bf16.mxu0 %v5143_v8 }
 0x11f   : > { %4273 = vmatpush3.bf16.msra.mxu0 %v5143_v8 }
 0x122   : > { %4275 = vmatmul.mubr.bf16.vlgmr.msra.gmra.mxu0 %v4608_v55 }
 0x135   : > { %v4176_v32 = vpop.f32.mrf.mxu1 }
 0x137   : > { %v1195_v33 = vpop.f32.mrf.mxu1 }
 0x162   : > { %v4116_v57 = vpop.f32.mrf.mxu0 }
 0x163   : > { %v892_v58 = vadd.f32 %v4136_v56, %v4116_v57 }
 0x164   : > { %v774_v60 = vpop.f32.mrf.mxu0 }
 0x165   : > { %v924_v61 = vadd.f32 %v5178_v24, %v892_v58  ;;  %v884_v62 = vadd.f32 %v883_v42, %v774_v60 }
 0x166   : > { %v4117_v63 = vpop.f32.mrf.mxu0 }
 0x167   : > { %v928_v0 = vmax.f32 %v924_v61, 0.0  ;;  %v922_v1 = vadd.f32 %v5190_v30, %v884_v62  ;;  %v895_v2 = vadd.f32 %v4137_v59, %v4117_v63 }
 0x168   : > { %v777_v4 = vpop.f32.mrf.mxu0 }
 0x169   : > { %v3814_v5 = vpack.c.bf16 %v928_v0, %v928_v0  ;;  %v926_v6 = vmax.f32 %v922_v1, 0.0  ;;  %v925_v7 = vadd.f32 %v5174_v22, %v895_v2  ;;  %v887_v8 = vadd.f32 %v886_v3, %v777_v4  ;;  %v4177_v22 = vpop.f32.mrf.mxu1 }
 0x16b   : > { %948 = vst.msk [vmem:[#allocation2 + $0x18] sm:$0xf] %vm617_vm1, %v3814_v5  ;;  %v3812_v9 = vpack.c.bf16 %v926_v6, %v926_v6  ;;  %v929_v14 = vmax.f32 %v925_v7, 0.0  ;;  %v923_v25 = vadd.f32 %v5183_v26, %v887_v8  ;;  %v1198_v36 = vpop.f32.mrf.mxu1 }
 0x16d   : > { %946 = vst.msk [vmem:[#allocation2 + $0x10] sm:$0xf] %vm617_vm1, %v3812_v9  ;;  %v3815_v24 = vpack.c.bf16 %v929_v14, %v929_v14  ;;  %v927_v29 = vmax.f32 %v923_v25, 0.0 }
 0x16f   : > { %949 = vst.msk [vmem:[#allocation2 + $0x1c] sm:$0xf] %vm617_vm1, %v3815_v24  ;;  %v3813_v30 = vpack.c.bf16 %v927_v29, %v927_v29 }
 0x171   : > { %947 = vst.msk [vmem:[#allocation2 + $0x14] sm:$0xf] %vm617_vm1, %v3813_v30 }
 0x173   : > { %v4216_v39 = vpop.f32.mrf.mxu1 }
 0x175   : > { %v1379_v26 = vpop.f32.mrf.mxu1 }
 0x177   : > { %v4217_v15 = vpop.f32.mrf.mxu1 }
 0x179   : > { %v1382_v54 = vpop.f32.mrf.mxu1 }
 0x182   : > { %v4156_v34 = vpop.f32.mrf.mxu0 }
 0x183   : > { %v1204_v41 = vadd.f32 %v4176_v32, %v4156_v34 }
 0x184   : > { %v1086_v35 = vpop.f32.mrf.mxu0 }
 0x185   : > { %v1196_v11 = vadd.f32 %v1195_v33, %v1086_v35 }
 0x186   : > { %v4157_v37 = vpop.f32.mrf.mxu0 }
 0x187   : > { %v1207_v46 = vadd.f32 %v4177_v22, %v4157_v37 }
 0x188   : > { %v1089_v40 = vpop.f32.mrf.mxu0 }
 0x189   : > { %v1199_v19 = vadd.f32 %v1198_v36, %v1089_v40 }
 0x193   : > { %v4256_v62 = vpop.f32.mrf.mxu1 }
 0x195   : > { %v1711_v63 = vpop.f32.mrf.mxu1 }
 0x1a2   : > { %v4196_v43 = vpop.f32.mrf.mxu0 }
 0x1a3   : > { %v1302_v44 = vadd.f32 %v4196_v43, %v1204_v41 }
 0x1a4   : > { %v1285_v45 = vpop.f32.mrf.mxu0 }
 0x1a5   : > { %v1396_v47 = vadd.f32 %v4216_v39, %v1302_v44  ;;  %v1300_v48 = vadd.f32 %v1285_v45, %v1196_v11 }
 0x1a6   : > { %v4197_v49 = vpop.f32.mrf.mxu0 }
 0x1a7   : > { %v1424_v23 = vadd.f32 %v5166_v18, %v1396_v47  ;;  %v1394_v50 = vadd.f32 %v1379_v26, %v1300_v48  ;;  %v1303_v51 = vadd.f32 %v4197_v49, %v1207_v46 }
 0x1a8   : > { %v1288_v27 = vpop.f32.mrf.mxu0 }
 0x1a9   : > { %v1428_v52 = vmax.f32 %v1424_v23, 0.0  ;;  %v1422_v53 = vadd.f32 %v5172_v21, %v1394_v50  ;;  %v1397_v31 = vadd.f32 %v4217_v15, %v1303_v51  ;;  %v1301_v38 = vadd.f32 %v1288_v27, %v1199_v19  ;;  %v4613_v50 = vld [vmem:[#allocation2 + $0x18] sm:$0xff]   ;;  %v4614_v51 = vld [vmem:[#allocation2 + $0x10] sm:$0xff]   ;;  %v4615_v27 = vld [vmem:[#allocation2 + $0x8] sm:$0xff]  }
 0x1ab   : > { %v3818_v55 = vpack.c.bf16 %v1428_v52, %v1428_v52  ;;  %v1426_v56 = vmax.f32 %v1422_v53, 0.0  ;;  %v1425_v42 = vadd.f32 %v5162_v17, %v1397_v31  ;;  %v1395_v57 = vadd.f32 %v1382_v54, %v1301_v38  ;;  %v4257_v17 = vpop.f32.mrf.mxu1  ;;  %v4616_v52 = vld [vmem:[#allocation2] sm:$0xff]   ;;  %v4618_v31 = vld [vmem:[%s5462_s3 + $0x8] sm:$0xff]   ;;  %v4622_v38 = vld [vmem:[%s5462_s3 + $0x10] sm:$0xff]  }
 0x1ac   : > { %v4619_v53 = vld [vmem:[%s5462_s3 + $0x20] sm:$0xff]   ;;  %v4624_v54 = vld [vmem:[%s5462_s3 + $0x18] sm:$0xff]  }
 0x1ad   : > { %1448 = vst.msk [vmem:[#allocation2 + $0x28] sm:$0xf] %vm617_vm1, %v3818_v55  ;;  %v3816_v58 = vpack.c.bf16 %v1426_v56, %v1426_v56  ;;  %v1429_v59 = vmax.f32 %v1425_v42, 0.0  ;;  %v1423_v18 = vadd.f32 %v5168_v20, %v1395_v57  ;;  %v1714_v2 = vpop.f32.mrf.mxu1  ;;  %4314 = vmatprep.mubr.bf16.mxu0 %v4619_v53  ;;  %v4625_v55 = vld [vmem:[%s5462_s3 + $0x60] sm:$0xff]   ;;  %v2515_v56 = vld [vmem:[%s5463_s4 + $0x30] sm:$0xff]  ;;  %v2516_v42 = vld [vmem:[%s5463_s4 + $0x38] sm:$0xff] }
 0x1ae   : > { %v2513_v57 = vld [vmem:[%s5463_s4 + $0x20] sm:$0xff] }
 0x1af   : > { %1446 = vst.msk [vmem:[#allocation2 + $0x20] sm:$0xf] %vm617_vm1, %v3816_v58  ;;  %v3819_v60 = vpack.c.bf16 %v1429_v59, %v1429_v59  ;;  %v1427_v61 = vmax.f32 %v1423_v18, 0.0  ;;  %v2514_v58 = vld [vmem:[%s5463_s4 + $0x28] sm:$0xff]  ;;  %v2511_v59 = vld [vmem:[%s5463_s4 + $0x10] sm:$0xff]  ;;  %v2512_v18 = vld [vmem:[%s5463_s4 + $0x18] sm:$0xff] }
 0x1b1   : > { %1449 = vst.msk [vmem:[#allocation2 + $0x2c] sm:$0xf] %vm617_vm1, %v3819_v60  ;;  %v3817_v21 = vpack.c.bf16 %v1427_v61, %v1427_v61  ;;  %v2509_v60 = vld [vmem:[%s5463_s4] sm:$0xff]  ;;  %v2510_v61 = vld [vmem:[%s5463_s4 + $0x8] sm:$0xff] }
 0x1b3   : > { %1447 = vst.msk [vmem:[#allocation2 + $0x24] sm:$0xf] %vm617_vm1, %v3817_v21  ;;  %v4296_v4 = vpop.f32.mrf.mxu1 }
 0x1b5   : > { %v1895_v20 = vpop.f32.mrf.mxu1 }
 0x1b7   : > { %v4297_v30 = vpop.f32.mrf.mxu1 }
 0x1b8   : > { %v4611_v19 = vld [vmem:[#allocation2 + $0x28] sm:$0xff]  }
 0x1b9   : > { %v1898_v26 = vpop.f32.mrf.mxu1 }
 0x1ba   : > { %v4612_v23 = vld [vmem:[#allocation2 + $0x20] sm:$0xff]  }
 0x1c2   : > { %v4236_v0 = vpop.f32.mrf.mxu0 }
 0x1c3   : > { %v1720_v6 = vadd.f32 %v4256_v62, %v4236_v0 }
 0x1c4   : > { %v1602_v1 = vpop.f32.mrf.mxu0 }
 0x1c5   : > { %v1712_v8 = vadd.f32 %v1711_v63, %v1602_v1 }
 0x1c6   : > { %v4237_v3 = vpop.f32.mrf.mxu0 }
 0x1c7   : > { %v1723_v25 = vadd.f32 %v4257_v17, %v4237_v3 }
 0x1c8   : > { %v1605_v5 = vpop.f32.mrf.mxu0 }
 0x1c9   : > { %v1715_v33 = vadd.f32 %v1714_v2, %v1605_v5 }
 0x1e2   : > { %v4276_v7 = vpop.f32.mrf.mxu0 }
 0x1e3   : > { %v1818_v9 = vadd.f32 %v4276_v7, %v1720_v6 }
 0x1e4   : > { %v1801_v14 = vpop.f32.mrf.mxu0 }
 0x1e5   : > { %v1912_v24 = vadd.f32 %v4296_v4, %v1818_v9  ;;  %v1816_v29 = vadd.f32 %v1801_v14, %v1712_v8  ;;  %v4620_v9 = vld [vmem:[%s5462_s3 + $0x28] sm:$0xff]  }
 0x1e6   : > { %v4277_v32 = vpop.f32.mrf.mxu0 }
 0x1e7   : > { %v1940_v34 = vadd.f32 %v5147_v10, %v1912_v24  ;;  %v1910_v22 = vadd.f32 %v1895_v20, %v1816_v29  ;;  %v1819_v35 = vadd.f32 %v4277_v32, %v1723_v25  ;;  %v4621_v25 = vld [vmem:[%s5462_s3 + $0x30] sm:$0xff]  }
 0x1e8   : > { %v1804_v36 = vpop.f32.mrf.mxu0 }
 0x1e9   : > { %v1944_v37 = vmax.f32 %v1940_v34, 0.0  ;;  %v1938_v39 = vadd.f32 %v5160_v16, %v1910_v22  ;;  %v1913_v40 = vadd.f32 %v4297_v30, %v1819_v35  ;;  %v1817_v41 = vadd.f32 %v1804_v36, %v1715_v33  ;;  %v4623_v30 = vld [vmem:[%s5462_s3 + $0x38] sm:$0xff]   ;;  %v4627_v33 = vld [vmem:[%s5462_s3 + $0x40] sm:$0xff]  }
 0x1eb   : > { %v3822_v43 = vpack.c.bf16 %v1944_v37, %v1944_v37  ;;  %v1942_v11 = vmax.f32 %v1938_v39, 0.0  ;;  %v1941_v44 = vadd.f32 %v5151_v12, %v1913_v40  ;;  %v1911_v45 = vadd.f32 %v1898_v26, %v1817_v41  ;;  %v4626_v37 = vld [vmem:[%s5462_s3 + $0x68] sm:$0xff]   ;;  %v4629_v39 = vld [vmem:[%s5462_s3 + $0x70] sm:$0xff]   ;;  %v4630_v41 = vld [vmem:[%s5462_s3 + $0x78] sm:$0xff]  }
 0x1ed   : > { %1964 = vst.msk [vmem:[#allocation2 + $0x38] sm:$0xf] %vm617_vm1, %v3822_v43  ;;  %v3820_v46 = vpack.c.bf16 %v1942_v11, %v1942_v11  ;;  %v1945_v47 = vmax.f32 %v1941_v44, 0.0  ;;  %v1939_v10 = vadd.f32 %v5153_v13, %v1911_v45  ;;  %v4617_v13 = vld [vmem:[%s5462_s3] sm:$0xff]   ;;  %v4628_v43 = vld [vmem:[%s5462_s3 + $0x48] sm:$0xff]   ;;  %v4631_v11 = vld [vmem:[%s5462_s3 + $0x50] sm:$0xff]  }
 0x1ee   : > { %4338 = vmatprep.mubr.bf16.mxu1 %v4617_v13  ;;  %v4632_v44 = vld [vmem:[%s5462_s3 + $0x58] sm:$0xff]  }
 0x1ef   : > { %1962 = vst.msk [vmem:[#allocation2 + $0x30] sm:$0xf] %vm617_vm1, %v3820_v46  ;;  %v3823_v48 = vpack.c.bf16 %v1945_v47, %v1945_v47  ;;  %v1943_v15 = vmax.f32 %v1939_v10, 0.0 }
 0x1f1   : > { %1965 = vst.msk [vmem:[#allocation2 + $0x3c] sm:$0xf] %vm617_vm1, %v3823_v48  ;;  %v3821_v16 = vpack.c.bf16 %v1943_v15, %v1943_v15 }
 0x1f3   : > { %1963 = vst.msk [vmem:[#allocation2 + $0x34] sm:$0xf] %vm617_vm1, %v3821_v16 }
 0x1f8   : > { %v4609_v49 = vld [vmem:[#allocation2 + $0x38] sm:$0xff]  }
 0x1f9   : > { %2077 = vrot.lane.b32.xlu1 %v4609_v49, %s4659_s11  ;;  %4322 = vmatprep.subr.bf16.mxu1 %v4609_v49 }
 0x1fa   : > { %v4610_v12 = vld [vmem:[#allocation2 + $0x30] sm:$0xff]   ;;  %4323 = vmatpush3.bf16.msra.mxu1 %v4609_v49 }
 0x1fb   : > { %2075 = vrot.lane.b32.xlu0 %v4610_v12, %s4659_s11  ;;  %4324 = vmatprep.subr.bf16.mxu1 %v4610_v12 }
 0x1fd   : > { %2073 = vrot.lane.b32.xlu1 %v4611_v19, %s4659_s11 }
 0x1fe   : > { %4325 = vmatpush3.bf16.msra.mxu1 %v4610_v12 }
 0x1ff   : > { %4326 = vmatprep.subr.bf16.mxu1 %v4611_v19  ;;  %2071 = vrot.lane.b32.xlu0 %v4612_v23, %s4659_s11 }
 0x201   : > { %2069 = vrot.lane.b32.xlu1 %v4613_v50, %s4659_s11 }
 0x202   : > { %4327 = vmatpush3.bf16.msra.mxu1 %v4611_v19 }
 0x203   : > { %4328 = vmatprep.subr.bf16.mxu1 %v4612_v23  ;;  %2067 = vrot.lane.b32.xlu0 %v4614_v51, %s4659_s11 }
 0x205   : > { %2065 = vrot.lane.b32.xlu1 %v4615_v27, %s4659_s11 }
 0x206   : > { %4329 = vmatpush3.bf16.msra.mxu1 %v4612_v23 }
 0x207   : > { %4330 = vmatprep.subr.bf16.mxu1 %v4613_v50  ;;  %2063 = vrot.lane.b32.xlu0 %v4616_v52, %s4659_s11 }
 0x209   : > { %2296 = vrot.lane.b32.xlu1 %v4609_v49, %s4660_s12 }
 0x20a   : > { %4331 = vmatpush3.bf16.msra.mxu1 %v4613_v50 }
 0x20b   : > { %4332 = vmatprep.subr.bf16.mxu1 %v4614_v51  ;;  %2426 = vrot.lane.b32.xlu0 %v4609_v49, %s4662_s21 }
 0x20d   : > { %2294 = vrot.lane.b32.xlu1 %v4610_v12, %s4660_s12 }
 0x20e   : > { %4333 = vmatpush3.bf16.msra.mxu1 %v4614_v51 }
 0x20f   : > { %4334 = vmatprep.subr.bf16.mxu1 %v4615_v27  ;;  %2424 = vrot.lane.b32.xlu0 %v4610_v12, %s4662_s21 }
 0x211   : > { %2292 = vrot.lane.b32.xlu1 %v4611_v19, %s4660_s12 }
 0x212   : > { %4335 = vmatpush3.bf16.msra.mxu1 %v4615_v27 }
 0x213   : > { %2422 = vrot.lane.b32.xlu0 %v4611_v19, %s4662_s21  ;;  %4336 = vmatprep.subr.bf16.mxu1 %v4616_v52 }
 0x215   : > { %2290 = vrot.lane.b32.xlu1 %v4612_v23, %s4660_s12 }
 0x216   : > { %4337 = vmatpush3.bf16.msra.mxu1 %v4616_v52 }
 0x217   : > { %2420 = vrot.lane.b32.xlu0 %v4612_v23, %s4662_s21 }
 0x219   : > { %2288 = vrot.lane.b32.xlu1 %v4613_v50, %s4660_s12  ;;  %4339 = vmatmul.mubr.bf16.vlgmr.msra.gmra.mxu1 %v4618_v31 }
 0x21a   : > { %4342 = vmatprep.mubr.bf16.mxu1 %v4622_v38 }
 0x21b   : > { %2418 = vrot.lane.b32.xlu0 %v4613_v50, %s4662_s21 }
 0x21d   : > { %2286 = vrot.lane.b32.xlu1 %v4614_v51, %s4660_s12 }
 0x21f   : > { %2416 = vrot.lane.b32.xlu0 %v4614_v51, %s4662_s21 }
 0x221   : > { %2284 = vrot.lane.b32.xlu1 %v4615_v27, %s4660_s12  ;;  %4343 = vmatmul.mubr.bf16.gmra.mxu1 %v4624_v54 }
 0x222   : > { %4386 = vmatprep.mubr.bf16.mxu1 %v4625_v55 }
 0x223   : > { %2414 = vrot.lane.b32.xlu0 %v4615_v27, %s4662_s21 }
 0x225   : > { %2282 = vrot.lane.b32.xlu1 %v4616_v52, %s4660_s12 }
 0x227   : > { %2412 = vrot.lane.b32.xlu0 %v4616_v52, %s4662_s21 }
 0x229   : > { %2549 = vperm.xlu1 %4520, %v2515_v56  }
 0x22b   : > { %2554 = vperm.xlu0 %4519, %v2516_v42  }
 0x22d   : > { %2539 = vperm.xlu1 %4520, %v2513_v57  }
 0x22f   : > { %2544 = vperm.xlu0 %4519, %v2514_v58  }
 0x231   : > { %2529 = vperm.xlu1 %4520, %v2511_v59  }
 0x233   : > { %2534 = vperm.xlu0 %4519, %v2512_v18  }
 0x235   : > { %2519 = vperm.xlu1 %4520, %v2509_v60  }
 0x237   : > { %2524 = vperm.xlu0 %4519, %v2510_v61  }
 0x26b   : > { %v2078_v21 = vpop.permute.xlu1 %2077 }
 0x26c   : > { %4298 = vmatprep.subr.bf16.mxu0 %v2078_v21 }
 0x26d   : > { %4299 = vmatpush3.bf16.msra.mxu0 %v2078_v21  ;;  %v2076_v62 = vpop.permute.xlu0 %2075 }
 0x26e   : > { %4300 = vmatprep.subr.bf16.mxu0 %v2076_v62 }
 0x26f   : > { %v2074_v63 = vpop.permute.xlu1 %2073 }
 0x271   : > { %4301 = vmatpush3.bf16.msra.mxu0 %v2076_v62  ;;  %v2072_v0 = vpop.permute.xlu0 %2071 }
 0x272   : > { %4302 = vmatprep.subr.bf16.mxu0 %v2074_v63 }
 0x273   : > { %v2070_v17 = vpop.permute.xlu1 %2069 }
 0x275   : > { %4303 = vmatpush3.bf16.msra.mxu0 %v2074_v63  ;;  %v2068_v1 = vpop.permute.xlu0 %2067 }
 0x276   : > { %4304 = vmatprep.subr.bf16.mxu0 %v2072_v0 }
 0x277   : > { %v2066_v2 = vpop.permute.xlu1 %2065 }
 0x279   : > { %4305 = vmatpush3.bf16.msra.mxu0 %v2072_v0  ;;  %v2064_v3 = vpop.permute.xlu0 %2063 }
 0x27a   : > { %4306 = vmatprep.subr.bf16.mxu0 %v2070_v17 }
 0x27b   : > { %v2297_v4 = vpop.permute.xlu1 %2296 }
 0x27d   : > { %4307 = vmatpush3.bf16.msra.mxu0 %v2070_v17  ;;  %v2427_v5 = vpop.permute.xlu0 %2426 }
 0x27e   : > { %4308 = vmatprep.subr.bf16.mxu0 %v2068_v1  ;;  %4370 = vmatprep.subr.bf16.mxu1 %v2427_v5 }
 0x27f   : > { %4371 = vmatpush3.bf16.msra.mxu1 %v2427_v5  ;;  %v2295_v6 = vpop.permute.xlu1 %2294 }
 0x281   : > { %4309 = vmatpush3.bf16.msra.mxu0 %v2068_v1  ;;  %v2425_v20 = vpop.permute.xlu0 %2424 }
 0x282   : > { %4310 = vmatprep.subr.bf16.mxu0 %v2066_v2  ;;  %4372 = vmatprep.subr.bf16.mxu1 %v2425_v20 }
 0x283   : > { %4373 = vmatpush3.bf16.msra.mxu1 %v2425_v20  ;;  %v2293_v8 = vpop.permute.xlu1 %2292 }
 0x285   : > { %4311 = vmatpush3.bf16.msra.mxu0 %v2066_v2  ;;  %v2423_v7 = vpop.permute.xlu0 %2422 }
 0x286   : > { %4312 = vmatprep.subr.bf16.mxu0 %v2064_v3  ;;  %4374 = vmatprep.subr.bf16.mxu1 %v2423_v7 }
 0x287   : > { %4375 = vmatpush3.bf16.msra.mxu1 %v2423_v7  ;;  %v2291_v24 = vpop.permute.xlu1 %2290 }
 0x289   : > { %4313 = vmatpush3.bf16.msra.mxu0 %v2064_v3  ;;  %v2421_v14 = vpop.permute.xlu0 %2420 }
 0x28a   : > { %4346 = vmatprep.subr.bf16.mxu0 %v2297_v4  ;;  %4376 = vmatprep.subr.bf16.mxu1 %v2421_v14 }
 0x28b   : > { %4377 = vmatpush3.bf16.msra.mxu1 %v2421_v14  ;;  %v2289_v34 = vpop.permute.xlu1 %2288 }
 0x28c   : > { %4315 = vmatmul.mubr.bf16.vlgmr.msra.gmra.mxu0 %v4620_v9 }
 0x28d   : > { %4347 = vmatpush3.bf16.msra.mxu0 %v2297_v4  ;;  %v2419_v29 = vpop.permute.xlu0 %2418  ;;  %4318 = vmatprep.mubr.bf16.mxu0 %v4621_v25 }
 0x28e   : > { %4348 = vmatprep.subr.bf16.mxu0 %v2295_v6  ;;  %4378 = vmatprep.subr.bf16.mxu1 %v2419_v29 }
 0x28f   : > { %4379 = vmatpush3.bf16.msra.mxu1 %v2419_v29  ;;  %v2287_v35 = vpop.permute.xlu1 %2286 }
 0x291   : > { %4349 = vmatpush3.bf16.msra.mxu0 %v2295_v6  ;;  %v2417_v32 = vpop.permute.xlu0 %2416 }
 0x292   : > { %4350 = vmatprep.subr.bf16.mxu0 %v2293_v8  ;;  %4380 = vmatprep.subr.bf16.mxu1 %v2417_v32 }
 0x293   : > { %4381 = vmatpush3.bf16.msra.mxu1 %v2417_v32  ;;  %v2285_v40 = vpop.permute.xlu1 %2284 }
 0x294   : > { %4319 = vmatmul.mubr.bf16.gmra.mxu0 %v4623_v30 }
 0x295   : > { %4351 = vmatpush3.bf16.msra.mxu0 %v2293_v8  ;;  %v2415_v22 = vpop.permute.xlu0 %2414  ;;  %4362 = vmatprep.mubr.bf16.mxu0 %v4627_v33 }
 0x296   : > { %4352 = vmatprep.subr.bf16.mxu0 %v2291_v24  ;;  %4382 = vmatprep.subr.bf16.mxu1 %v2415_v22 }
 0x297   : > { %4383 = vmatpush3.bf16.msra.mxu1 %v2415_v22  ;;  %v2283_v26 = vpop.permute.xlu1 %2282 }
 0x299   : > { %4353 = vmatpush3.bf16.msra.mxu0 %v2291_v24  ;;  %v2413_v36 = vpop.permute.xlu0 %2412 }
 0x29a   : > { %4354 = vmatprep.subr.bf16.mxu0 %v2289_v34  ;;  %4384 = vmatprep.subr.bf16.mxu1 %v2413_v36 }
 0x29b   : > { %4385 = vmatpush3.bf16.msra.mxu1 %v2413_v36 }
 0x29d   : > { %4355 = vmatpush3.bf16.msra.mxu0 %v2289_v34 }
 0x29e   : > { %4356 = vmatprep.subr.bf16.mxu0 %v2287_v35  ;;  %4387 = vmatmul.mubr.bf16.vlgmr.msra.gmra.mxu1 %v4626_v37 }
 0x29f   : > { %4390 = vmatprep.mubr.bf16.mxu1 %v4629_v39 }
 0x2a1   : > { %4357 = vmatpush3.bf16.msra.mxu0 %v2287_v35 }
 0x2a2   : > { %4358 = vmatprep.subr.bf16.mxu0 %v2285_v40 }
 0x2a4   : > { %v2550_v51 = vpop.permute.xlu1 %2549 }
 0x2a5   : > { %4359 = vmatpush3.bf16.msra.mxu0 %v2285_v40 }
 0x2a6   : > { %4360 = vmatprep.subr.bf16.mxu0 %v2283_v26  ;;  %4391 = vmatmul.mubr.bf16.gmra.mxu1 %v4630_v41  ;;  %v5334_v53 = vpop.permute.xlu0 %2554 }
 0x2a8   : > { %v2540_v38 = vpop.permute.xlu1 %2539 }
 0x2a9   : > { %4361 = vmatpush3.bf16.msra.mxu0 %v2283_v26 }
 0x2aa   : > { %v5336_v56 = vpop.permute.xlu0 %2544 }
 0x2ac   : > { %4363 = vmatmul.mubr.bf16.vlgmr.msra.gmra.mxu0 %v4628_v43  ;;  %v2530_v57 = vpop.permute.xlu1 %2529 }
 0x2ad   : > { %4366 = vmatprep.mubr.bf16.mxu0 %v4631_v11 }
 0x2ae   : > { %v2535_v62 = vpop.permute.xlu0 %2534 }
 0x2b0   : > { %v2520_v20 = vpop.permute.xlu1 %2519 }
 0x2b2   : > { %v2525_v36 = vpop.permute.xlu0 %2524 }
 0x2b4   : > { %4367 = vmatmul.mubr.bf16.gmra.mxu0 %v4632_v44 }
 0x2d9   : > { %v4340_v45 = vpop.f32.mrf.mxu1 }
 0x2db   : > { %v2218_v46 = vpop.f32.mrf.mxu1 }
 0x2dd   : > { %v4341_v47 = vpop.f32.mrf.mxu1 }
 0x2df   : > { %v2221_v48 = vpop.f32.mrf.mxu1 }
 0x2e1   : > { %v4344_v15 = vpop.f32.mrf.mxu1 }
 0x2e3   : > { %v2234_v49 = vpop.f32.mrf.mxu1 }
 0x2e5   : > { %v4345_v19 = vpop.f32.mrf.mxu1 }
 0x2e7   : > { %v2237_v50 = vpop.f32.mrf.mxu1 }
 0x34c   : > { %v4316_v10 = vpop.f32.mrf.mxu0 }
 0x34d   : > { %v2227_v58 = vadd.f32 %v4340_v45, %v4316_v10 }
 0x34e   : > { %v2121_v16 = vpop.f32.mrf.mxu0 }
 0x34f   : > { %v2219_v60 = vadd.f32 %v2218_v46, %v2121_v16 }
 0x350   : > { %v4317_v12 = vpop.f32.mrf.mxu0 }
 0x351   : > { %v2230_v63 = vadd.f32 %v4341_v47, %v4317_v12 }
 0x352   : > { %v2124_v13 = vpop.f32.mrf.mxu0 }
 0x353   : > { %v2222_v3 = vadd.f32 %v2221_v48, %v2124_v13 }
 0x354   : > { %v4320_v23 = vpop.f32.mrf.mxu0 }
 0x355   : > { %v2243_v24 = vadd.f32 %v4344_v15, %v4320_v23 }
 0x356   : > { %v2137_v52 = vpop.f32.mrf.mxu0 }
 0x357   : > { %v2235_v29 = vadd.f32 %v2234_v49, %v2137_v52 }
 0x358   : > { %v4321_v54 = vpop.f32.mrf.mxu0 }
 0x359   : > { %v2246_v37 = vadd.f32 %v4345_v19, %v4321_v54 }
 0x35a   : > { %v2140_v42 = vpop.f32.mrf.mxu0 }
 0x35b   : > { %v2238_v44 = vadd.f32 %v2237_v50, %v2140_v42 }
 0x35e   : > { %v4388_v27 = vpop.f32.mrf.mxu1 }
 0x360   : > { %v2470_v31 = vpop.f32.mrf.mxu1 }
 0x362   : > { %v4389_v55 = vpop.f32.mrf.mxu1 }
 0x364   : > { %v2473_v18 = vpop.f32.mrf.mxu1 }
 0x366   : > { %v4392_v2 = vpop.f32.mrf.mxu1 }
 0x368   : > { %v2486_v30 = vpop.f32.mrf.mxu1 }
 0x36a   : > { %v4393_v46 = vpop.f32.mrf.mxu1 }
 0x36c   : > { %v4364_v59 = vpop.f32.mrf.mxu0 }
 0x36d   : > { %v2373_v61 = vadd.f32 %v4364_v59, %v2227_v58 }
 0x36e   : > { %v2340_v21 = vpop.f32.mrf.mxu0 }
 0x36f   : > { %v2503_v0 = vadd.f32 %v4388_v27, %v2373_v61  ;;  %v2371_v17 = vadd.f32 %v2340_v21, %v2219_v60 }
 0x370   : > { %v4365_v1 = vpop.f32.mrf.mxu0 }
 0x371   : > { %v2559_v4 = vadd.f32 %v2530_v57, %v2503_v0  ;;  %v2501_v5 = vadd.f32 %v2470_v31, %v2371_v17  ;;  %v2374_v6 = vadd.f32 %v4365_v1, %v2230_v63  ;;  %v2489_v31 = vpop.f32.mrf.mxu1  ;;  %v4633_v1 = vld [vmem:[%s5464_s5 + $0x10] sm:$0xff]  }
 0x372   : > { %v2343_v7 = vpop.f32.mrf.mxu0  ;;  %4402 = vmatprep.mubr.msk.bf16.mxu0 %vm2672_vm2, %v4633_v1 }
 0x373   : > { %v2567_v8 = vmax.f32 %v2559_v4, 0.0  ;;  %v2557_v9 = vadd.f32 %v2520_v20, %v2501_v5  ;;  %v2504_v14 = vadd.f32 %v4389_v55, %v2374_v6  ;;  %v2372_v25 = vadd.f32 %v2343_v7, %v2222_v3  ;;  %v4636_v6 = vld [vmem:[%s5464_s5 + $0x8] sm:$0xff]   ;;  %v4639_v20 = vld [vmem:[%s5464_s5 + $0x30] sm:$0xff]   ;;  %v3399_v7 = vld [vmem:[%s5465_s6] sm:$0xff] }
 0x374   : > { %v4368_v32 = vpop.f32.mrf.mxu0 }
 0x375   : > { %v3826_v33 = vpack.c.bf16 %v2567_v8, %v2567_v8  ;;  %v2565_v34 = vmax.f32 %v2557_v9, 0.0  ;;  %v2560_v22 = vadd.f32 %v2535_v62, %v2504_v14  ;;  %v2502_v35 = vadd.f32 %v2473_v18, %v2372_v25  ;;  %v3400_v8 = vld [vmem:[%s5465_s6 + $0x8] sm:$0xff]  ;;  %v3401_v9 = vld [vmem:[%s5465_s6 + $0x10] sm:$0xff]  ;;  %v3402_v14 = vld [vmem:[%s5465_s6 + $0x18] sm:$0xff] }
 0x376   : > { %v2377_v39 = vadd.f32 %v4368_v32, %v2243_v24  ;;  %v2356_v40 = vpop.f32.mrf.mxu0 }
 0x377   : > { %2607 = vst.msk [vmem:[#allocation3 + $0x8] sm:$0xf] %vm617_vm1, %v3826_v33  ;;  %v3824_v41 = vpack.c.bf16 %v2565_v34, %v2565_v34  ;;  %v2568_v26 = vmax.f32 %v2560_v22, 0.0  ;;  %v2558_v43 = vadd.f32 %v2525_v36, %v2502_v35  ;;  %v2375_v11 = vadd.f32 %v2356_v40, %v2235_v29  ;;  %v4635_v22 = vld [vmem:[%s5464_s5 + $0x18] sm:$0xff]   ;;  %v4637_v36 = vld [vmem:[%s5464_s5 + $0x20] sm:$0xff]  }
 0x378   : > { %v2507_v45 = vadd.f32 %v4392_v2, %v2377_v39  ;;  %v4369_v47 = vpop.f32.mrf.mxu0  ;;  %v4634_v2 = vld [vmem:[%s5464_s5] sm:$0xff]  }
 0x379   : > { %2605 = vst.msk [vmem:[#allocation3] sm:$0xf] %vm617_vm1, %v3824_v41  ;;  %v3827_v10 = vpack.c.bf16 %v2568_v26, %v2568_v26  ;;  %v2566_v48 = vmax.f32 %v2558_v43, 0.0  ;;  %v2505_v15 = vadd.f32 %v2486_v30, %v2375_v11  ;;  %v2378_v16 = vadd.f32 %v4369_v47, %v2246_v37  ;;  %4414 = vmatprep.mubr.msk.bf16.mxu1 %vm2672_vm2, %v4634_v2 }
 0x37a   : > { %v2563_v49 = vadd.f32 %v2550_v51, %v2507_v45  ;;  %v2359_v12 = vpop.f32.mrf.mxu0 }
 0x37b   : > { %2608 = vst.msk [vmem:[#allocation3 + $0xc] sm:$0xf] %vm617_vm1, %v3827_v10  ;;  %v3825_v19 = vpack.c.bf16 %v2566_v48, %v2566_v48  ;;  %v2561_v13 = vadd.f32 %v2540_v38, %v2505_v15  ;;  %v2508_v23 = vadd.f32 %v4393_v46, %v2378_v16  ;;  %v2376_v27 = vadd.f32 %v2359_v12, %v2238_v44  ;;  %v4638_v44 = vld [vmem:[%s5464_s5 + $0x28] sm:$0xff]   ;;  %v4640_v46 = vld [vmem:[%s5464_s5 + $0x38] sm:$0xff]   ;;  %v4641_v10 = vld [vmem:[%s5464_s5 + $0x40] sm:$0xff]  }
 0x37c   : > { %v2571_v52 = vmax.f32 %v2563_v49, 0.0  ;;  %v4643_v48 = vld [vmem:[%s5464_s5 + $0x50] sm:$0xff]  }
 0x37d   : > { %2606 = vst.msk [vmem:[#allocation3 + $0x4] sm:$0xf] %vm617_vm1, %v3825_v19  ;;  %v2569_v50 = vmax.f32 %v2561_v13, 0.0  ;;  %v2564_v54 = vadd.f32 %v5334_v53, %v2508_v23  ;;  %v2506_v55 = vadd.f32 %v2489_v31, %v2376_v27  ;;  %v4642_v23 = vld [vmem:[%s5464_s5 + $0x48] sm:$0xff]   ;;  %v4644_v27 = vld [vmem:[%s5464_s5 + $0x58] sm:$0xff]   ;;  %v4645_v31 = vld [vmem:[%s5464_s5 + $0x60] sm:$0xff]  }
 0x37e   : > { %v3830_v42 = vpack.c.bf16 %v2571_v52, %v2571_v52  ;;  %v2619_v0 = vld [vmem:[#allocation3 + $0x8] sm:$0xf] }
 0x37f   : > { %v3828_v57 = vpack.c.bf16 %v2569_v50, %v2569_v50  ;;  %v2572_v58 = vmax.f32 %v2564_v54, 0.0  ;;  %v2562_v51 = vadd.f32 %v5336_v56, %v2506_v55  ;;  %v4647_v50 = vld [vmem:[%s5464_s5 + $0x70] sm:$0xff]  }
 0x380   : > { %2611 = vst.msk [vmem:[#allocation3 + $0x18] sm:$0xf] %vm617_vm1, %v3830_v42  ;;  %v2617_v4 = vld [vmem:[#allocation3] sm:$0xf] }
 0x381   : > { %2609 = vst.msk [vmem:[#allocation3 + $0x10] sm:$0xf] %vm617_vm1, %v3828_v57  ;;  %v3831_v38 = vpack.c.bf16 %v2572_v58, %v2572_v58  ;;  %v2570_v59 = vmax.f32 %v2562_v51, 0.0  ;;  %v4646_v51 = vld [vmem:[%s5464_s5 + $0x68] sm:$0xff]  }
 0x382   : > { %v2620_v21 = vld [vmem:[#allocation3 + $0xc] sm:$0xf] }
 0x383   : > { %2612 = vst.msk [vmem:[#allocation3 + $0x1c] sm:$0xf] %vm617_vm1, %v3831_v38  ;;  %v3829_v18 = vpack.c.bf16 %v2570_v59, %v2570_v59  ;;  %v3735_v3 = vcombine.low %v2619_v0, %v2620_v21  ;;  %v4648_v59 = vld [vmem:[%s5464_s5 + $0x78] sm:$0xff]  }
 0x384   : > { %v2618_v56 = vld [vmem:[#allocation3 + $0x4] sm:$0xf] }
 0x385   : > { %2610 = vst.msk [vmem:[#allocation3 + $0x14] sm:$0xf] %vm617_vm1, %v3829_v18  ;;  %v3734_v5 = vcombine.low %v2617_v4, %v2618_v56  ;;  %v4649_v18 = vld [vmem:[%s5464_s5 + $0x80] sm:$0xff]  }
 0x387   : > { %v2623_v60 = vld [vmem:[#allocation3 + $0x18] sm:$0xf] }
 0x388   : > { %v2621_v62 = vld [vmem:[#allocation3 + $0x10] sm:$0xf] }
 0x38a   : > { %v2624_v61 = vld [vmem:[#allocation3 + $0x1c] sm:$0xf] }
 0x38b   : > { %v3737_v53 = vcombine.low %v2623_v60, %v2624_v61 }
 0x38c   : > { %v2622_v63 = vld [vmem:[#allocation3 + $0x14] sm:$0xf] }
 0x38d   : > { %v3736_v17 = vcombine.low %v2621_v62, %v2622_v63  ;;  %2666 = vrot.lane.b32.xlu1 %v3737_v53, %s4659_s11  ;;  %4406 = vmatprep.subr.bf16.mxu1 %v3737_v53 }
 0x38e   : > { %4407 = vmatpush3.bf16.msra.mxu1 %v3737_v53 }
 0x38f   : > { %2664 = vrot.lane.b32.xlu0 %v3736_v17, %s4659_s11  ;;  %4408 = vmatprep.subr.bf16.mxu1 %v3736_v17 }
 0x391   : > { %2662 = vrot.lane.b32.xlu1 %v3735_v3, %s4659_s11 }
 0x392   : > { %4409 = vmatpush3.bf16.msra.mxu1 %v3736_v17 }
 0x393   : > { %4410 = vmatprep.subr.bf16.mxu1 %v3735_v3  ;;  %2660 = vrot.lane.b32.xlu0 %v3734_v5, %s4659_s11 }
 0x395   : > { %2818 = vrot.lane.b32.xlu1 %v3737_v53, %s4663_s30 }
 0x396   : > { %4411 = vmatpush3.bf16.msra.mxu1 %v3735_v3 }
 0x397   : > { %2816 = vrot.lane.b32.xlu0 %v3736_v17, %s4663_s30  ;;  %4412 = vmatprep.subr.bf16.mxu1 %v3734_v5 }
 0x399   : > { %2814 = vrot.lane.b32.xlu1 %v3735_v3, %s4663_s30 }
 0x39a   : > { %4413 = vmatpush3.bf16.msra.mxu1 %v3734_v5 }
 0x39b   : > { %2812 = vrot.lane.b32.xlu0 %v3734_v5, %s4663_s30 }
 0x39d   : > { %2904 = vrot.lane.b32.xlu1 %v3737_v53, %s4660_s12  ;;  %4415 = vmatmul.mubr.msk.bf16.vlgmr.msra.gmra.mxu1 %vm2672_vm2, %v4636_v6 }
 0x39e   : > { %4438 = vmatprep.mubr.msk.bf16.mxu1 %vm2672_vm2, %v4639_v20 }
 0x39f   : > { %2990 = vrot.lane.b32.xlu0 %v3737_v53, %s4662_s21 }
 0x3a1   : > { %2902 = vrot.lane.b32.xlu1 %v3736_v17, %s4660_s12 }
 0x3a3   : > { %2988 = vrot.lane.b32.xlu0 %v3736_v17, %s4662_s21 }
 0x3a5   : > { %2900 = vrot.lane.b32.xlu1 %v3735_v3, %s4660_s12 }
 0x3a7   : > { %2986 = vrot.lane.b32.xlu0 %v3735_v3, %s4662_s21 }
 0x3a9   : > { %2898 = vrot.lane.b32.xlu1 %v3734_v5, %s4660_s12 }
 0x3ab   : > { %2984 = vrot.lane.b32.xlu0 %v3734_v5, %s4662_s21 }
 0x3ad   : > { %3076 = vrot.lane.b32.xlu1 %v3737_v53, %s4664_s13 }
 0x3af   : > { %3162 = vrot.lane.b32.xlu0 %v3737_v53, %s4665_s14 }
 0x3b1   : > { %3074 = vrot.lane.b32.xlu1 %v3736_v17, %s4664_s13 }
 0x3b3   : > { %3160 = vrot.lane.b32.xlu0 %v3736_v17, %s4665_s14 }
 0x3b5   : > { %3072 = vrot.lane.b32.xlu1 %v3735_v3, %s4664_s13 }
 0x3b7   : > { %3158 = vrot.lane.b32.xlu0 %v3735_v3, %s4665_s14 }
 0x3b9   : > { %3070 = vrot.lane.b32.xlu1 %v3734_v5, %s4664_s13 }
 0x3bb   : > { %3156 = vrot.lane.b32.xlu0 %v3734_v5, %s4665_s14  ;;  %s278_s14 = scalar_lea.vmem %s5466_s7, %s3807_s10 }
 0x3bd   : > { %3248 = vrot.lane.b32.xlu1 %v3737_v53, %s4666_s15 }
 0x3bf   : > { %3334 = vrot.lane.b32.xlu0 %v3737_v53, %s4667_s16  ;;  %v4650_v53 = vld [vmem:[%s5464_s5 + $0x88] sm:$0xff]  }
 0x3c1   : > { %3246 = vrot.lane.b32.xlu1 %v3736_v17, %s4666_s15 }
 0x3c3   : > { %3332 = vrot.lane.b32.xlu0 %v3736_v17, %s4667_s16 }
 0x3c5   : > { %3244 = vrot.lane.b32.xlu1 %v3735_v3, %s4666_s15 }
 0x3c7   : > { %3330 = vrot.lane.b32.xlu0 %v3735_v3, %s4667_s16 }
 0x3c9   : > { %3242 = vrot.lane.b32.xlu1 %v3734_v5, %s4666_s15 }
 0x3cb   : > { %3328 = vrot.lane.b32.xlu0 %v3734_v5, %s4667_s16 }
 0x3cd   : > { %3405 = vperm.xlu1 %4520, %v3399_v7  }
 0x3cf   : > { %3410 = vperm.xlu0 %4519, %v3400_v8  }
 0x3d1   : > { %3415 = vperm.xlu1 %4520, %v3401_v9  }
 0x3d3   : > { %3420 = vperm.xlu0 %4519, %v3402_v14  }
 0x3ff   : > { %v2667_v25 = vpop.permute.xlu1 %2666 }
 0x400   : > { %4394 = vmatprep.subr.bf16.mxu0 %v2667_v25 }
 0x401   : > { %4395 = vmatpush3.bf16.msra.mxu0 %v2667_v25  ;;  %v2665_v24 = vpop.permute.xlu0 %2664 }
 0x402   : > { %4396 = vmatprep.subr.bf16.mxu0 %v2665_v24 }
 0x403   : > { %v2663_v29 = vpop.permute.xlu1 %2662 }
 0x405   : > { %4397 = vmatpush3.bf16.msra.mxu0 %v2665_v24  ;;  %v2661_v30 = vpop.permute.xlu0 %2660 }
 0x406   : > { %4398 = vmatprep.subr.bf16.mxu0 %v2663_v29 }
 0x407   : > { %v2819_v32 = vpop.permute.xlu1 %2818 }
 0x409   : > { %4399 = vmatpush3.bf16.msra.mxu0 %v2663_v29  ;;  %v2817_v33 = vpop.permute.xlu0 %2816 }
 0x40a   : > { %4400 = vmatprep.subr.bf16.mxu0 %v2661_v30 }
 0x40b   : > { %v2815_v34 = vpop.permute.xlu1 %2814 }
 0x40d   : > { %4401 = vmatpush3.bf16.msra.mxu0 %v2661_v30  ;;  %v2813_v35 = vpop.permute.xlu0 %2812 }
 0x40e   : > { %4418 = vmatprep.subr.bf16.mxu0 %v2819_v32 }
 0x40f   : > { %v2905_v37 = vpop.permute.xlu1 %2904 }
 0x410   : > { %4403 = vmatmul.mubr.msk.bf16.vlgmr.msra.gmra.mxu0 %vm2672_vm2, %v4635_v22  ;;  %4430 = vmatprep.subr.bf16.mxu1 %v2905_v37 }
 0x411   : > { %4419 = vmatpush3.bf16.msra.mxu0 %v2819_v32  ;;  %v2991_v39 = vpop.permute.xlu0 %2990  ;;  %4431 = vmatpush3.bf16.msra.mxu1 %v2905_v37 }
 0x412   : > { %4420 = vmatprep.subr.bf16.mxu0 %v2817_v33  ;;  %4426 = vmatprep.mubr.msk.bf16.mxu0 %vm2672_vm2, %v4637_v36 }
 0x413   : > { %v2903_v40 = vpop.permute.xlu1 %2902 }
 0x414   : > { %4432 = vmatprep.subr.bf16.mxu1 %v2903_v40 }
 0x415   : > { %4421 = vmatpush3.bf16.msra.mxu0 %v2817_v33  ;;  %v2989_v41 = vpop.permute.xlu0 %2988  ;;  %4433 = vmatpush3.bf16.msra.mxu1 %v2903_v40 }
 0x416   : > { %4422 = vmatprep.subr.bf16.mxu0 %v2815_v34 }
 0x417   : > { %v2901_v26 = vpop.permute.xlu1 %2900 }
 0x418   : > { %4434 = vmatprep.subr.bf16.mxu1 %v2901_v26 }
 0x419   : > { %4423 = vmatpush3.bf16.msra.mxu0 %v2815_v34  ;;  %v2987_v43 = vpop.permute.xlu0 %2986  ;;  %4435 = vmatpush3.bf16.msra.mxu1 %v2901_v26 }
 0x41a   : > { %4424 = vmatprep.subr.bf16.mxu0 %v2813_v35 }
 0x41b   : > { %v2899_v11 = vpop.permute.xlu1 %2898 }
 0x41c   : > { %4436 = vmatprep.subr.bf16.mxu1 %v2899_v11 }
 0x41d   : > { %4425 = vmatpush3.bf16.msra.mxu0 %v2813_v35  ;;  %v2985_v45 = vpop.permute.xlu0 %2984  ;;  %4437 = vmatpush3.bf16.msra.mxu1 %v2899_v11 }
 0x41e   : > { %4442 = vmatprep.subr.bf16.mxu0 %v2991_v39 }
 0x41f   : > { %v3077_v47 = vpop.permute.xlu1 %3076 }
 0x420   : > { %4427 = vmatmul.mubr.msk.bf16.vlgmr.msra.gmra.mxu0 %vm2672_vm2, %v4638_v44  ;;  %4454 = vmatprep.subr.bf16.mxu1 %v3077_v47 }
 0x421   : > { %4443 = vmatpush3.bf16.msra.mxu0 %v2991_v39  ;;  %v3163_v15 = vpop.permute.xlu0 %3162  ;;  %4439 = vmatmul.mubr.msk.bf16.vlgmr.msra.gmra.mxu1 %vm2672_vm2, %v4640_v46 }
 0x422   : > { %4455 = vmatpush3.bf16.msra.mxu1 %v3077_v47  ;;  %4444 = vmatprep.subr.bf16.mxu0 %v2989_v41 }
 0x423   : > { %v3075_v16 = vpop.permute.xlu1 %3074  ;;  %4450 = vmatprep.mubr.msk.bf16.mxu0 %vm2672_vm2, %v4641_v10  ;;  %4462 = vmatprep.mubr.msk.bf16.mxu1 %vm2672_vm2, %v4643_v48 }
 0x424   : > { %4456 = vmatprep.subr.bf16.mxu1 %v3075_v16 }
 0x425   : > { %4445 = vmatpush3.bf16.msra.mxu0 %v2989_v41  ;;  %v3161_v49 = vpop.permute.xlu0 %3160 }
 0x426   : > { %4457 = vmatpush3.bf16.msra.mxu1 %v3075_v16  ;;  %4446 = vmatprep.subr.bf16.mxu0 %v2987_v43 }
 0x427   : > { %v3073_v12 = vpop.permute.xlu1 %3072 }
 0x428   : > { %4458 = vmatprep.subr.bf16.mxu1 %v3073_v12 }
 0x429   : > { %4447 = vmatpush3.bf16.msra.mxu0 %v2987_v43  ;;  %v3159_v19 = vpop.permute.xlu0 %3158 }
 0x42a   : > { %4459 = vmatpush3.bf16.msra.mxu1 %v3073_v12  ;;  %4448 = vmatprep.subr.bf16.mxu0 %v2985_v45 }
 0x42b   : > { %v3071_v13 = vpop.permute.xlu1 %3070 }
 0x42c   : > { %4460 = vmatprep.subr.bf16.mxu1 %v3071_v13 }
 0x42d   : > { %4449 = vmatpush3.bf16.msra.mxu0 %v2985_v45  ;;  %v3157_v54 = vpop.permute.xlu0 %3156 }
 0x42e   : > { %4461 = vmatpush3.bf16.msra.mxu1 %v3071_v13  ;;  %4466 = vmatprep.subr.bf16.mxu0 %v3163_v15 }
 0x42f   : > { %v3249_v52 = vpop.permute.xlu1 %3248 }
 0x430   : > { %4451 = vmatmul.mubr.msk.bf16.vlgmr.msra.gmra.mxu0 %vm2672_vm2, %v4642_v23  ;;  %4478 = vmatprep.subr.bf16.mxu1 %v3249_v52 }
 0x431   : > { %4467 = vmatpush3.bf16.msra.mxu0 %v3163_v15  ;;  %4463 = vmatmul.mubr.msk.bf16.vlgmr.msra.gmra.mxu1 %vm2672_vm2, %v4644_v27  ;;  %v3335_v42 = vpop.permute.xlu0 %3334 }
 0x432   : > { %4479 = vmatpush3.bf16.msra.mxu1 %v3249_v52  ;;  %4468 = vmatprep.subr.bf16.mxu0 %v3161_v49 }
 0x433   : > { %v3247_v55 = vpop.permute.xlu1 %3246  ;;  %4474 = vmatprep.mubr.msk.bf16.mxu0 %vm2672_vm2, %v4645_v31  ;;  %4486 = vmatprep.mubr.msk.bf16.mxu1 %vm2672_vm2, %v4647_v50 }
 0x434   : > { %4480 = vmatprep.subr.bf16.mxu1 %v3247_v55 }
 0x435   : > { %4469 = vmatpush3.bf16.msra.mxu0 %v3161_v49  ;;  %v3333_v38 = vpop.permute.xlu0 %3332 }
 0x436   : > { %4481 = vmatpush3.bf16.msra.mxu1 %v3247_v55  ;;  %4470 = vmatprep.subr.bf16.mxu0 %v3159_v19 }
 0x437   : > { %v3245_v57 = vpop.permute.xlu1 %3244 }
 0x438   : > { %4482 = vmatprep.subr.bf16.mxu1 %v3245_v57 }
 0x439   : > { %4471 = vmatpush3.bf16.msra.mxu0 %v3159_v19  ;;  %v3331_v60 = vpop.permute.xlu0 %3330 }
 0x43a   : > { %4483 = vmatpush3.bf16.msra.mxu1 %v3245_v57  ;;  %4472 = vmatprep.subr.bf16.mxu0 %v3157_v54 }
 0x43b   : > { %v3243_v58 = vpop.permute.xlu1 %3242 }
 0x43c   : > { %4484 = vmatprep.subr.bf16.mxu1 %v3243_v58 }
 0x43d   : > { %4473 = vmatpush3.bf16.msra.mxu0 %v3157_v54  ;;  %v3329_v61 = vpop.permute.xlu0 %3328 }
 0x43e   : > { %4485 = vmatpush3.bf16.msra.mxu1 %v3243_v58  ;;  %4490 = vmatprep.subr.bf16.mxu0 %v3335_v42 }
 0x440   : > { %4475 = vmatmul.mubr.msk.bf16.vlgmr.msra.gmra.mxu0 %vm2672_vm2, %v4646_v51 }
 0x441   : > { %4491 = vmatpush3.bf16.msra.mxu0 %v3335_v42  ;;  %4487 = vmatmul.mubr.msk.bf16.vlgmr.msra.gmra.mxu1 %vm2672_vm2, %v4648_v59 }
 0x442   : > { %4492 = vmatprep.subr.bf16.mxu0 %v3333_v38  ;;  %4498 = vmatprep.mubr.msk.bf16.mxu0 %vm2672_vm2, %v4649_v18 }
 0x445   : > { %4493 = vmatpush3.bf16.msra.mxu0 %v3333_v38 }
 0x446   : > { %4494 = vmatprep.subr.bf16.mxu0 %v3331_v60 }
 0x448   : > { %v3406_v19 = vpop.permute.xlu1 %3405 }
 0x449   : > { %4495 = vmatpush3.bf16.msra.mxu0 %v3331_v60 }
 0x44a   : > { %4496 = vmatprep.subr.bf16.mxu0 %v3329_v61  ;;  %v3411_v58 = vpop.permute.xlu0 %3410 }
 0x44c   : > { %v3416_v38 = vpop.permute.xlu1 %3415 }
 0x44d   : > { %4497 = vmatpush3.bf16.msra.mxu0 %v3329_v61 }
 0x450   : > { %4499 = vmatmul.mubr.msk.bf16.vlgmr.msra.gmra.mxu0 %vm2672_vm2, %v4650_v53 }
 0x45d   : > { %v4416_v62 = vpop.f32.mrf.mxu1 }
 0x45f   : > { %v2782_v0 = vpop.f32.mrf.mxu1 }
 0x461   : > { %v4417_v56 = vpop.f32.mrf.mxu1 }
 0x463   : > { %v2785_v3 = vpop.f32.mrf.mxu1 }
 0x4d0   : > { %v4404_v21 = vpop.f32.mrf.mxu0 }
 0x4d1   : > { %v2791_v30 = vadd.f32 %v4416_v62, %v4404_v21 }
 0x4d2   : > { %v2713_v63 = vpop.f32.mrf.mxu0 }
 0x4d3   : > { %v2783_v32 = vadd.f32 %v2782_v0, %v2713_v63 }
 0x4d4   : > { %v4405_v17 = vpop.f32.mrf.mxu0 }
 0x4d5   : > { %v2794_v35 = vadd.f32 %v4417_v56, %v4405_v17 }
 0x4d6   : > { %v2716_v1 = vpop.f32.mrf.mxu0 }
 0x4d7   : > { %v2786_v39 = vadd.f32 %v2785_v3, %v2716_v1  ;;  %v3421_v3 = vpop.permute.xlu0 %3420 }
 0x4e0   : > { %v4428_v2 = vpop.f32.mrf.mxu0 }
 0x4e1   : > { %v4440_v5 = vpop.f32.mrf.mxu1  ;;  %v2881_v33 = vadd.f32 %v4428_v2, %v2791_v30 }
 0x4e2   : > { %v2864_v4 = vpop.f32.mrf.mxu0 }
 0x4e3   : > { %v2950_v20 = vpop.f32.mrf.mxu1  ;;  %v2879_v36 = vadd.f32 %v2864_v4, %v2783_v32  ;;  %v2967_v40 = vadd.f32 %v4440_v5, %v2881_v33 }
 0x4e4   : > { %v4429_v6 = vpop.f32.mrf.mxu0 }
 0x4e5   : > { %v4441_v8 = vpop.f32.mrf.mxu1  ;;  %v2882_v41 = vadd.f32 %v4429_v6, %v2794_v35  ;;  %v2965_v43 = vadd.f32 %v2950_v20, %v2879_v36 }
 0x4e6   : > { %v2867_v7 = vpop.f32.mrf.mxu0 }
 0x4e7   : > { %v2953_v14 = vpop.f32.mrf.mxu1  ;;  %v2880_v11 = vadd.f32 %v2867_v7, %v2786_v39  ;;  %v2968_v47 = vadd.f32 %v4441_v8, %v2882_v41 }
 0x4e9   : > { %v2966_v48 = vadd.f32 %v2953_v14, %v2880_v11 }
 0x4f0   : > { %v4452_v9 = vpop.f32.mrf.mxu0 }
 0x4f1   : > { %v4464_v24 = vpop.f32.mrf.mxu1  ;;  %v3053_v44 = vadd.f32 %v4452_v9, %v2967_v40 }
 0x4f2   : > { %v3036_v25 = vpop.f32.mrf.mxu0 }
 0x4f3   : > { %v3122_v29 = vpop.f32.mrf.mxu1  ;;  %v3051_v10 = vadd.f32 %v3036_v25, %v2965_v43  ;;  %v3139_v15 = vadd.f32 %v4464_v24, %v3053_v44 }
 0x4f4   : > { %v4453_v28 = vpop.f32.mrf.mxu0 }
 0x4f5   : > { %v4465_v22 = vpop.f32.mrf.mxu1  ;;  %v3054_v16 = vadd.f32 %v4453_v28, %v2968_v47  ;;  %v3137_v13 = vadd.f32 %v3122_v29, %v3051_v10 }
 0x4f6   : > { %v3039_v34 = vpop.f32.mrf.mxu0 }
 0x4f7   : > { %v3125_v26 = vpop.f32.mrf.mxu1  ;;  %v3052_v23 = vadd.f32 %v3039_v34, %v2966_v48  ;;  %v3140_v52 = vadd.f32 %v4465_v22, %v3054_v16 }
 0x4f9   : > { %v3138_v55 = vadd.f32 %v3125_v26, %v3052_v23 }
 0x500   : > { %v4476_v37 = vpop.f32.mrf.mxu0 }
 0x501   : > { %v4488_v46 = vpop.f32.mrf.mxu1  ;;  %v3225_v27 = vadd.f32 %v4476_v37, %v3139_v15 }
 0x502   : > { %v3208_v45 = vpop.f32.mrf.mxu0 }
 0x503   : > { %v3294_v12 = vpop.f32.mrf.mxu1  ;;  %v3223_v31 = vadd.f32 %v3208_v45, %v3137_v13  ;;  %v3311_v42 = vadd.f32 %v4488_v46, %v3225_v27 }
 0x504   : > { %v4477_v49 = vpop.f32.mrf.mxu0 }
 0x505   : > { %v4489_v54 = vpop.f32.mrf.mxu1  ;;  %v3226_v57 = vadd.f32 %v4477_v49, %v3140_v52  ;;  %v3309_v59 = vadd.f32 %v3294_v12, %v3223_v31 }
 0x506   : > { %v3211_v50 = vpop.f32.mrf.mxu0 }
 0x507   : > { %v3224_v18 = vadd.f32 %v3211_v50, %v3138_v55  ;;  %v3297_v61 = vpop.f32.mrf.mxu1  ;;  %v3312_v21 = vadd.f32 %v4489_v54, %v3226_v57 }
 0x509   : > { %v3310_v17 = vadd.f32 %v3297_v61, %v3224_v18 }
 0x510   : > { %v4500_v51 = vpop.f32.mrf.mxu0 }
 0x511   : > { %v3397_v60 = vadd.f32 %v4500_v51, %v3311_v42 }
 0x512   : > { %v3380_v53 = vpop.f32.mrf.mxu0 }
 0x513   : > { %v3425_v62 = vadd.f32 %v3416_v38, %v3397_v60  ;;  %v3395_v63 = vadd.f32 %v3380_v53, %v3309_v59 }
 0x514   : > { %v4501_v0 = vpop.f32.mrf.mxu0 }
 0x515   : > { %v3429_v56 = vmax.f32 %v3425_v62, 0.0  ;;  %v3423_v1 = vadd.f32 %v3406_v19, %v3395_v63  ;;  %v3398_v2 = vadd.f32 %v4501_v0, %v3312_v21 }
 0x516   : > { %v3383_v4 = vpop.f32.mrf.mxu0 }
 0x517   : > { %v3834_v5 = vpack.c.bf16 %v3429_v56, %v3429_v56  ;;  %v3427_v6 = vmax.f32 %v3423_v1, 0.0  ;;  %v3426_v20 = vadd.f32 %v3421_v3, %v3398_v2  ;;  %v3396_v7 = vadd.f32 %v3383_v4, %v3310_v17 }
 0x519   : > { %3450 = vst.msk [vmem:[#allocation4 + $0x8] sm:$0xf] %vm3447_vm4, %v3834_v5  ;;  %v3832_v8 = vpack.c.bf16 %v3427_v6, %v3427_v6  ;;  %v3430_v9 = vmax.f32 %v3426_v20, 0.0  ;;  %v3424_v14 = vadd.f32 %v3411_v58, %v3396_v7 }
 0x51b   : > { %3448 = vst.msk [vmem:[#allocation4] sm:$0xf] %vm3447_vm4, %v3832_v8  ;;  %v3835_v25 = vpack.c.bf16 %v3430_v9, %v3430_v9  ;;  %v3428_v24 = vmax.f32 %v3424_v14, 0.0 }
 0x51d   : > { %3451 = vst.msk [vmem:[#allocation4 + $0xc] sm:$0xf] %vm3447_vm4, %v3835_v25  ;;  %v3833_v28 = vpack.c.bf16 %v3428_v24, %v3428_v24 }
 0x51f   : > { %3449 = vst.msk [vmem:[#allocation4 + $0x4] sm:$0xf] %vm3447_vm4, %v3833_v28 }
 0x520   : > { %v3454_v29 = vld [vmem:[#allocation4 + $0x8] sm:$0xf] }
 0x521   : > { %3458 = vst [vmem:[%s278_s14 + $0x8] sm:$0xf] %v3454_v29 }
 0x522   : > { %v3452_v30 = vld [vmem:[#allocation4] sm:$0xf] }
 0x523   : > { %3456 = vst [vmem:[%s278_s14] sm:$0xf] %v3452_v30 }
 0x524   : > { %v3455_v32 = vld [vmem:[#allocation4 + $0xc] sm:$0xf] }
 0x525   : > { %3459 = vst [vmem:[%s278_s14 + $0xc] sm:$0xf] %v3455_v32 }
 0x526   : > { %v3453_v33 = vld [vmem:[#allocation4 + $0x4] sm:$0xf] }
 0x527   : > { %3457 = vst [vmem:[%s278_s14 + $0x4] sm:$0xf] %v3453_v33 }
 0x528 PF: > { %s17_s24 = sadd.s32 1, %s4657_s24  }
 0x529   : > { %p14_p4 = scmp.ge.s32.totalorder %s17_s24, 4  }
 0x52b   :  { %16 = sbr.rel (!%p14_p4) target bundleno = 1 (0x1), region = 100 }

// kernel: net_forward.3
= control target key start
LH: loop header
LB: loop body
LE: loop exit
PB: predicated region body
PF: predicated region fallthrough
CT: control target
= control target key end

     0   :  { %v540_v36 = vlaneseq  ;;  %v5556_v37 = vmov 1966171168   ;;  %s7298_s0 = inlined_call_operand.vmem [shape: bf16[2,4096], index: 0, kind: input, shape index: {}]   ;;  %s7299_s1 = inlined_call_operand.vmem [shape: bf16[4096,256], index: 1, kind: input, shape index: {}]   ;;  %s7300_s2 = inlined_call_operand.vmem [shape: f32[1,256], index: 2, kind: input, shape index: {}]   ;;  %s7301_s3 = inlined_call_operand.vmem [shape: bf16[256,6], index: 3, kind: input, shape index: {}]   ;;  %s7302_s4 = inlined_call_operand.vmem [shape: f32[1,6], index: 4, kind: input, shape index: {}]   ;;  %s7303_s5 = inlined_call_operand.hbm [shape: f32[2,6], index: 5, kind: output, shape index: {}]  }
   0x1   :  { %v4746_v0 = vld [vmem:[%s7299_s1 + $0x74] ss:$8 sps:$4 sm:$0xff]   ;;  %v4750_v2 = vld [vmem:[%s7299_s1 + $0x70] ss:$8 sps:$4 sm:$0xff]   ;;  %v4752_v4 = vld [vmem:[%s7299_s1 + $0x64] ss:$8 sps:$4 sm:$0xff]   ;;  %v556_v38 = vunpack.c.l.s4 %v5556_v37 }
   0x2   :  { %v4748_v1 = vld [vmem:[%s7299_s1 + $0x174] ss:$8 sps:$4 sm:$0xff]   ;;  %3342 = vmatprep.subr.bf16.mxu0 %v4746_v0  ;;  %v4751_v3 = vld [vmem:[%s7299_s1 + $0x170] ss:$8 sps:$4 sm:$0xff]   ;;  %v4754_v5 = vld [vmem:[%s7299_s1 + $0x164] ss:$8 sps:$4 sm:$0xff]  }
   0x3   :  { %3383 = vmatprep.subr.bf16.mxu1 %v4748_v1  ;;  %3343 = vmatpush1.bf16.msra.mxu0 %v4750_v2  ;;  %v4756_v6 = vld [vmem:[%s7299_s1 + $0x60] ss:$8 sps:$4 sm:$0xff]   ;;  %v4758_v8 = vld [vmem:[%s7299_s1 + $0x54] ss:$8 sps:$4 sm:$0xff]   ;;  %v4762_v10 = vld [vmem:[%s7299_s1 + $0x50] ss:$8 sps:$4 sm:$0xff]   ;;  %v557_v43 = vunpack.c.0.s8 %v556_v38 }
   0x4   :  { %3384 = vmatpush1.bf16.msra.mxu1 %v4751_v3  ;;  %3344 = vmatprep.subr.bf16.mxu0 %v4752_v4  ;;  %v4757_v7 = vld [vmem:[%s7299_s1 + $0x160] ss:$8 sps:$4 sm:$0xff]   ;;  %v4760_v9 = vld [vmem:[%s7299_s1 + $0x154] ss:$8 sps:$4 sm:$0xff]   ;;  %v4763_v11 = vld [vmem:[%s7299_s1 + $0x150] ss:$8 sps:$4 sm:$0xff]  }
   0x5   :  { %3385 = vmatprep.subr.bf16.mxu1 %v4754_v5  ;;  %v4764_v12 = vld [vmem:[%s7299_s1 + $0x44] ss:$8 sps:$4 sm:$0xff]   ;;  %v4768_v14 = vld [vmem:[%s7299_s1 + $0x40] ss:$8 sps:$4 sm:$0xff]   ;;  %v4770_v16 = vld [vmem:[%s7299_s1 + $0x34] ss:$8 sps:$4 sm:$0xff]  }
   0x6   :  { %v4766_v13 = vld [vmem:[%s7299_s1 + $0x144] ss:$8 sps:$4 sm:$0xff]   ;;  %v4769_v15 = vld [vmem:[%s7299_s1 + $0x140] ss:$8 sps:$4 sm:$0xff]   ;;  %v4772_v17 = vld [vmem:[%s7299_s1 + $0x134] ss:$8 sps:$4 sm:$0xff]  }
   0x7   :  { %3345 = vmatpush1.bf16.msra.mxu0 %v4756_v6  ;;  %v4774_v18 = vld [vmem:[%s7299_s1 + $0x30] ss:$8 sps:$4 sm:$0xff]   ;;  %v4776_v20 = vld [vmem:[%s7299_s1 + $0x24] ss:$8 sps:$4 sm:$0xff]   ;;  %v4780_v22 = vld [vmem:[%s7299_s1 + $0x20] ss:$8 sps:$4 sm:$0xff]  }
   0x8   :  { %3386 = vmatpush1.bf16.msra.mxu1 %v4757_v7  ;;  %3346 = vmatprep.subr.bf16.mxu0 %v4758_v8  ;;  %v4775_v19 = vld [vmem:[%s7299_s1 + $0x130] ss:$8 sps:$4 sm:$0xff]   ;;  %v4778_v21 = vld [vmem:[%s7299_s1 + $0x124] ss:$8 sps:$4 sm:$0xff]   ;;  %v4781_v23 = vld [vmem:[%s7299_s1 + $0x120] ss:$8 sps:$4 sm:$0xff]  }
   0x9   :  { %3387 = vmatprep.subr.bf16.mxu1 %v4760_v9  ;;  %v4782_v24 = vld [vmem:[%s7299_s1 + $0x14] ss:$8 sps:$4 sm:$0xff]   ;;  %v4786_v26 = vld [vmem:[%s7299_s1 + $0x10] ss:$8 sps:$4 sm:$0xff]   ;;  %v4788_v28 = vld [vmem:[%s7299_s1 + $0x4] ss:$8 sps:$4 sm:$0xff]  }
   0xa   :  { %v4784_v25 = vld [vmem:[%s7299_s1 + $0x114] ss:$8 sps:$4 sm:$0xff]   ;;  %v4787_v27 = vld [vmem:[%s7299_s1 + $0x110] ss:$8 sps:$4 sm:$0xff]   ;;  %v4790_v29 = vld [vmem:[%s7299_s1 + $0x104] ss:$8 sps:$4 sm:$0xff]  }
   0xb   :  { %3347 = vmatpush1.bf16.msra.mxu0 %v4762_v10  ;;  %v4792_v30 = vld [vmem:[%s7299_s1] ss:$8 sps:$4 sm:$0xff]   ;;  %v4794_v32 = vld [vmem:[%s7299_s1 + $0xf4] ss:$8 sps:$4 sm:$0xff]   ;;  %v4798_v34 = vld [vmem:[%s7299_s1 + $0xf0] ss:$8 sps:$4 sm:$0xff]  }
   0xc   :  { %3388 = vmatpush1.bf16.msra.mxu1 %v4763_v11  ;;  %3348 = vmatprep.subr.bf16.mxu0 %v4764_v12  ;;  %v4793_v31 = vld [vmem:[%s7299_s1 + $0x100] ss:$8 sps:$4 sm:$0xff]   ;;  %v4796_v33 = vld [vmem:[%s7299_s1 + $0x1f4] ss:$8 sps:$4 sm:$0xff]   ;;  %v4799_v35 = vld [vmem:[%s7299_s1 + $0x1f0] ss:$8 sps:$4 sm:$0xff]  }
   0xd   :  { %3389 = vmatprep.subr.bf16.mxu1 %v4766_v13  ;;  %v4800_v39 = vld [vmem:[%s7299_s1 + $0xe4] ss:$8 sps:$4 sm:$0xff]   ;;  %v4804_v41 = vld [vmem:[%s7299_s1 + $0xe0] ss:$8 sps:$4 sm:$0xff]   ;;  %v5705_v42 = vshrl.u32 %v540_v36, 7 }
   0xe   :  { %v4802_v40 = vld [vmem:[%s7299_s1 + $0x1e4] ss:$8 sps:$4 sm:$0xff]   ;;  %v4805_v44 = vld [vmem:[%s7299_s1 + $0x1e0] ss:$8 sps:$4 sm:$0xff]   ;;  %v4806_v45 = vld [vmem:[%s7299_s1 + $0xd4] ss:$8 sps:$4 sm:$0xff]  }
   0xf   :  { %3349 = vmatpush1.bf16.msra.mxu0 %v4768_v14  ;;  %v4808_v46 = vld [vmem:[%s7299_s1 + $0x1d4] ss:$8 sps:$4 sm:$0xff]   ;;  %v4810_v47 = vld [vmem:[%s7299_s1 + $0xd0] ss:$8 sps:$4 sm:$0xff]   ;;  %v5723_v49 = vsub.s32 %v557_v43, %v5705_v42  ;;  %v4812_v50 = vld [vmem:[%s7299_s1 + $0xc4] ss:$8 sps:$4 sm:$0xff]  }
  0x10   :  { %3390 = vmatpush1.bf16.msra.mxu1 %v4769_v15  ;;  %3350 = vmatprep.subr.bf16.mxu0 %v4770_v16  ;;  %v4811_v48 = vld [vmem:[%s7299_s1 + $0x1d0] ss:$8 sps:$4 sm:$0xff]   ;;  %v4814_v51 = vld [vmem:[%s7299_s1 + $0x1c4] ss:$8 sps:$4 sm:$0xff]   ;;  %v4816_v53 = vld [vmem:[%s7299_s1 + $0xc0] ss:$8 sps:$4 sm:$0xff]  }
  0x11   :  { %3391 = vmatprep.subr.bf16.mxu1 %v4772_v17  ;;  %v22_v52 = vld [vmem:[%s7298_s0] sm:$0xff]  ;;  %v4818_v56 = vld [vmem:[%s7299_s1 + $0xb4] ss:$8 sps:$4 sm:$0xff]   ;;  %v4822_v59 = vld [vmem:[%s7299_s1 + $0xb0] ss:$8 sps:$4 sm:$0xff]  }
  0x12   :  { %v561_v54 = vrot.slane %v22_v52, %v5723_v49  ;;  %v4817_v55 = vld [vmem:[%s7299_s1 + $0x1c0] ss:$8 sps:$4 sm:$0xff]   ;;  %v4820_v57 = vld [vmem:[%s7299_s1 + $0x1b4] ss:$8 sps:$4 sm:$0xff]   ;;  %v4823_v61 = vld [vmem:[%s7299_s1 + $0x1b0] ss:$8 sps:$4 sm:$0xff]   ;;  %v554_v1 = vcombine.high %v22_v52, %v22_v52 }
  0x13   :  { %3351 = vmatpush1.bf16.msra.mxu0 %v4774_v18  ;;  %v4824_v62 = vld [vmem:[%s7299_s1 + $0xa4] ss:$8 sps:$4 sm:$0xff]   ;;  %v4828_v2 = vld [vmem:[%s7299_s1 + $0xa0] ss:$8 sps:$4 sm:$0xff]   ;;  %v4830_v4 = vld [vmem:[%s7299_s1 + $0x94] ss:$8 sps:$4 sm:$0xff]  }
  0x14   :  { %3392 = vmatpush1.bf16.msra.mxu1 %v4775_v19  ;;  %3352 = vmatprep.subr.bf16.mxu0 %v4776_v20  ;;  %v569_v58 = vcombine.high %v561_v54, %v561_v54  ;;  %v4826_v63 = vld [vmem:[%s7299_s1 + $0x1a4] ss:$8 sps:$4 sm:$0xff]   ;;  %v4829_v3 = vld [vmem:[%s7299_s1 + $0x1a0] ss:$8 sps:$4 sm:$0xff]   ;;  %v4832_v5 = vld [vmem:[%s7299_s1 + $0x194] ss:$8 sps:$4 sm:$0xff]   ;;  %v5773_v6 = vrot.slane %v554_v1, %v5723_v49  ;;  %v577_v13 = vrot.slane %v561_v54, %v5723_v49 }
  0x15   :  { %3393 = vmatprep.subr.bf16.mxu1 %v4778_v21  ;;  %v4834_v7 = vld [vmem:[%s7299_s1 + $0x90] ss:$8 sps:$4 sm:$0xff]   ;;  %v4836_v9 = vld [vmem:[%s7299_s1 + $0x84] ss:$8 sps:$4 sm:$0xff]   ;;  %v4840_v12 = vld [vmem:[%s7299_s1 + $0x80] ss:$8 sps:$4 sm:$0xff]  }
  0x16   :  { %v591_v60 = vrot.slane %v569_v58, %v5723_v49  ;;  %v4835_v8 = vld [vmem:[%s7299_s1 + $0x190] ss:$8 sps:$4 sm:$0xff]   ;;  %v4838_v10 = vld [vmem:[%s7299_s1 + $0x184] ss:$8 sps:$4 sm:$0xff]   ;;  %v570_v11 = vcombine.high %v5773_v6, %v5773_v6  ;;  %v4841_v14 = vld [vmem:[%s7299_s1 + $0x180] ss:$8 sps:$4 sm:$0xff]   ;;  %v599_v18 = vcombine.high %v577_v13, %v577_v13 }
  0x17   :  { %3353 = vmatpush1.bf16.msra.mxu0 %v4780_v22  ;;  %v4845_v15 = vld [vmem:[%s7299_s1 + $0x274] ss:$8 sps:$4 sm:$0xff]   ;;  %v4843_v19 = vld [vmem:[%s7299_s1 + $0x270] ss:$8 sps:$4 sm:$0xff]   ;;  %v4851_v21 = vld [vmem:[%s7299_s1 + $0x264] ss:$8 sps:$4 sm:$0xff]  }
  0x18   :  { %3394 = vmatpush1.bf16.msra.mxu1 %v4781_v23  ;;  %3354 = vmatprep.subr.bf16.mxu0 %v4782_v24  ;;  %v601_v0 = vcombine.high %v591_v60, %v591_v60  ;;  %v4848_v16 = vld [vmem:[%s7299_s1 + $0x374] ss:$8 sps:$4 sm:$0xff]   ;;  %v598_v17 = vrot.slane %v570_v11, %v5723_v49  ;;  %v4846_v20 = vld [vmem:[%s7299_s1 + $0x370] ss:$8 sps:$4 sm:$0xff]   ;;  %v4854_v22 = vld [vmem:[%s7299_s1 + $0x364] ss:$8 sps:$4 sm:$0xff]  }
  0x19   :  { %3395 = vmatprep.subr.bf16.mxu1 %v4784_v25  ;;  %3374 = vmatprep.mubr.bf16.mxu0 %v591_v60  ;;  %v4849_v24 = vld [vmem:[%s7299_s1 + $0x260] ss:$8 sps:$4 sm:$0xff]   ;;  %v4867_v36 = vld [vmem:[%s7299_s1 + $0x230] ss:$8 sps:$4 sm:$0xff]   ;;  %v4875_v38 = vld [vmem:[%s7299_s1 + $0x224] ss:$8 sps:$4 sm:$0xff]  }
  0x1a   :  { %3415 = vmatprep.mubr.bf16.mxu1 %v601_v0  ;;  %v602_v23 = vcombine.high %v598_v17, %v598_v17  ;;  %v4852_v25 = vld [vmem:[%s7299_s1 + $0x360] ss:$8 sps:$4 sm:$0xff]   ;;  %v4870_v37 = vld [vmem:[%s7299_s1 + $0x330] ss:$8 sps:$4 sm:$0xff]   ;;  %v4881_v43 = vld [vmem:[%s7299_s1 + $0x214] ss:$8 sps:$4 sm:$0xff]  }
  0x1b   :  { %3355 = vmatpush1.bf16.msra.mxu0 %v4786_v26  ;;  %v4857_v26 = vld [vmem:[%s7299_s1 + $0x254] ss:$8 sps:$4 sm:$0xff]   ;;  %v4891_v54 = vld [vmem:[%s7299_s1 + $0x2f0] ss:$8 sps:$4 sm:$0xff]   ;;  %v4897_v58 = vld [vmem:[%s7299_s1 + $0x2e0] ss:$8 sps:$4 sm:$0xff]  }
  0x1c   :  { %3396 = vmatpush1.bf16.msra.mxu1 %v4787_v27  ;;  %3356 = vmatprep.subr.bf16.mxu0 %v4788_v28  ;;  %v4860_v27 = vld [vmem:[%s7299_s1 + $0x354] ss:$8 sps:$4 sm:$0xff]   ;;  %v4855_v28 = vld [vmem:[%s7299_s1 + $0x250] ss:$8 sps:$4 sm:$0xff]   ;;  %v4911_v0 = vld [vmem:[%s7299_s1 + $0x2c4] ss:$8 sps:$4 sm:$0xff]  }
  0x1d   :  { %3397 = vmatprep.subr.bf16.mxu1 %v4790_v29  ;;  %v4858_v29 = vld [vmem:[%s7299_s1 + $0x350] ss:$8 sps:$4 sm:$0xff]   ;;  %v4893_v52 = vld [vmem:[%s7299_s1 + $0x2f4] ss:$8 sps:$4 sm:$0xff]   ;;  %v4914_v1 = vld [vmem:[%s7299_s1 + $0x3c4] ss:$8 sps:$4 sm:$0xff]  }
  0x1e   :  { %v4905_v60 = vld [vmem:[%s7299_s1 + $0x2d4] ss:$8 sps:$4 sm:$0xff]   ;;  %v4921_v11 = vld [vmem:[%s7299_s1 + $0x2a0] ss:$8 sps:$4 sm:$0xff]  }
  0x1f   :  { %3357 = vmatpush1.bf16.msra.mxu0 %v4792_v30  ;;  %v4863_v30 = vld [vmem:[%s7299_s1 + $0x244] ss:$8 sps:$4 sm:$0xff]  }
  0x20   :  { %3398 = vmatpush1.bf16.msra.mxu1 %v4793_v31  ;;  %3358 = vmatprep.subr.bf16.mxu0 %v4794_v32  ;;  %v4866_v31 = vld [vmem:[%s7299_s1 + $0x344] ss:$8 sps:$4 sm:$0xff]   ;;  %v4861_v32 = vld [vmem:[%s7299_s1 + $0x240] ss:$8 sps:$4 sm:$0xff]  }
  0x21   :  { %3399 = vmatprep.subr.bf16.mxu1 %v4796_v33  ;;  %v4864_v33 = vld [vmem:[%s7299_s1 + $0x340] ss:$8 sps:$4 sm:$0xff]  }
  0x23   :  { %3359 = vmatpush2.bf16.msra.mxu0 %v4798_v34  ;;  %v4869_v34 = vld [vmem:[%s7299_s1 + $0x234] ss:$8 sps:$4 sm:$0xff]  }
  0x24   :  { %3400 = vmatpush2.bf16.msra.mxu1 %v4799_v35  ;;  %3360 = vmatprep.subr.bf16.mxu0 %v4800_v39  ;;  %v4872_v35 = vld [vmem:[%s7299_s1 + $0x334] ss:$8 sps:$4 sm:$0xff]   ;;  %v4878_v39 = vld [vmem:[%s7299_s1 + $0x324] ss:$8 sps:$4 sm:$0xff]  }
  0x25   :  { %3401 = vmatprep.subr.bf16.mxu1 %v4802_v40  ;;  %v4873_v40 = vld [vmem:[%s7299_s1 + $0x220] ss:$8 sps:$4 sm:$0xff]  }
  0x27   :  { %3361 = vmatpush2.bf16.msra.mxu0 %v4804_v41  ;;  %v4876_v41 = vld [vmem:[%s7299_s1 + $0x320] ss:$8 sps:$4 sm:$0xff]  }
  0x28   :  { %3402 = vmatpush2.bf16.msra.mxu1 %v4805_v44  ;;  %3362 = vmatprep.subr.bf16.mxu0 %v4806_v45  ;;  %v4884_v44 = vld [vmem:[%s7299_s1 + $0x314] ss:$8 sps:$4 sm:$0xff]   ;;  %v4879_v45 = vld [vmem:[%s7299_s1 + $0x210] ss:$8 sps:$4 sm:$0xff]  }
  0x29   :  { %3403 = vmatprep.subr.bf16.mxu1 %v4808_v46  ;;  %v4882_v46 = vld [vmem:[%s7299_s1 + $0x310] ss:$8 sps:$4 sm:$0xff]  }
  0x2b   :  { %3363 = vmatpush2.bf16.msra.mxu0 %v4810_v47  ;;  %v4887_v47 = vld [vmem:[%s7299_s1 + $0x204] ss:$8 sps:$4 sm:$0xff]  }
  0x2c   :  { %3404 = vmatpush2.bf16.msra.mxu1 %v4811_v48  ;;  %3364 = vmatprep.subr.bf16.mxu0 %v4812_v50  ;;  %v4890_v48 = vld [vmem:[%s7299_s1 + $0x304] ss:$8 sps:$4 sm:$0xff]   ;;  %v4885_v50 = vld [vmem:[%s7299_s1 + $0x200] ss:$8 sps:$4 sm:$0xff]  }
  0x2d   :  { %3405 = vmatprep.subr.bf16.mxu1 %v4814_v51  ;;  %v4888_v51 = vld [vmem:[%s7299_s1 + $0x300] ss:$8 sps:$4 sm:$0xff]  }
  0x2f   :  { %3365 = vmatpush2.bf16.msra.mxu0 %v4816_v53  ;;  %v4896_v53 = vld [vmem:[%s7299_s1 + $0x3f4] ss:$8 sps:$4 sm:$0xff]  }
  0x30   :  { %3406 = vmatpush2.bf16.msra.mxu1 %v4817_v55  ;;  %3366 = vmatprep.subr.bf16.mxu0 %v4818_v56  ;;  %v4894_v55 = vld [vmem:[%s7299_s1 + $0x3f0] ss:$8 sps:$4 sm:$0xff]   ;;  %v4899_v56 = vld [vmem:[%s7299_s1 + $0x2e4] ss:$8 sps:$4 sm:$0xff]  }
  0x31   :  { %3407 = vmatprep.subr.bf16.mxu1 %v4820_v57  ;;  %v4902_v57 = vld [vmem:[%s7299_s1 + $0x3e4] ss:$8 sps:$4 sm:$0xff]  }
  0x33   :  { %3367 = vmatpush2.bf16.msra.mxu0 %v4822_v59  ;;  %v4900_v59 = vld [vmem:[%s7299_s1 + $0x3e0] ss:$8 sps:$4 sm:$0xff]  }
  0x34   :  { %3408 = vmatpush2.bf16.msra.mxu1 %v4823_v61  ;;  %3368 = vmatprep.subr.bf16.mxu0 %v4824_v62  ;;  %v4908_v61 = vld [vmem:[%s7299_s1 + $0x3d4] ss:$8 sps:$4 sm:$0xff]   ;;  %v4903_v62 = vld [vmem:[%s7299_s1 + $0x2d0] ss:$8 sps:$4 sm:$0xff]  }
  0x35   :  { %3409 = vmatprep.subr.bf16.mxu1 %v4826_v63  ;;  %v4906_v63 = vld [vmem:[%s7299_s1 + $0x3d0] ss:$8 sps:$4 sm:$0xff]  }
  0x37   :  { %3369 = vmatpush2.bf16.msra.mxu0 %v4828_v2  ;;  %v4909_v2 = vld [vmem:[%s7299_s1 + $0x2c0] ss:$8 sps:$4 sm:$0xff]  }
  0x38   :  { %3410 = vmatpush2.bf16.msra.mxu1 %v4829_v3  ;;  %3370 = vmatprep.subr.bf16.mxu0 %v4830_v4  ;;  %v4912_v3 = vld [vmem:[%s7299_s1 + $0x3c0] ss:$8 sps:$4 sm:$0xff]   ;;  %v4917_v4 = vld [vmem:[%s7299_s1 + $0x2b4] ss:$8 sps:$4 sm:$0xff]  }
  0x39   :  { %3411 = vmatprep.subr.bf16.mxu1 %v4832_v5  ;;  %v4920_v5 = vld [vmem:[%s7299_s1 + $0x3b4] ss:$8 sps:$4 sm:$0xff]  }
  0x3b   :  { %3371 = vmatpush2.bf16.msra.mxu0 %v4834_v7  ;;  %v4915_v7 = vld [vmem:[%s7299_s1 + $0x2b0] ss:$8 sps:$4 sm:$0xff]  }
  0x3c   :  { %3412 = vmatpush2.bf16.msra.mxu1 %v4835_v8  ;;  %3372 = vmatprep.subr.bf16.mxu0 %v4836_v9  ;;  %v4918_v8 = vld [vmem:[%s7299_s1 + $0x3b0] ss:$8 sps:$4 sm:$0xff]   ;;  %v4923_v9 = vld [vmem:[%s7299_s1 + $0x2a4] ss:$8 sps:$4 sm:$0xff]  }
  0x3d   :  { %3413 = vmatprep.subr.bf16.mxu1 %v4838_v10  ;;  %v4926_v10 = vld [vmem:[%s7299_s1 + $0x3a4] ss:$8 sps:$4 sm:$0xff]  }
  0x3f   :  { %3373 = vmatpush2.bf16.msra.mxu0 %v4840_v12  ;;  %v4924_v12 = vld [vmem:[%s7299_s1 + $0x3a0] ss:$8 sps:$4 sm:$0xff]  }
  0x40   :  { %3414 = vmatpush2.bf16.msra.mxu1 %v4841_v14  ;;  %3424 = vmatprep.subr.bf16.mxu0 %v4845_v15  ;;  %v4932_v14 = vld [vmem:[%s7299_s1 + $0x394] ss:$8 sps:$4 sm:$0xff]   ;;  %v4927_v15 = vld [vmem:[%s7299_s1 + $0x290] ss:$8 sps:$4 sm:$0xff]  }
  0x41   :  { %3465 = vmatprep.subr.bf16.mxu1 %v4848_v16  ;;  %v4930_v16 = vld [vmem:[%s7299_s1 + $0x390] ss:$8 sps:$4 sm:$0xff]  }
  0x42   :  { %3375 = vmatmul.mubr.bf16.vlgmr.msra.gmra.mxu0 %v577_v13  ;;  %v4929_v13 = vld [vmem:[%s7299_s1 + $0x294] ss:$8 sps:$4 sm:$0xff]  }
  0x43   :  { %3416 = vmatmul.mubr.bf16.vlgmr.msra.gmra.mxu1 %v599_v18  ;;  %3425 = vmatpush1.bf16.msra.mxu0 %v4843_v19  ;;  %v4938_v18 = vld [vmem:[%s7299_s1 + $0x384] ss:$8 sps:$4 sm:$0xff]   ;;  %v4933_v19 = vld [vmem:[%s7299_s1 + $0x280] ss:$8 sps:$4 sm:$0xff]  }
  0x44   :  { %3466 = vmatpush1.bf16.msra.mxu1 %v4846_v20  ;;  %3426 = vmatprep.subr.bf16.mxu0 %v4851_v21  ;;  %v584_v20 = vrot.slane %v5773_v6, %v5723_v49  ;;  %v4936_v21 = vld [vmem:[%s7299_s1 + $0x380] ss:$8 sps:$4 sm:$0xff]   ;;  %v4939_v6 = vld [vmem:[%s7299_s1 + $0x470] ss:$8 sps:$4 sm:$0xff]  }
  0x45   :  { %3467 = vmatprep.subr.bf16.mxu1 %v4854_v22  ;;  %3456 = vmatprep.mubr.bf16.mxu0 %v598_v17  ;;  %v4935_v17 = vld [vmem:[%s7299_s1 + $0x284] ss:$8 sps:$4 sm:$0xff]   ;;  %v4941_v22 = vld [vmem:[%s7299_s1 + $0x474] ss:$8 sps:$4 sm:$0xff]  }
  0x46   :  { %3497 = vmatprep.mubr.bf16.mxu1 %v602_v23  ;;  %v4944_v23 = vld [vmem:[%s7299_s1 + $0x574] ss:$8 sps:$4 sm:$0xff]  }
  0x47   :  { %3427 = vmatpush1.bf16.msra.mxu0 %v4849_v24  ;;  %v600_v24 = vcombine.high %v584_v20, %v584_v20 }
  0x48   :  { %3468 = vmatpush1.bf16.msra.mxu1 %v4852_v25  ;;  %3428 = vmatprep.subr.bf16.mxu0 %v4857_v26  ;;  %v4942_v25 = vld [vmem:[%s7299_s1 + $0x570] ss:$8 sps:$4 sm:$0xff]   ;;  %v6006_v26 = vld [vmem:[%s7298_s0 + $0x8] sm:$0xff] }
  0x49   :  { %3469 = vmatprep.subr.bf16.mxu1 %v4860_v27  ;;  %v4947_v27 = vld [vmem:[%s7299_s1 + $0x464] ss:$8 sps:$4 sm:$0xff]  }
  0x4b   :  { %3429 = vmatpush1.bf16.msra.mxu0 %v4855_v28  ;;  %v4950_v28 = vld [vmem:[%s7299_s1 + $0x564] ss:$8 sps:$4 sm:$0xff]  }
  0x4c   :  { %3470 = vmatpush1.bf16.msra.mxu1 %v4858_v29  ;;  %3430 = vmatprep.subr.bf16.mxu0 %v4863_v30  ;;  %v6016_v29 = vrot.slane %v6006_v26, %v5723_v49 }
  0x4d   :  { %3471 = vmatprep.subr.bf16.mxu1 %v4866_v31  ;;  %v4945_v31 = vld [vmem:[%s7299_s1 + $0x460] ss:$8 sps:$4 sm:$0xff]  }
  0x4e   :  { %v618_v30 = vcombine.high %v6016_v29, %v6016_v29 }
  0x4f   :  { %3431 = vmatpush1.bf16.msra.mxu0 %v4861_v32  ;;  %v4948_v32 = vld [vmem:[%s7299_s1 + $0x560] ss:$8 sps:$4 sm:$0xff]  }
  0x50   :  { %3472 = vmatpush1.bf16.msra.mxu1 %v4864_v33  ;;  %3432 = vmatprep.subr.bf16.mxu0 %v4869_v34  ;;  %v4953_v33 = vld [vmem:[%s7299_s1 + $0x454] ss:$8 sps:$4 sm:$0xff]  }
  0x51   :  { %3473 = vmatprep.subr.bf16.mxu1 %v4872_v35  ;;  %v4956_v34 = vld [vmem:[%s7299_s1 + $0x554] ss:$8 sps:$4 sm:$0xff]   ;;  %v640_v35 = vrot.slane %v618_v30, %v5723_v49 }
  0x53   :  { %3433 = vmatpush1.bf16.msra.mxu0 %v4867_v36  ;;  %v650_v36 = vcombine.high %v640_v35, %v640_v35 }
  0x54   :  { %3474 = vmatpush1.bf16.msra.mxu1 %v4870_v37  ;;  %3434 = vmatprep.subr.bf16.mxu0 %v4875_v38  ;;  %v4951_v37 = vld [vmem:[%s7299_s1 + $0x450] ss:$8 sps:$4 sm:$0xff]  }
  0x55   :  { %3475 = vmatprep.subr.bf16.mxu1 %v4878_v39  ;;  %v4954_v38 = vld [vmem:[%s7299_s1 + $0x550] ss:$8 sps:$4 sm:$0xff]   ;;  %v4959_v39 = vld [vmem:[%s7299_s1 + $0x444] ss:$8 sps:$4 sm:$0xff]  }
  0x57   :  { %3435 = vmatpush1.bf16.msra.mxu0 %v4873_v40  ;;  %v4962_v40 = vld [vmem:[%s7299_s1 + $0x544] ss:$8 sps:$4 sm:$0xff]  }
  0x58   :  { %3476 = vmatpush1.bf16.msra.mxu1 %v4876_v41  ;;  %3436 = vmatprep.subr.bf16.mxu0 %v4881_v43  ;;  %v4957_v41 = vld [vmem:[%s7299_s1 + $0x440] ss:$8 sps:$4 sm:$0xff]  }
  0x59   :  { %3477 = vmatprep.subr.bf16.mxu1 %v4884_v44  ;;  %v4960_v43 = vld [vmem:[%s7299_s1 + $0x540] ss:$8 sps:$4 sm:$0xff]   ;;  %v4965_v44 = vld [vmem:[%s7299_s1 + $0x434] ss:$8 sps:$4 sm:$0xff]  }
  0x5b   :  { %3437 = vmatpush1.bf16.msra.mxu0 %v4879_v45  ;;  %v4968_v45 = vld [vmem:[%s7299_s1 + $0x534] ss:$8 sps:$4 sm:$0xff]  }
  0x5c   :  { %3478 = vmatpush1.bf16.msra.mxu1 %v4882_v46  ;;  %3438 = vmatprep.subr.bf16.mxu0 %v4887_v47  ;;  %v4963_v46 = vld [vmem:[%s7299_s1 + $0x430] ss:$8 sps:$4 sm:$0xff]  }
  0x5d   :  { %3479 = vmatprep.subr.bf16.mxu1 %v4890_v48  ;;  %v4966_v47 = vld [vmem:[%s7299_s1 + $0x530] ss:$8 sps:$4 sm:$0xff]   ;;  %v4971_v48 = vld [vmem:[%s7299_s1 + $0x424] ss:$8 sps:$4 sm:$0xff]  }
  0x5f   :  { %3439 = vmatpush1.bf16.msra.mxu0 %v4885_v50  ;;  %v4974_v50 = vld [vmem:[%s7299_s1 + $0x524] ss:$8 sps:$4 sm:$0xff]  }
  0x60   :  { %3480 = vmatpush1.bf16.msra.mxu1 %v4888_v51  ;;  %3440 = vmatprep.subr.bf16.mxu0 %v4893_v52  ;;  %v4969_v51 = vld [vmem:[%s7299_s1 + $0x420] ss:$8 sps:$4 sm:$0xff]  }
  0x61   :  { %3481 = vmatprep.subr.bf16.mxu1 %v4896_v53  ;;  %v4972_v52 = vld [vmem:[%s7299_s1 + $0x520] ss:$8 sps:$4 sm:$0xff]   ;;  %v4977_v53 = vld [vmem:[%s7299_s1 + $0x414] ss:$8 sps:$4 sm:$0xff]  }
  0x63   :  { %3441 = vmatpush2.bf16.msra.mxu0 %v4891_v54  ;;  %v4980_v54 = vld [vmem:[%s7299_s1 + $0x514] ss:$8 sps:$4 sm:$0xff]  }
  0x64   :  { %3482 = vmatpush2.bf16.msra.mxu1 %v4894_v55  ;;  %3442 = vmatprep.subr.bf16.mxu0 %v4899_v56  ;;  %v4975_v55 = vld [vmem:[%s7299_s1 + $0x410] ss:$8 sps:$4 sm:$0xff]  }
  0x65   :  { %3483 = vmatprep.subr.bf16.mxu1 %v4902_v57  ;;  %v4978_v56 = vld [vmem:[%s7299_s1 + $0x510] ss:$8 sps:$4 sm:$0xff]   ;;  %v4983_v57 = vld [vmem:[%s7299_s1 + $0x404] ss:$8 sps:$4 sm:$0xff]  }
  0x67   :  { %3443 = vmatpush2.bf16.msra.mxu0 %v4897_v58  ;;  %v4986_v58 = vld [vmem:[%s7299_s1 + $0x504] ss:$8 sps:$4 sm:$0xff]  }
  0x68   :  { %3484 = vmatpush2.bf16.msra.mxu1 %v4900_v59  ;;  %3444 = vmatprep.subr.bf16.mxu0 %v4905_v60  ;;  %v4981_v59 = vld [vmem:[%s7299_s1 + $0x400] ss:$8 sps:$4 sm:$0xff]  }
  0x69   :  { %3485 = vmatprep.subr.bf16.mxu1 %v4908_v61  ;;  %v4984_v60 = vld [vmem:[%s7299_s1 + $0x500] ss:$8 sps:$4 sm:$0xff]   ;;  %v4989_v61 = vld [vmem:[%s7299_s1 + $0x4f4] ss:$8 sps:$4 sm:$0xff]  }
  0x6b   :  { %3445 = vmatpush2.bf16.msra.mxu0 %v4903_v62  ;;  %v4992_v62 = vld [vmem:[%s7299_s1 + $0x5f4] ss:$8 sps:$4 sm:$0xff]  }
  0x6c   :  { %3486 = vmatpush2.bf16.msra.mxu1 %v4906_v63  ;;  %3446 = vmatprep.subr.bf16.mxu0 %v4911_v0  ;;  %v4987_v63 = vld [vmem:[%s7299_s1 + $0x4f0] ss:$8 sps:$4 sm:$0xff]  }
  0x6d   :  { %3487 = vmatprep.subr.bf16.mxu1 %v4914_v1  ;;  %v4990_v0 = vld [vmem:[%s7299_s1 + $0x5f0] ss:$8 sps:$4 sm:$0xff]   ;;  %v4995_v1 = vld [vmem:[%s7299_s1 + $0x4e4] ss:$8 sps:$4 sm:$0xff]  }
  0x6f   :  { %3447 = vmatpush2.bf16.msra.mxu0 %v4909_v2  ;;  %v4998_v2 = vld [vmem:[%s7299_s1 + $0x5e4] ss:$8 sps:$4 sm:$0xff]  }
  0x70   :  { %3488 = vmatpush2.bf16.msra.mxu1 %v4912_v3  ;;  %3448 = vmatprep.subr.bf16.mxu0 %v4917_v4  ;;  %v4993_v3 = vld [vmem:[%s7299_s1 + $0x4e0] ss:$8 sps:$4 sm:$0xff]  }
  0x71   :  { %3489 = vmatprep.subr.bf16.mxu1 %v4920_v5  ;;  %v4996_v4 = vld [vmem:[%s7299_s1 + $0x5e0] ss:$8 sps:$4 sm:$0xff]   ;;  %v5001_v5 = vld [vmem:[%s7299_s1 + $0x4d4] ss:$8 sps:$4 sm:$0xff]  }
  0x73   :  { %3449 = vmatpush2.bf16.msra.mxu0 %v4915_v7  ;;  %v5004_v7 = vld [vmem:[%s7299_s1 + $0x5d4] ss:$8 sps:$4 sm:$0xff]  }
  0x74   :  { %3490 = vmatpush2.bf16.msra.mxu1 %v4918_v8  ;;  %3450 = vmatprep.subr.bf16.mxu0 %v4923_v9  ;;  %v4999_v8 = vld [vmem:[%s7299_s1 + $0x4d0] ss:$8 sps:$4 sm:$0xff]  }
  0x75   :  { %3491 = vmatprep.subr.bf16.mxu1 %v4926_v10  ;;  %v5002_v9 = vld [vmem:[%s7299_s1 + $0x5d0] ss:$8 sps:$4 sm:$0xff]   ;;  %v5007_v10 = vld [vmem:[%s7299_s1 + $0x4c4] ss:$8 sps:$4 sm:$0xff]  }
  0x77   :  { %3451 = vmatpush2.bf16.msra.mxu0 %v4921_v11  ;;  %v5010_v11 = vld [vmem:[%s7299_s1 + $0x5c4] ss:$8 sps:$4 sm:$0xff]  }
  0x78   :  { %3492 = vmatpush2.bf16.msra.mxu1 %v4924_v12  ;;  %3452 = vmatprep.subr.bf16.mxu0 %v4929_v13  ;;  %v5005_v12 = vld [vmem:[%s7299_s1 + $0x4c0] ss:$8 sps:$4 sm:$0xff]  }
  0x79   :  { %3493 = vmatprep.subr.bf16.mxu1 %v4932_v14  ;;  %v5008_v13 = vld [vmem:[%s7299_s1 + $0x5c0] ss:$8 sps:$4 sm:$0xff]   ;;  %v5013_v14 = vld [vmem:[%s7299_s1 + $0x4b4] ss:$8 sps:$4 sm:$0xff]  }
  0x7b   :  { %3453 = vmatpush2.bf16.msra.mxu0 %v4927_v15  ;;  %v5016_v15 = vld [vmem:[%s7299_s1 + $0x5b4] ss:$8 sps:$4 sm:$0xff]  }
  0x7c   :  { %3494 = vmatpush2.bf16.msra.mxu1 %v4930_v16  ;;  %3454 = vmatprep.subr.bf16.mxu0 %v4935_v17  ;;  %v5011_v16 = vld [vmem:[%s7299_s1 + $0x4b0] ss:$8 sps:$4 sm:$0xff]  }
  0x7d   :  { %3495 = vmatprep.subr.bf16.mxu1 %v4938_v18  ;;  %v5014_v17 = vld [vmem:[%s7299_s1 + $0x5b0] ss:$8 sps:$4 sm:$0xff]   ;;  %v5019_v18 = vld [vmem:[%s7299_s1 + $0x4a4] ss:$8 sps:$4 sm:$0xff]  }
  0x7f   :  { %3455 = vmatpush2.bf16.msra.mxu0 %v4933_v19  ;;  %v5022_v19 = vld [vmem:[%s7299_s1 + $0x5a4] ss:$8 sps:$4 sm:$0xff]  }
  0x80   :  { %3496 = vmatpush2.bf16.msra.mxu1 %v4936_v21  ;;  %3506 = vmatprep.subr.bf16.mxu0 %v4941_v22  ;;  %v5017_v21 = vld [vmem:[%s7299_s1 + $0x4a0] ss:$8 sps:$4 sm:$0xff]  }
  0x81   :  { %3547 = vmatprep.subr.bf16.mxu1 %v4944_v23  ;;  %v5020_v22 = vld [vmem:[%s7299_s1 + $0x5a0] ss:$8 sps:$4 sm:$0xff]   ;;  %v5025_v23 = vld [vmem:[%s7299_s1 + $0x494] ss:$8 sps:$4 sm:$0xff]  }
  0x82   :  { %3457 = vmatmul.mubr.bf16.vlgmr.msra.gmra.mxu0 %v584_v20  ;;  %v603_v20 = vcombine.high %v6006_v26, %v6006_v26  ;;  %v5026_v26 = vld [vmem:[%s7299_s1 + $0x590] ss:$8 sps:$4 sm:$0xff]  }
  0x83   :  { %3498 = vmatmul.mubr.bf16.vlgmr.msra.gmra.mxu1 %v600_v24  ;;  %3507 = vmatpush1.bf16.msra.mxu0 %v4939_v6  ;;  %v5028_v24 = vld [vmem:[%s7299_s1 + $0x594] ss:$8 sps:$4 sm:$0xff]  }
  0x84   :  { %3548 = vmatpush1.bf16.msra.mxu1 %v4942_v25  ;;  %3508 = vmatprep.subr.bf16.mxu0 %v4947_v27  ;;  %v6180_v6 = vrot.slane %v603_v20, %v5723_v49  ;;  %v5023_v25 = vld [vmem:[%s7299_s1 + $0x490] ss:$8 sps:$4 sm:$0xff]   ;;  %v5031_v27 = vld [vmem:[%s7299_s1 + $0x484] ss:$8 sps:$4 sm:$0xff]  }
  0x85   :  { %3549 = vmatprep.subr.bf16.mxu1 %v4950_v28  ;;  %3538 = vmatprep.mubr.bf16.mxu0 %v640_v35  ;;  %v5034_v28 = vld [vmem:[%s7299_s1 + $0x584] ss:$8 sps:$4 sm:$0xff]   ;;  %v5040_v35 = vld [vmem:[%s7299_s1 + $0x774] ss:$8 sps:$4 sm:$0xff]  }
  0x86   :  { %3579 = vmatprep.mubr.bf16.mxu1 %v650_v36  ;;  %v619_v30 = vcombine.high %v6180_v6, %v6180_v6  ;;  %v5106_v20 = vld [vmem:[%s7299_s1 + $0x7c4] ss:$8 sps:$4 sm:$0xff]  }
  0x87   :  { %3509 = vmatpush1.bf16.msra.mxu0 %v4945_v31  ;;  %v5029_v31 = vld [vmem:[%s7299_s1 + $0x480] ss:$8 sps:$4 sm:$0xff]  }
  0x88   :  { %3550 = vmatpush1.bf16.msra.mxu1 %v4948_v32  ;;  %3510 = vmatprep.subr.bf16.mxu0 %v4953_v33  ;;  %v626_v32 = vrot.slane %v6016_v29, %v5723_v49  ;;  %v5032_v33 = vld [vmem:[%s7299_s1 + $0x580] ss:$8 sps:$4 sm:$0xff]   ;;  %v647_v36 = vrot.slane %v619_v30, %v5723_v49  ;;  %v5035_v29 = vld [vmem:[%s7299_s1 + $0x670] ss:$8 sps:$4 sm:$0xff]  }
  0x89   :  { %3551 = vmatprep.subr.bf16.mxu1 %v4956_v34  ;;  %v5037_v34 = vld [vmem:[%s7299_s1 + $0x674] ss:$8 sps:$4 sm:$0xff]   ;;  %v5113_v30 = vld [vmem:[%s7299_s1 + $0x6a0] ss:$8 sps:$4 sm:$0xff]  }
  0x8b   :  { %3511 = vmatpush1.bf16.msra.mxu0 %v4951_v37  ;;  %v648_v37 = vcombine.high %v626_v32, %v626_v32 }
  0x8c   :  { %3552 = vmatpush1.bf16.msra.mxu1 %v4954_v38  ;;  %3512 = vmatprep.subr.bf16.mxu0 %v4959_v39  ;;  %v5038_v38 = vld [vmem:[%s7299_s1 + $0x770] ss:$8 sps:$4 sm:$0xff]   ;;  %v5043_v39 = vld [vmem:[%s7299_s1 + $0x664] ss:$8 sps:$4 sm:$0xff]  }
  0x8d   :  { %3553 = vmatprep.subr.bf16.mxu1 %v4962_v40  ;;  %v5046_v40 = vld [vmem:[%s7299_s1 + $0x764] ss:$8 sps:$4 sm:$0xff]  }
  0x8f   :  { %3513 = vmatpush1.bf16.msra.mxu0 %v4957_v41  ;;  %v651_v41 = vcombine.high %v647_v36, %v647_v36 }
  0x90   :  { %3554 = vmatpush1.bf16.msra.mxu1 %v4960_v43  ;;  %3514 = vmatprep.subr.bf16.mxu0 %v4965_v44  ;;  %v5041_v43 = vld [vmem:[%s7299_s1 + $0x660] ss:$8 sps:$4 sm:$0xff]  }
  0x91   :  { %3555 = vmatprep.subr.bf16.mxu1 %v4968_v45  ;;  %v5044_v44 = vld [vmem:[%s7299_s1 + $0x760] ss:$8 sps:$4 sm:$0xff]   ;;  %v5049_v45 = vld [vmem:[%s7299_s1 + $0x654] ss:$8 sps:$4 sm:$0xff]  }
  0x93   :  { %3515 = vmatpush1.bf16.msra.mxu0 %v4963_v46  ;;  %v5052_v46 = vld [vmem:[%s7299_s1 + $0x754] ss:$8 sps:$4 sm:$0xff]  }
  0x94   :  { %3556 = vmatpush1.bf16.msra.mxu1 %v4966_v47  ;;  %3516 = vmatprep.subr.bf16.mxu0 %v4971_v48  ;;  %v5047_v47 = vld [vmem:[%s7299_s1 + $0x650] ss:$8 sps:$4 sm:$0xff]  }
  0x95   :  { %3557 = vmatprep.subr.bf16.mxu1 %v4974_v50  ;;  %v5050_v48 = vld [vmem:[%s7299_s1 + $0x750] ss:$8 sps:$4 sm:$0xff]   ;;  %v5055_v50 = vld [vmem:[%s7299_s1 + $0x644] ss:$8 sps:$4 sm:$0xff]  }
  0x97   :  { %3517 = vmatpush1.bf16.msra.mxu0 %v4969_v51  ;;  %v5058_v51 = vld [vmem:[%s7299_s1 + $0x744] ss:$8 sps:$4 sm:$0xff]  }
  0x98   :  { %3558 = vmatpush1.bf16.msra.mxu1 %v4972_v52  ;;  %3518 = vmatprep.subr.bf16.mxu0 %v4977_v53  ;;  %v5053_v52 = vld [vmem:[%s7299_s1 + $0x640] ss:$8 sps:$4 sm:$0xff]  }
  0x99   :  { %3559 = vmatprep.subr.bf16.mxu1 %v4980_v54  ;;  %v5056_v53 = vld [vmem:[%s7299_s1 + $0x740] ss:$8 sps:$4 sm:$0xff]   ;;  %v5061_v54 = vld [vmem:[%s7299_s1 + $0x634] ss:$8 sps:$4 sm:$0xff]  }
  0x9b   :  { %3519 = vmatpush1.bf16.msra.mxu0 %v4975_v55  ;;  %v5064_v55 = vld [vmem:[%s7299_s1 + $0x734] ss:$8 sps:$4 sm:$0xff]  }
  0x9c   :  { %3560 = vmatpush1.bf16.msra.mxu1 %v4978_v56  ;;  %3520 = vmatprep.subr.bf16.mxu0 %v4983_v57  ;;  %v5059_v56 = vld [vmem:[%s7299_s1 + $0x630] ss:$8 sps:$4 sm:$0xff]  }
  0x9d   :  { %3561 = vmatprep.subr.bf16.mxu1 %v4986_v58  ;;  %v5062_v57 = vld [vmem:[%s7299_s1 + $0x730] ss:$8 sps:$4 sm:$0xff]   ;;  %v5067_v58 = vld [vmem:[%s7299_s1 + $0x624] ss:$8 sps:$4 sm:$0xff]  }
  0x9f   :  { %3521 = vmatpush1.bf16.msra.mxu0 %v4981_v59  ;;  %v5070_v59 = vld [vmem:[%s7299_s1 + $0x724] ss:$8 sps:$4 sm:$0xff]  }
  0xa0   :  { %3562 = vmatpush1.bf16.msra.mxu1 %v4984_v60  ;;  %3522 = vmatprep.subr.bf16.mxu0 %v4989_v61  ;;  %v5065_v60 = vld [vmem:[%s7299_s1 + $0x620] ss:$8 sps:$4 sm:$0xff]  }
  0xa1   :  { %3563 = vmatprep.subr.bf16.mxu1 %v4992_v62  ;;  %v5068_v61 = vld [vmem:[%s7299_s1 + $0x720] ss:$8 sps:$4 sm:$0xff]   ;;  %v5073_v62 = vld [vmem:[%s7299_s1 + $0x614] ss:$8 sps:$4 sm:$0xff]  }
  0xa3   :  { %3523 = vmatpush2.bf16.msra.mxu0 %v4987_v63  ;;  %v5076_v63 = vld [vmem:[%s7299_s1 + $0x714] ss:$8 sps:$4 sm:$0xff]  }
  0xa4   :  { %3564 = vmatpush2.bf16.msra.mxu1 %v4990_v0  ;;  %3524 = vmatprep.subr.bf16.mxu0 %v4995_v1  ;;  %v5071_v0 = vld [vmem:[%s7299_s1 + $0x610] ss:$8 sps:$4 sm:$0xff]  }
  0xa5   :  { %3565 = vmatprep.subr.bf16.mxu1 %v4998_v2  ;;  %v5074_v1 = vld [vmem:[%s7299_s1 + $0x710] ss:$8 sps:$4 sm:$0xff]   ;;  %v5079_v2 = vld [vmem:[%s7299_s1 + $0x604] ss:$8 sps:$4 sm:$0xff]  }
  0xa7   :  { %3525 = vmatpush2.bf16.msra.mxu0 %v4993_v3  ;;  %v5082_v3 = vld [vmem:[%s7299_s1 + $0x704] ss:$8 sps:$4 sm:$0xff]  }
  0xa8   :  { %3566 = vmatpush2.bf16.msra.mxu1 %v4996_v4  ;;  %3526 = vmatprep.subr.bf16.mxu0 %v5001_v5  ;;  %v5077_v4 = vld [vmem:[%s7299_s1 + $0x600] ss:$8 sps:$4 sm:$0xff]  }
  0xa9   :  { %3567 = vmatprep.subr.bf16.mxu1 %v5004_v7  ;;  %v5080_v5 = vld [vmem:[%s7299_s1 + $0x700] ss:$8 sps:$4 sm:$0xff]   ;;  %v5085_v7 = vld [vmem:[%s7299_s1 + $0x6f4] ss:$8 sps:$4 sm:$0xff]  }
  0xab   :  { %3527 = vmatpush2.bf16.msra.mxu0 %v4999_v8  ;;  %v5088_v8 = vld [vmem:[%s7299_s1 + $0x7f4] ss:$8 sps:$4 sm:$0xff]  }
  0xac   :  { %3568 = vmatpush2.bf16.msra.mxu1 %v5002_v9  ;;  %3528 = vmatprep.subr.bf16.mxu0 %v5007_v10  ;;  %v5083_v9 = vld [vmem:[%s7299_s1 + $0x6f0] ss:$8 sps:$4 sm:$0xff]  }
  0xad   :  { %3569 = vmatprep.subr.bf16.mxu1 %v5010_v11  ;;  %v5086_v10 = vld [vmem:[%s7299_s1 + $0x7f0] ss:$8 sps:$4 sm:$0xff]   ;;  %v5091_v11 = vld [vmem:[%s7299_s1 + $0x6e4] ss:$8 sps:$4 sm:$0xff]  }
  0xaf   :  { %3529 = vmatpush2.bf16.msra.mxu0 %v5005_v12  ;;  %v5094_v12 = vld [vmem:[%s7299_s1 + $0x7e4] ss:$8 sps:$4 sm:$0xff]  }
  0xb0   :  { %3570 = vmatpush2.bf16.msra.mxu1 %v5008_v13  ;;  %3530 = vmatprep.subr.bf16.mxu0 %v5013_v14  ;;  %v5089_v13 = vld [vmem:[%s7299_s1 + $0x6e0] ss:$8 sps:$4 sm:$0xff]  }
  0xb1   :  { %3571 = vmatprep.subr.bf16.mxu1 %v5016_v15  ;;  %v5092_v14 = vld [vmem:[%s7299_s1 + $0x7e0] ss:$8 sps:$4 sm:$0xff]   ;;  %v5097_v15 = vld [vmem:[%s7299_s1 + $0x6d4] ss:$8 sps:$4 sm:$0xff]  }
  0xb3   :  { %3531 = vmatpush2.bf16.msra.mxu0 %v5011_v16  ;;  %v5100_v16 = vld [vmem:[%s7299_s1 + $0x7d4] ss:$8 sps:$4 sm:$0xff]  }
  0xb4   :  { %3572 = vmatpush2.bf16.msra.mxu1 %v5014_v17  ;;  %3532 = vmatprep.subr.bf16.mxu0 %v5019_v18  ;;  %v5095_v17 = vld [vmem:[%s7299_s1 + $0x6d0] ss:$8 sps:$4 sm:$0xff]  }
  0xb5   :  { %3573 = vmatprep.subr.bf16.mxu1 %v5022_v19  ;;  %v5098_v18 = vld [vmem:[%s7299_s1 + $0x7d0] ss:$8 sps:$4 sm:$0xff]   ;;  %v5103_v19 = vld [vmem:[%s7299_s1 + $0x6c4] ss:$8 sps:$4 sm:$0xff]  }
  0xb7   :  { %3533 = vmatpush2.bf16.msra.mxu0 %v5017_v21  ;;  %v5101_v21 = vld [vmem:[%s7299_s1 + $0x6c0] ss:$8 sps:$4 sm:$0xff]  }
  0xb8   :  { %3574 = vmatpush2.bf16.msra.mxu1 %v5020_v22  ;;  %3534 = vmatprep.subr.bf16.mxu0 %v5025_v23  ;;  %v5104_v22 = vld [vmem:[%s7299_s1 + $0x7c0] ss:$8 sps:$4 sm:$0xff]   ;;  %v5109_v23 = vld [vmem:[%s7299_s1 + $0x6b4] ss:$8 sps:$4 sm:$0xff]  }
  0xb9   :  { %3575 = vmatprep.subr.bf16.mxu1 %v5028_v24  ;;  %v5112_v24 = vld [vmem:[%s7299_s1 + $0x7b4] ss:$8 sps:$4 sm:$0xff]  }
  0xbb   :  { %3535 = vmatpush2.bf16.msra.mxu0 %v5023_v25  ;;  %v5107_v25 = vld [vmem:[%s7299_s1 + $0x6b0] ss:$8 sps:$4 sm:$0xff]  }
  0xbc   :  { %3576 = vmatpush2.bf16.msra.mxu1 %v5026_v26  ;;  %3536 = vmatprep.subr.bf16.mxu0 %v5031_v27  ;;  %v5110_v26 = vld [vmem:[%s7299_s1 + $0x7b0] ss:$8 sps:$4 sm:$0xff]   ;;  %v5115_v27 = vld [vmem:[%s7299_s1 + $0x6a4] ss:$8 sps:$4 sm:$0xff]  }
  0xbd   :  { %3577 = vmatprep.subr.bf16.mxu1 %v5034_v28  ;;  %v5118_v28 = vld [vmem:[%s7299_s1 + $0x7a4] ss:$8 sps:$4 sm:$0xff]  }
  0xbf   :  { %3537 = vmatpush2.bf16.msra.mxu0 %v5029_v31  ;;  %v5116_v31 = vld [vmem:[%s7299_s1 + $0x7a0] ss:$8 sps:$4 sm:$0xff]  }
  0xc0   :  { %3578 = vmatpush2.bf16.msra.mxu1 %v5032_v33  ;;  %3588 = vmatprep.subr.bf16.mxu0 %v5037_v34  ;;  %v5121_v33 = vld [vmem:[%s7299_s1 + $0x694] ss:$8 sps:$4 sm:$0xff]  }
  0xc1   :  { %3629 = vmatprep.subr.bf16.mxu1 %v5040_v35  ;;  %v5124_v34 = vld [vmem:[%s7299_s1 + $0x794] ss:$8 sps:$4 sm:$0xff]  }
  0xc2   :  { %3539 = vmatmul.mubr.bf16.vlgmr.msra.gmra.mxu0 %v626_v32  ;;  %v6376_v32 = vld [vmem:[%s7298_s0 + $0x10] sm:$0xff] }
  0xc3   :  { %3580 = vmatmul.mubr.bf16.vlgmr.msra.gmra.mxu1 %v648_v37  ;;  %3589 = vmatpush1.bf16.msra.mxu0 %v5035_v29  ;;  %v6386_v35 = vrot.slane %v6376_v32, %v5723_v49  ;;  %v5122_v37 = vld [vmem:[%s7299_s1 + $0x790] ss:$8 sps:$4 sm:$0xff]   ;;  %v5127_v29 = vld [vmem:[%s7299_s1 + $0x684] ss:$8 sps:$4 sm:$0xff]  }
  0xc4   :  { %3630 = vmatpush1.bf16.msra.mxu1 %v5038_v38  ;;  %3590 = vmatprep.subr.bf16.mxu0 %v5043_v39  ;;  %v5130_v38 = vld [vmem:[%s7299_s1 + $0x784] ss:$8 sps:$4 sm:$0xff]   ;;  %v5125_v39 = vld [vmem:[%s7299_s1 + $0x680] ss:$8 sps:$4 sm:$0xff]  }
  0xc5   :  { %3631 = vmatprep.subr.bf16.mxu1 %v5046_v40  ;;  %3620 = vmatprep.mubr.bf16.mxu0 %v647_v36  ;;  %v5119_v36 = vld [vmem:[%s7299_s1 + $0x690] ss:$8 sps:$4 sm:$0xff]   ;;  %v667_v40 = vcombine.high %v6386_v35, %v6386_v35 }
  0xc6   :  { %3661 = vmatprep.mubr.bf16.mxu1 %v651_v41  ;;  %v5128_v41 = vld [vmem:[%s7299_s1 + $0x780] ss:$8 sps:$4 sm:$0xff]  }
  0xc7   :  { %3591 = vmatpush1.bf16.msra.mxu0 %v5041_v43  ;;  %v538_v43 = vld [vmem:[%s7300_s2] sm:$0x3] }
  0xc8   :  { %3632 = vmatpush1.bf16.msra.mxu1 %v5044_v44  ;;  %3592 = vmatprep.subr.bf16.mxu0 %v5049_v45  ;;  %v633_v44 = vrot.slane %v6180_v6, %v5723_v49  ;;  %v542_v45 = vsub.s32 0, %v5705_v42  ;;  %v5132_v6 = vld [vmem:[%s7299_s1 + $0x870] ss:$8 sps:$4 sm:$0xff]  }
  0xc9   :  { %3633 = vmatprep.subr.bf16.mxu1 %v5052_v46  ;;  %v5134_v46 = vld [vmem:[%s7299_s1 + $0x874] ss:$8 sps:$4 sm:$0xff]  }
  0xcb   :  { %3593 = vmatpush1.bf16.msra.mxu0 %v5047_v47  ;;  %v5137_v47 = vld [vmem:[%s7299_s1 + $0x974] ss:$8 sps:$4 sm:$0xff]  }
  0xcc   :  { %3634 = vmatpush1.bf16.msra.mxu1 %v5050_v48  ;;  %3594 = vmatprep.subr.bf16.mxu0 %v5055_v50  ;;  %v546_v48 = vsub.s32 1, %v5705_v42  ;;  %v689_v50 = vrot.slane %v667_v40, %v5723_v49  ;;  %v5143_v42 = vld [vmem:[%s7299_s1 + $0x964] ss:$8 sps:$4 sm:$0xff]   ;;  %v5186_v40 = vld [vmem:[%s7299_s1 + $0x8e0] ss:$8 sps:$4 sm:$0xff]  }
  0xcd   :  { %3635 = vmatprep.subr.bf16.mxu1 %v5058_v51  ;;  %v649_v51 = vcombine.high %v633_v44, %v633_v44 }
  0xcf   :  { %3595 = vmatpush1.bf16.msra.mxu0 %v5053_v52  ;;  %v5135_v52 = vld [vmem:[%s7299_s1 + $0x970] ss:$8 sps:$4 sm:$0xff]  }
  0xd0   :  { %3636 = vmatpush1.bf16.msra.mxu1 %v5056_v53  ;;  %3596 = vmatprep.subr.bf16.mxu0 %v5061_v54  ;;  %v543_v53 = vrot.slane %v538_v43, %v542_v45  ;;  %v5140_v54 = vld [vmem:[%s7299_s1 + $0x864] ss:$8 sps:$4 sm:$0xff]   ;;  %v5192_v45 = vld [vmem:[%s7299_s1 + $0x8d0] ss:$8 sps:$4 sm:$0xff]  }
  0xd1   :  { %3637 = vmatprep.subr.bf16.mxu1 %v5064_v55  ;;  %v547_v55 = vrot.slane %v538_v43, %v546_v48  ;;  %v5194_v43 = vld [vmem:[%s7299_s1 + $0x8d4] ss:$8 sps:$4 sm:$0xff]   ;;  %v5203_v48 = vld [vmem:[%s7299_s1 + $0x9c4] ss:$8 sps:$4 sm:$0xff]  }
  0xd3   :  { %3597 = vmatpush1.bf16.msra.mxu0 %v5059_v56  ;;  %v699_v56 = vcombine.high %v689_v50, %v689_v50 }
  0xd4   :  { %3638 = vmatpush1.bf16.msra.mxu1 %v5062_v57  ;;  %3598 = vmatprep.subr.bf16.mxu0 %v5067_v58 }
  0xd5   :  { %3639 = vmatprep.subr.bf16.mxu1 %v5070_v59  ;;  %v5138_v59 = vld [vmem:[%s7299_s1 + $0x860] ss:$8 sps:$4 sm:$0xff]  }
  0xd7   :  { %3599 = vmatpush1.bf16.msra.mxu0 %v5065_v60  ;;  %v5141_v60 = vld [vmem:[%s7299_s1 + $0x960] ss:$8 sps:$4 sm:$0xff]  }
  0xd8   :  { %3640 = vmatpush1.bf16.msra.mxu1 %v5068_v61  ;;  %3600 = vmatprep.subr.bf16.mxu0 %v5073_v62 }
  0xd9   :  { %3641 = vmatprep.subr.bf16.mxu1 %v5076_v63 }
  0xdb   :  { %3601 = vmatpush1.bf16.msra.mxu0 %v5071_v0  ;;  %v5146_v0 = vld [vmem:[%s7299_s1 + $0x854] ss:$8 sps:$4 sm:$0xff]  }
  0xdc   :  { %3642 = vmatpush1.bf16.msra.mxu1 %v5074_v1  ;;  %3602 = vmatprep.subr.bf16.mxu0 %v5079_v2  ;;  %v5149_v1 = vld [vmem:[%s7299_s1 + $0x954] ss:$8 sps:$4 sm:$0xff]  }
  0xdd   :  { %3643 = vmatprep.subr.bf16.mxu1 %v5082_v3 }
  0xdf   :  { %3603 = vmatpush1.bf16.msra.mxu0 %v5077_v4  ;;  %v5144_v4 = vld [vmem:[%s7299_s1 + $0x850] ss:$8 sps:$4 sm:$0xff]  }
  0xe0   :  { %3644 = vmatpush1.bf16.msra.mxu1 %v5080_v5  ;;  %3604 = vmatprep.subr.bf16.mxu0 %v5085_v7  ;;  %v5147_v5 = vld [vmem:[%s7299_s1 + $0x950] ss:$8 sps:$4 sm:$0xff]  }
  0xe1   :  { %3645 = vmatprep.subr.bf16.mxu1 %v5088_v8 }
  0xe3   :  { %3605 = vmatpush2.bf16.msra.mxu0 %v5083_v9 }
  0xe4   :  { %3646 = vmatpush2.bf16.msra.mxu1 %v5086_v10  ;;  %3606 = vmatprep.subr.bf16.mxu0 %v5091_v11 }
  0xe5   :  { %3647 = vmatprep.subr.bf16.mxu1 %v5094_v12  ;;  %v5152_v12 = vld [vmem:[%s7299_s1 + $0x844] ss:$8 sps:$4 sm:$0xff]  }
  0xe7   :  { %3607 = vmatpush2.bf16.msra.mxu0 %v5089_v13  ;;  %v5155_v13 = vld [vmem:[%s7299_s1 + $0x944] ss:$8 sps:$4 sm:$0xff]  }
  0xe8   :  { %3648 = vmatpush2.bf16.msra.mxu1 %v5092_v14  ;;  %3608 = vmatprep.subr.bf16.mxu0 %v5097_v15  ;;  %v5150_v14 = vld [vmem:[%s7299_s1 + $0x840] ss:$8 sps:$4 sm:$0xff]  }
  0xe9   :  { %3649 = vmatprep.subr.bf16.mxu1 %v5100_v16  ;;  %v5153_v15 = vld [vmem:[%s7299_s1 + $0x940] ss:$8 sps:$4 sm:$0xff]   ;;  %v5158_v16 = vld [vmem:[%s7299_s1 + $0x834] ss:$8 sps:$4 sm:$0xff]  }
  0xeb   :  { %3609 = vmatpush2.bf16.msra.mxu0 %v5095_v17  ;;  %v5161_v17 = vld [vmem:[%s7299_s1 + $0x934] ss:$8 sps:$4 sm:$0xff]  }
  0xec   :  { %3650 = vmatpush2.bf16.msra.mxu1 %v5098_v18  ;;  %3610 = vmatprep.subr.bf16.mxu0 %v5103_v19  ;;  %v5156_v18 = vld [vmem:[%s7299_s1 + $0x830] ss:$8 sps:$4 sm:$0xff]  }
  0xed   :  { %3651 = vmatprep.subr.bf16.mxu1 %v5106_v20  ;;  %v5159_v19 = vld [vmem:[%s7299_s1 + $0x930] ss:$8 sps:$4 sm:$0xff]   ;;  %v5164_v20 = vld [vmem:[%s7299_s1 + $0x824] ss:$8 sps:$4 sm:$0xff]  }
  0xef   :  { %3611 = vmatpush2.bf16.msra.mxu0 %v5101_v21  ;;  %v5167_v21 = vld [vmem:[%s7299_s1 + $0x924] ss:$8 sps:$4 sm:$0xff]  }
  0xf0   :  { %3652 = vmatpush2.bf16.msra.mxu1 %v5104_v22  ;;  %3612 = vmatprep.subr.bf16.mxu0 %v5109_v23  ;;  %v5162_v22 = vld [vmem:[%s7299_s1 + $0x820] ss:$8 sps:$4 sm:$0xff]  }
  0xf1   :  { %3653 = vmatprep.subr.bf16.mxu1 %v5112_v24  ;;  %v5165_v23 = vld [vmem:[%s7299_s1 + $0x920] ss:$8 sps:$4 sm:$0xff]   ;;  %v5170_v24 = vld [vmem:[%s7299_s1 + $0x814] ss:$8 sps:$4 sm:$0xff]  }
  0xf3   :  { %3613 = vmatpush2.bf16.msra.mxu0 %v5107_v25  ;;  %v5173_v25 = vld [vmem:[%s7299_s1 + $0x914] ss:$8 sps:$4 sm:$0xff]  }
  0xf4   :  { %3654 = vmatpush2.bf16.msra.mxu1 %v5110_v26  ;;  %3614 = vmatprep.subr.bf16.mxu0 %v5115_v27  ;;  %v5168_v26 = vld [vmem:[%s7299_s1 + $0x810] ss:$8 sps:$4 sm:$0xff]  }
  0xf5   :  { %3655 = vmatprep.subr.bf16.mxu1 %v5118_v28  ;;  %v5171_v27 = vld [vmem:[%s7299_s1 + $0x910] ss:$8 sps:$4 sm:$0xff]   ;;  %v5176_v28 = vld [vmem:[%s7299_s1 + $0x804] ss:$8 sps:$4 sm:$0xff]  }
  0xf7   :  { %3615 = vmatpush2.bf16.msra.mxu0 %v5113_v30  ;;  %v5179_v30 = vld [vmem:[%s7299_s1 + $0x904] ss:$8 sps:$4 sm:$0xff]  }
  0xf8   :  { %3656 = vmatpush2.bf16.msra.mxu1 %v5116_v31  ;;  %3616 = vmatprep.subr.bf16.mxu0 %v5121_v33  ;;  %v5174_v31 = vld [vmem:[%s7299_s1 + $0x800] ss:$8 sps:$4 sm:$0xff]  }
  0xf9   :  { %3657 = vmatprep.subr.bf16.mxu1 %v5124_v34  ;;  %v5177_v33 = vld [vmem:[%s7299_s1 + $0x900] ss:$8 sps:$4 sm:$0xff]   ;;  %v5182_v34 = vld [vmem:[%s7299_s1 + $0x8f4] ss:$8 sps:$4 sm:$0xff]  }
  0xfb   :  { %3617 = vmatpush2.bf16.msra.mxu0 %v5119_v36  ;;  %v5185_v36 = vld [vmem:[%s7299_s1 + $0x9f4] ss:$8 sps:$4 sm:$0xff]  }
  0xfc   :  { %3658 = vmatpush2.bf16.msra.mxu1 %v5122_v37  ;;  %3618 = vmatprep.subr.bf16.mxu0 %v5127_v29  ;;  %v5180_v37 = vld [vmem:[%s7299_s1 + $0x8f0] ss:$8 sps:$4 sm:$0xff]  }
  0xfd   :  { %3659 = vmatprep.subr.bf16.mxu1 %v5130_v38  ;;  %v5183_v29 = vld [vmem:[%s7299_s1 + $0x9f0] ss:$8 sps:$4 sm:$0xff]   ;;  %v5188_v38 = vld [vmem:[%s7299_s1 + $0x8e4] ss:$8 sps:$4 sm:$0xff]  }
  0xff   :  { %3619 = vmatpush2.bf16.msra.mxu0 %v5125_v39  ;;  %v5191_v39 = vld [vmem:[%s7299_s1 + $0x9e4] ss:$8 sps:$4 sm:$0xff]  }
 0x100   :  { %3660 = vmatpush2.bf16.msra.mxu1 %v5128_v41  ;;  %3670 = vmatprep.subr.bf16.mxu0 %v5134_v46  ;;  %v5189_v41 = vld [vmem:[%s7299_s1 + $0x9e0] ss:$8 sps:$4 sm:$0xff]   ;;  %v5195_v46 = vld [vmem:[%s7299_s1 + $0x9d0] ss:$8 sps:$4 sm:$0xff]  }
 0x101   :  { %3711 = vmatprep.subr.bf16.mxu1 %v5137_v47  ;;  %v5200_v47 = vld [vmem:[%s7299_s1 + $0x8c4] ss:$8 sps:$4 sm:$0xff]  }
 0x102   :  { %v3376_v57 = vpop.f32.mrf.mxu0  ;;  %3621 = vmatmul.mubr.bf16.vlgmr.msra.gmra.mxu0 %v633_v44  ;;  %v5197_v44 = vld [vmem:[%s7299_s1 + $0x9d4] ss:$8 sps:$4 sm:$0xff]  }
 0x103   :  { %v3417_v58 = vpop.f32.mrf.mxu1  ;;  %3662 = vmatmul.mubr.bf16.vlgmr.msra.gmra.mxu1 %v649_v51  ;;  %v3377_v61 = vadd.f32 %v3376_v57, %v543_v53  ;;  %3671 = vmatpush1.bf16.msra.mxu0 %v5132_v6  ;;  %v5201_v51 = vld [vmem:[%s7299_s1 + $0x9c0] ss:$8 sps:$4 sm:$0xff]   ;;  %v5206_v6 = vld [vmem:[%s7299_s1 + $0x8b4] ss:$8 sps:$4 sm:$0xff]   ;;  %v5204_v53 = vld [vmem:[%s7299_s1 + $0x8b0] ss:$8 sps:$4 sm:$0xff]  }
 0x104   :  { %3712 = vmatpush1.bf16.msra.mxu1 %v5135_v52  ;;  %v3378_v62 = vpop.f32.mrf.mxu0  ;;  %3672 = vmatprep.subr.bf16.mxu0 %v5140_v54  ;;  %v5209_v52 = vld [vmem:[%s7299_s1 + $0x9b4] ss:$8 sps:$4 sm:$0xff]   ;;  %v5207_v54 = vld [vmem:[%s7299_s1 + $0x9b0] ss:$8 sps:$4 sm:$0xff]   ;;  %v5210_v57 = vld [vmem:[%s7299_s1 + $0x8a0] ss:$8 sps:$4 sm:$0xff]  }
 0x105   :  { %v3419_v63 = vpop.f32.mrf.mxu1  ;;  %3713 = vmatprep.subr.bf16.mxu1 %v5143_v42  ;;  %v6446_v2 = vadd.f32 %v3417_v58, %v3377_v61  ;;  %v3379_v3 = vadd.f32 %v3378_v62, %v547_v55  ;;  %3702 = vmatprep.mubr.bf16.mxu0 %v689_v50  ;;  %v5198_v50 = vld [vmem:[%s7299_s1 + $0x8c0] ss:$8 sps:$4 sm:$0xff]   ;;  %v5212_v42 = vld [vmem:[%s7299_s1 + $0x8a4] ss:$8 sps:$4 sm:$0xff]   ;;  %v5216_v61 = vld [vmem:[%s7299_s1 + $0x890] ss:$8 sps:$4 sm:$0xff]  }
 0x106   :  { %3743 = vmatprep.mubr.bf16.mxu1 %v699_v56  ;;  %v3380_v7 = vpop.f32.mrf.mxu0  ;;  %v5215_v55 = vld [vmem:[%s7299_s1 + $0x9a4] ss:$8 sps:$4 sm:$0xff]   ;;  %v652_v56 = vcombine.high %v6376_v32, %v6376_v32  ;;  %v5213_v58 = vld [vmem:[%s7299_s1 + $0x9a0] ss:$8 sps:$4 sm:$0xff]   ;;  %v5221_v32 = vld [vmem:[%s7299_s1 + $0x994] ss:$8 sps:$4 sm:$0xff]  }
 0x107   :  { %v3421_v8 = vpop.f32.mrf.mxu1  ;;  %v6454_v9 = vadd.f32 %v3419_v63, %v3379_v3  ;;  %3673 = vmatpush1.bf16.msra.mxu0 %v5138_v59  ;;  %v5218_v59 = vld [vmem:[%s7299_s1 + $0x894] ss:$8 sps:$4 sm:$0xff]   ;;  %v5219_v62 = vld [vmem:[%s7299_s1 + $0x990] ss:$8 sps:$4 sm:$0xff]   ;;  %v5224_v63 = vld [vmem:[%s7299_s1 + $0x884] ss:$8 sps:$4 sm:$0xff]   ;;  %v675_v3 = vrot.slane %v6386_v35, %v5723_v49 }
 0x108   :  { %3714 = vmatpush1.bf16.msra.mxu1 %v5141_v60  ;;  %v3381_v10 = vpop.f32.mrf.mxu0  ;;  %3674 = vmatprep.subr.bf16.mxu0 %v5146_v0  ;;  %v6597_v60 = vrot.slane %v652_v56, %v5723_v49  ;;  %v5227_v0 = vld [vmem:[%s7299_s1 + $0x984] ss:$8 sps:$4 sm:$0xff]   ;;  %v5230_v7 = vld [vmem:[%s7299_s1 + $0xa74] ss:$8 sps:$4 sm:$0xff]   ;;  %v5228_v8 = vld [vmem:[%s7299_s1 + $0xa70] ss:$8 sps:$4 sm:$0xff]  }
 0x109   :  { %v3422_v11 = vpop.f32.mrf.mxu1  ;;  %3715 = vmatprep.subr.bf16.mxu1 %v5149_v1  ;;  %v5233_v35 = vld [vmem:[%s7299_s1 + $0xb74] ss:$8 sps:$4 sm:$0xff]   ;;  %v5231_v10 = vld [vmem:[%s7299_s1 + $0xb70] ss:$8 sps:$4 sm:$0xff]  }
 0x10a   :  { %v668_v1 = vcombine.high %v6597_v60, %v6597_v60 }
 0x10b   :  { %3675 = vmatpush1.bf16.msra.mxu0 %v5144_v4  ;;  %v5222_v4 = vld [vmem:[%s7299_s1 + $0x880] ss:$8 sps:$4 sm:$0xff]  }
 0x10c   :  { %3716 = vmatpush1.bf16.msra.mxu1 %v5147_v5  ;;  %3676 = vmatprep.subr.bf16.mxu0 %v5152_v12  ;;  %v5225_v5 = vld [vmem:[%s7299_s1 + $0x980] ss:$8 sps:$4 sm:$0xff]   ;;  %v696_v11 = vrot.slane %v668_v1, %v5723_v49  ;;  %v697_v12 = vcombine.high %v675_v3, %v675_v3 }
 0x10d   :  { %3717 = vmatprep.subr.bf16.mxu1 %v5155_v13  ;;  %v5236_v13 = vld [vmem:[%s7299_s1 + $0xa64] ss:$8 sps:$4 sm:$0xff]  }
 0x10f   :  { %3677 = vmatpush1.bf16.msra.mxu0 %v5150_v14  ;;  %v5239_v14 = vld [vmem:[%s7299_s1 + $0xb64] ss:$8 sps:$4 sm:$0xff]  }
 0x110   :  { %3718 = vmatpush1.bf16.msra.mxu1 %v5153_v15  ;;  %3678 = vmatprep.subr.bf16.mxu0 %v5158_v16  ;;  %v5234_v15 = vld [vmem:[%s7299_s1 + $0xa60] ss:$8 sps:$4 sm:$0xff]  }
 0x111   :  { %3719 = vmatprep.subr.bf16.mxu1 %v5161_v17  ;;  %v5237_v16 = vld [vmem:[%s7299_s1 + $0xb60] ss:$8 sps:$4 sm:$0xff]   ;;  %v700_v17 = vcombine.high %v696_v11, %v696_v11 }
 0x113   :  { %3679 = vmatpush1.bf16.msra.mxu0 %v5156_v18 }
 0x114   :  { %3720 = vmatpush1.bf16.msra.mxu1 %v5159_v19  ;;  %3680 = vmatprep.subr.bf16.mxu0 %v5164_v20 }
 0x115   :  { %3721 = vmatprep.subr.bf16.mxu1 %v5167_v21 }
 0x117   :  { %3681 = vmatpush1.bf16.msra.mxu0 %v5162_v22 }
 0x118   :  { %3722 = vmatpush1.bf16.msra.mxu1 %v5165_v23  ;;  %3682 = vmatprep.subr.bf16.mxu0 %v5170_v24  ;;  %v5242_v23 = vld [vmem:[%s7299_s1 + $0xa54] ss:$8 sps:$4 sm:$0xff]  }
 0x119   :  { %3723 = vmatprep.subr.bf16.mxu1 %v5173_v25  ;;  %v5245_v24 = vld [vmem:[%s7299_s1 + $0xb54] ss:$8 sps:$4 sm:$0xff]  }
 0x11b   :  { %3683 = vmatpush1.bf16.msra.mxu0 %v5168_v26 }
 0x11c   :  { %3724 = vmatpush1.bf16.msra.mxu1 %v5171_v27  ;;  %3684 = vmatprep.subr.bf16.mxu0 %v5176_v28  ;;  %v5243_v27 = vld [vmem:[%s7299_s1 + $0xb50] ss:$8 sps:$4 sm:$0xff]  }
 0x11d   :  { %3725 = vmatprep.subr.bf16.mxu1 %v5179_v30 }
 0x11f   :  { %3685 = vmatpush1.bf16.msra.mxu0 %v5174_v31 }
 0x120   :  { %3726 = vmatpush1.bf16.msra.mxu1 %v5177_v33  ;;  %3686 = vmatprep.subr.bf16.mxu0 %v5182_v34 }
 0x121   :  { %3727 = vmatprep.subr.bf16.mxu1 %v5185_v36  ;;  %v5251_v36 = vld [vmem:[%s7299_s1 + $0xb44] ss:$8 sps:$4 sm:$0xff]  }
 0x123   :  { %3687 = vmatpush2.bf16.msra.mxu0 %v5180_v37  ;;  %v5246_v37 = vld [vmem:[%s7299_s1 + $0xa40] ss:$8 sps:$4 sm:$0xff]  }
 0x124   :  { %3728 = vmatpush2.bf16.msra.mxu1 %v5183_v29  ;;  %3688 = vmatprep.subr.bf16.mxu0 %v5188_v38  ;;  %v5249_v29 = vld [vmem:[%s7299_s1 + $0xb40] ss:$8 sps:$4 sm:$0xff]   ;;  %v5254_v38 = vld [vmem:[%s7299_s1 + $0xa34] ss:$8 sps:$4 sm:$0xff]  }
 0x125   :  { %3729 = vmatprep.subr.bf16.mxu1 %v5191_v39  ;;  %v5257_v39 = vld [vmem:[%s7299_s1 + $0xb34] ss:$8 sps:$4 sm:$0xff]  }
 0x127   :  { %3689 = vmatpush2.bf16.msra.mxu0 %v5186_v40  ;;  %v5252_v40 = vld [vmem:[%s7299_s1 + $0xa30] ss:$8 sps:$4 sm:$0xff]  }
 0x128   :  { %3730 = vmatpush2.bf16.msra.mxu1 %v5189_v41  ;;  %3690 = vmatprep.subr.bf16.mxu0 %v5194_v43  ;;  %v5255_v41 = vld [vmem:[%s7299_s1 + $0xb30] ss:$8 sps:$4 sm:$0xff]   ;;  %v5260_v43 = vld [vmem:[%s7299_s1 + $0xa24] ss:$8 sps:$4 sm:$0xff]  }
 0x129   :  { %3731 = vmatprep.subr.bf16.mxu1 %v5197_v44  ;;  %v5263_v44 = vld [vmem:[%s7299_s1 + $0xb24] ss:$8 sps:$4 sm:$0xff]  }
 0x12b   :  { %3691 = vmatpush2.bf16.msra.mxu0 %v5192_v45 }
 0x12c   :  { %3732 = vmatpush2.bf16.msra.mxu1 %v5195_v46  ;;  %3692 = vmatprep.subr.bf16.mxu0 %v5200_v47 }
 0x12d   :  { %3733 = vmatprep.subr.bf16.mxu1 %v5203_v48 }
 0x12f   :  { %3693 = vmatpush2.bf16.msra.mxu0 %v5198_v50 }
 0x130   :  { %3734 = vmatpush2.bf16.msra.mxu1 %v5201_v51  ;;  %3694 = vmatprep.subr.bf16.mxu0 %v5206_v6 }
 0x131   :  { %3735 = vmatprep.subr.bf16.mxu1 %v5209_v52 }
 0x133   :  { %3695 = vmatpush2.bf16.msra.mxu0 %v5204_v53 }
 0x134   :  { %3736 = vmatpush2.bf16.msra.mxu1 %v5207_v54  ;;  %3696 = vmatprep.subr.bf16.mxu0 %v5212_v42 }
 0x135   :  { %3737 = vmatprep.subr.bf16.mxu1 %v5215_v55 }
 0x137   :  { %3697 = vmatpush2.bf16.msra.mxu0 %v5210_v57 }
 0x138   :  { %3738 = vmatpush2.bf16.msra.mxu1 %v5213_v58  ;;  %3698 = vmatprep.subr.bf16.mxu0 %v5218_v59 }
 0x139   :  { %3739 = vmatprep.subr.bf16.mxu1 %v5221_v32 }
 0x13b   :  { %3699 = vmatpush2.bf16.msra.mxu0 %v5216_v61 }
 0x13c   :  { %3740 = vmatpush2.bf16.msra.mxu1 %v5219_v62  ;;  %3700 = vmatprep.subr.bf16.mxu0 %v5224_v63 }
 0x13d   :  { %3741 = vmatprep.subr.bf16.mxu1 %v5227_v0 }
 0x13f   :  { %3701 = vmatpush2.bf16.msra.mxu0 %v5222_v4 }
 0x140   :  { %3742 = vmatpush2.bf16.msra.mxu1 %v5225_v5  ;;  %3752 = vmatprep.subr.bf16.mxu0 %v5230_v7 }
 0x141   :  { %3793 = vmatprep.subr.bf16.mxu1 %v5233_v35 }
 0x142   :  { %v3458_v18 = vpop.f32.mrf.mxu0  ;;  %3703 = vmatmul.mubr.bf16.vlgmr.msra.gmra.mxu0 %v675_v3 }
 0x143   :  { %v3499_v19 = vpop.f32.mrf.mxu1  ;;  %3744 = vmatmul.mubr.bf16.vlgmr.msra.gmra.mxu1 %v697_v12  ;;  %v3459_v20 = vadd.f32 %v3458_v18, %v6446_v2  ;;  %3753 = vmatpush1.bf16.msra.mxu0 %v5228_v8  ;;  %v5240_v2 = vld [vmem:[%s7299_s1 + $0xa50] ss:$8 sps:$4 sm:$0xff]  }
 0x144   :  { %3794 = vmatpush1.bf16.msra.mxu1 %v5231_v10  ;;  %v3460_v21 = vpop.f32.mrf.mxu0  ;;  %3754 = vmatprep.subr.bf16.mxu0 %v5236_v13 }
 0x145   :  { %v3501_v22 = vpop.f32.mrf.mxu1  ;;  %3795 = vmatprep.subr.bf16.mxu1 %v5239_v14  ;;  %v6653_v25 = vadd.f32 %v3499_v19, %v3459_v20  ;;  %v3461_v26 = vadd.f32 %v3460_v21, %v6454_v9  ;;  %3784 = vmatprep.mubr.bf16.mxu0 %v696_v11  ;;  %v5248_v9 = vld [vmem:[%s7299_s1 + $0xa44] ss:$8 sps:$4 sm:$0xff]  }
 0x146   :  { %3825 = vmatprep.mubr.bf16.mxu1 %v700_v17  ;;  %v3462_v28 = vpop.f32.mrf.mxu0 }
 0x147   :  { %v3503_v30 = vpop.f32.mrf.mxu1  ;;  %v6662_v31 = vadd.f32 %v3501_v22, %v3461_v26  ;;  %3755 = vmatpush1.bf16.msra.mxu0 %v5234_v15 }
 0x148   :  { %3796 = vmatpush1.bf16.msra.mxu1 %v5237_v16  ;;  %v3463_v33 = vpop.f32.mrf.mxu0  ;;  %3756 = vmatprep.subr.bf16.mxu0 %v5242_v23 }
 0x149   :  { %v3504_v34 = vpop.f32.mrf.mxu1  ;;  %3797 = vmatprep.subr.bf16.mxu1 %v5245_v24 }
 0x14b   :  { %3757 = vmatpush1.bf16.msra.mxu0 %v5240_v2 }
 0x14c   :  { %3798 = vmatpush1.bf16.msra.mxu1 %v5243_v27  ;;  %3758 = vmatprep.subr.bf16.mxu0 %v5248_v9 }
 0x14d   :  { %3799 = vmatprep.subr.bf16.mxu1 %v5251_v36 }
 0x14f   :  { %3759 = vmatpush1.bf16.msra.mxu0 %v5246_v37 }
 0x150   :  { %3800 = vmatpush1.bf16.msra.mxu1 %v5249_v29  ;;  %3760 = vmatprep.subr.bf16.mxu0 %v5254_v38 }
 0x151   :  { %3801 = vmatprep.subr.bf16.mxu1 %v5257_v39 }
 0x152   :  { %10 = vsyncpa [#allocation3], 0  ;;  %v5258_v45 = vld [vmem:[%s7299_s1 + $0xa20] ss:$8 sps:$4 sm:$0xff]   ;;  %v5266_v47 = vld [vmem:[%s7299_s1 + $0xa14] ss:$8 sps:$4 sm:$0xff]   ;;  %v682_v26 = vrot.slane %v6597_v60, %v5723_v49 }
 0x153   :  { %3761 = vmatpush1.bf16.msra.mxu0 %v5252_v40  ;;  %v5261_v46 = vld [vmem:[%s7299_s1 + $0xb20] ss:$8 sps:$4 sm:$0xff]   ;;  %v5269_v48 = vld [vmem:[%s7299_s1 + $0xb14] ss:$8 sps:$4 sm:$0xff]   ;;  %v5264_v50 = vld [vmem:[%s7299_s1 + $0xa10] ss:$8 sps:$4 sm:$0xff]  }
 0x154   :  { %3802 = vmatpush1.bf16.msra.mxu1 %v5255_v41  ;;  %3762 = vmatprep.subr.bf16.mxu0 %v5260_v43  ;;  %v5267_v51 = vld [vmem:[%s7299_s1 + $0xb10] ss:$8 sps:$4 sm:$0xff]   ;;  %v5272_v6 = vld [vmem:[%s7299_s1 + $0xa04] ss:$8 sps:$4 sm:$0xff]   ;;  %v5270_v53 = vld [vmem:[%s7299_s1 + $0xa00] ss:$8 sps:$4 sm:$0xff]   ;;  %v698_v33 = vcombine.high %v682_v26, %v682_v26 }
 0x155   :  { %3803 = vmatprep.subr.bf16.mxu1 %v5263_v44  ;;  %v5275_v52 = vld [vmem:[%s7299_s1 + $0xb04] ss:$8 sps:$4 sm:$0xff]   ;;  %v5273_v54 = vld [vmem:[%s7299_s1 + $0xb00] ss:$8 sps:$4 sm:$0xff]   ;;  %v5278_v42 = vld [vmem:[%s7299_s1 + $0xaf4] ss:$8 sps:$4 sm:$0xff]  }
 0x156   :  { %v5281_v55 = vld [vmem:[%s7299_s1 + $0xbf4] ss:$8 sps:$4 sm:$0xff]   ;;  %v5276_v56 = vld [vmem:[%s7299_s1 + $0xaf0] ss:$8 sps:$4 sm:$0xff]   ;;  %v5284_v58 = vld [vmem:[%s7299_s1 + $0xae4] ss:$8 sps:$4 sm:$0xff]  }
 0x157   :  { %3763 = vmatpush1.bf16.msra.mxu0 %v5258_v45  ;;  %v5279_v57 = vld [vmem:[%s7299_s1 + $0xbf0] ss:$8 sps:$4 sm:$0xff]   ;;  %v5287_v59 = vld [vmem:[%s7299_s1 + $0xbe4] ss:$8 sps:$4 sm:$0xff]   ;;  %v5282_v32 = vld [vmem:[%s7299_s1 + $0xae0] ss:$8 sps:$4 sm:$0xff]  }
 0x158   :  { %3804 = vmatpush1.bf16.msra.mxu1 %v5261_v46  ;;  %3764 = vmatprep.subr.bf16.mxu0 %v5266_v47  ;;  %v5285_v61 = vld [vmem:[%s7299_s1 + $0xbe0] ss:$8 sps:$4 sm:$0xff]   ;;  %v5290_v62 = vld [vmem:[%s7299_s1 + $0xad4] ss:$8 sps:$4 sm:$0xff]   ;;  %v5288_v0 = vld [vmem:[%s7299_s1 + $0xad0] ss:$8 sps:$4 sm:$0xff]  }
 0x159   :  { %3805 = vmatprep.subr.bf16.mxu1 %v5269_v48  ;;  %v5293_v63 = vld [vmem:[%s7299_s1 + $0xbd4] ss:$8 sps:$4 sm:$0xff]   ;;  %v5291_v1 = vld [vmem:[%s7299_s1 + $0xbd0] ss:$8 sps:$4 sm:$0xff]   ;;  %v5296_v3 = vld [vmem:[%s7299_s1 + $0xac4] ss:$8 sps:$4 sm:$0xff]  }
 0x15a   :  { %v5299_v4 = vld [vmem:[%s7299_s1 + $0xbc4] ss:$8 sps:$4 sm:$0xff]   ;;  %v5294_v5 = vld [vmem:[%s7299_s1 + $0xac0] ss:$8 sps:$4 sm:$0xff]   ;;  %v5302_v35 = vld [vmem:[%s7299_s1 + $0xab4] ss:$8 sps:$4 sm:$0xff]  }
 0x15b   :  { %3765 = vmatpush1.bf16.msra.mxu0 %v5264_v50  ;;  %v5297_v7 = vld [vmem:[%s7299_s1 + $0xbc0] ss:$8 sps:$4 sm:$0xff]   ;;  %v5305_v8 = vld [vmem:[%s7299_s1 + $0xbb4] ss:$8 sps:$4 sm:$0xff]   ;;  %v5300_v10 = vld [vmem:[%s7299_s1 + $0xab0] ss:$8 sps:$4 sm:$0xff]  }
 0x15c   :  { %3806 = vmatpush1.bf16.msra.mxu1 %v5267_v51  ;;  %3766 = vmatprep.subr.bf16.mxu0 %v5272_v6  ;;  %v5303_v11 = vld [vmem:[%s7299_s1 + $0xbb0] ss:$8 sps:$4 sm:$0xff]   ;;  %v5308_v12 = vld [vmem:[%s7299_s1 + $0xaa4] ss:$8 sps:$4 sm:$0xff]   ;;  %v5306_v15 = vld [vmem:[%s7299_s1 + $0xaa0] ss:$8 sps:$4 sm:$0xff]  }
 0x15d   :  { %3807 = vmatprep.subr.bf16.mxu1 %v5275_v52  ;;  %v5311_v13 = vld [vmem:[%s7299_s1 + $0xba4] ss:$8 sps:$4 sm:$0xff]   ;;  %v6793_v14 = vld [vmem:[%s7298_s0 + $0x18] sm:$0xff]  ;;  %v5309_v16 = vld [vmem:[%s7299_s1 + $0xba0] ss:$8 sps:$4 sm:$0xff]   ;;  %s5557_s25 = smov [#allocation2]  }
 0x15e   :  { %v5314_v17 = vld [vmem:[%s7299_s1 + $0xa94] ss:$8 sps:$4 sm:$0xff]   ;;  %v6809_v19 = vrot.slane %v6793_v14, %v5723_v49  ;;  %v5312_v20 = vld [vmem:[%s7299_s1 + $0xa90] ss:$8 sps:$4 sm:$0xff]   ;;  %v5320_v22 = vld [vmem:[%s7299_s1 + $0xa84] ss:$8 sps:$4 sm:$0xff]  }
 0x15f   :  { %3767 = vmatpush1.bf16.msra.mxu0 %v5270_v53  ;;  %v5317_v18 = vld [vmem:[%s7299_s1 + $0xb94] ss:$8 sps:$4 sm:$0xff]   ;;  %v5315_v21 = vld [vmem:[%s7299_s1 + $0xb90] ss:$8 sps:$4 sm:$0xff]   ;;  %v5323_v23 = vld [vmem:[%s7299_s1 + $0xb84] ss:$8 sps:$4 sm:$0xff]  }
 0x160   :  { %3808 = vmatpush1.bf16.msra.mxu1 %v5273_v54  ;;  %3768 = vmatprep.subr.bf16.mxu0 %v5278_v42  ;;  %v716_v24 = vcombine.high %v6809_v19, %v6809_v19  ;;  %v5318_v2 = vld [vmem:[%s7299_s1 + $0xa80] ss:$8 sps:$4 sm:$0xff]   ;;  %v5327_v28 = vld [vmem:[%s7299_s1 + $0xc74] ss:$8 sps:$4 sm:$0xff]   ;;  %v5325_v34 = vld [vmem:[%s7299_s1 + $0xc70] ss:$8 sps:$4 sm:$0xff]  }
 0x161   :  { %3809 = vmatprep.subr.bf16.mxu1 %v5281_v55  ;;  %v5321_v27 = vld [vmem:[%s7299_s1 + $0xb80] ss:$8 sps:$4 sm:$0xff]   ;;  %v5330_v60 = vld [vmem:[%s7299_s1 + $0xd74] ss:$8 sps:$4 sm:$0xff]   ;;  %v5328_v9 = vld [vmem:[%s7299_s1 + $0xd70] ss:$8 sps:$4 sm:$0xff]  }
 0x162   :  { %v738_v30 = vrot.slane %v716_v24, %v5723_v49  ;;  %v5333_v36 = vld [vmem:[%s7299_s1 + $0xc64] ss:$8 sps:$4 sm:$0xff]   ;;  %v5331_v41 = vld [vmem:[%s7299_s1 + $0xc60] ss:$8 sps:$4 sm:$0xff]   ;;  %v5339_v46 = vld [vmem:[%s7299_s1 + $0xc54] ss:$8 sps:$4 sm:$0xff]  }
 0x163   :  { %3769 = vmatpush2.bf16.msra.mxu0 %v5276_v56  ;;  %v5336_v37 = vld [vmem:[%s7299_s1 + $0xd64] ss:$8 sps:$4 sm:$0xff]   ;;  %v5334_v43 = vld [vmem:[%s7299_s1 + $0xd60] ss:$8 sps:$4 sm:$0xff]   ;;  %v5337_v52 = vld [vmem:[%s7299_s1 + $0xc50] ss:$8 sps:$4 sm:$0xff]  }
 0x164   :  { %3810 = vmatpush2.bf16.msra.mxu1 %v5279_v57  ;;  %3770 = vmatprep.subr.bf16.mxu0 %v5284_v58  ;;  %v748_v29 = vcombine.high %v738_v30, %v738_v30  ;;  %v5340_v53 = vld [vmem:[%s7299_s1 + $0xd50] ss:$8 sps:$4 sm:$0xff]   ;;  %v5348_v55 = vld [vmem:[%s7299_s1 + $0xd44] ss:$8 sps:$4 sm:$0xff]   ;;  %v5343_v56 = vld [vmem:[%s7299_s1 + $0xc40] ss:$8 sps:$4 sm:$0xff]  }
 0x165   :  { %3811 = vmatprep.subr.bf16.mxu1 %v5287_v59  ;;  %v5346_v57 = vld [vmem:[%s7299_s1 + $0xd40] ss:$8 sps:$4 sm:$0xff]   ;;  %v5351_v58 = vld [vmem:[%s7299_s1 + $0xc34] ss:$8 sps:$4 sm:$0xff]   ;;  %v5385_v24 = vld [vmem:[%s7299_s1 + $0xcd0] ss:$8 sps:$4 sm:$0xff]  }
 0x166   :  { %v5354_v59 = vld [vmem:[%s7299_s1 + $0xd34] ss:$8 sps:$4 sm:$0xff]   ;;  %s4185_s26 = sshll.u32 %s5557_s25, 4  ;;  %vm4177_vm0 = vcmask 41984   ;;  %s4186_s26 = int_to_ptr.vmem [resolvable:$true] %s4185_s26 }
 0x167   :  { %3771 = vmatpush2.bf16.msra.mxu0 %v5282_v32  ;;  %v5349_v32 = vld [vmem:[%s7299_s1 + $0xc30] ss:$8 sps:$4 sm:$0xff]   ;;  %s5534_s27 = scalar_lea.vmem %s4186_s26, 32  ;;  %p5539_p1 = scmp.lt.s32.totalorder %s4186_s26, %s4186_s26 }
 0x168   :  { %3812 = vmatpush2.bf16.msra.mxu1 %v5285_v61  ;;  %3772 = vmatprep.subr.bf16.mxu0 %v5290_v62  ;;  %v5352_v61 = vld [vmem:[%s7299_s1 + $0xd30] ss:$8 sps:$4 sm:$0xff]   ;;  %v5357_v62 = vld [vmem:[%s7299_s1 + $0xc24] ss:$8 sps:$4 sm:$0xff]   ;;  %p5535_p0 = scmp.ne.s32.totalorder %s4186_s26, %s5534_s27  ;;  %p5540_p2 = scmp.lt.s32.totalorder %s5534_s27, %s5534_s27 }
 0x169   :  { %3813 = vmatprep.subr.bf16.mxu1 %v5293_v63  ;;  %v5360_v63 = vld [vmem:[%s7299_s1 + $0xd24] ss:$8 sps:$4 sm:$0xff]  }
 0x16a   :  { %p5541_p3 = por %p5540_p2, %p5539_p1 }
 0x16b   :  { %3773 = vmatpush2.bf16.msra.mxu0 %v5288_v0  ;;  %v5355_v0 = vld [vmem:[%s7299_s1 + $0xc20] ss:$8 sps:$4 sm:$0xff]  }
 0x16c   :  { %3814 = vmatpush2.bf16.msra.mxu1 %v5291_v1  ;;  %3774 = vmatprep.subr.bf16.mxu0 %v5296_v3  ;;  %v5358_v1 = vld [vmem:[%s7299_s1 + $0xd20] ss:$8 sps:$4 sm:$0xff]   ;;  %v5363_v3 = vld [vmem:[%s7299_s1 + $0xc14] ss:$8 sps:$4 sm:$0xff]   ;;  %p5542_p4 = pnand %p5541_p3, %p5535_p0 }
 0x16d   :  { %3815 = vmatprep.subr.bf16.mxu1 %v5299_v4  ;;  %v5366_v4 = vld [vmem:[%s7299_s1 + $0xd14] ss:$8 sps:$4 sm:$0xff]  }
 0x16f   :  { %3775 = vmatpush2.bf16.msra.mxu0 %v5294_v5  ;;  %v5361_v5 = vld [vmem:[%s7299_s1 + $0xc10] ss:$8 sps:$4 sm:$0xff]  }
 0x170   :  { %3816 = vmatpush2.bf16.msra.mxu1 %v5297_v7  ;;  %3776 = vmatprep.subr.bf16.mxu0 %v5302_v35  ;;  %v5364_v7 = vld [vmem:[%s7299_s1 + $0xd10] ss:$8 sps:$4 sm:$0xff]   ;;  %v5369_v35 = vld [vmem:[%s7299_s1 + $0xc04] ss:$8 sps:$4 sm:$0xff]  }
 0x171   :  { %3817 = vmatprep.subr.bf16.mxu1 %v5305_v8  ;;  %v5372_v8 = vld [vmem:[%s7299_s1 + $0xd04] ss:$8 sps:$4 sm:$0xff]  }
 0x173   :  { %3777 = vmatpush2.bf16.msra.mxu0 %v5300_v10  ;;  %v5367_v10 = vld [vmem:[%s7299_s1 + $0xc00] ss:$8 sps:$4 sm:$0xff]  }
 0x174   :  { %3818 = vmatpush2.bf16.msra.mxu1 %v5303_v11  ;;  %3778 = vmatprep.subr.bf16.mxu0 %v5308_v12  ;;  %v5370_v11 = vld [vmem:[%s7299_s1 + $0xd00] ss:$8 sps:$4 sm:$0xff]   ;;  %v5375_v12 = vld [vmem:[%s7299_s1 + $0xcf4] ss:$8 sps:$4 sm:$0xff]  }
 0x175   :  { %3819 = vmatprep.subr.bf16.mxu1 %v5311_v13  ;;  %v5378_v13 = vld [vmem:[%s7299_s1 + $0xdf4] ss:$8 sps:$4 sm:$0xff]  }
 0x177   :  { %3779 = vmatpush2.bf16.msra.mxu0 %v5306_v15  ;;  %v5373_v15 = vld [vmem:[%s7299_s1 + $0xcf0] ss:$8 sps:$4 sm:$0xff]  }
 0x178   :  { %3820 = vmatpush2.bf16.msra.mxu1 %v5309_v16  ;;  %3780 = vmatprep.subr.bf16.mxu0 %v5314_v17  ;;  %v5376_v16 = vld [vmem:[%s7299_s1 + $0xdf0] ss:$8 sps:$4 sm:$0xff]   ;;  %v5381_v17 = vld [vmem:[%s7299_s1 + $0xce4] ss:$8 sps:$4 sm:$0xff]  }
 0x179   :  { %3821 = vmatprep.subr.bf16.mxu1 %v5317_v18  ;;  %v5384_v18 = vld [vmem:[%s7299_s1 + $0xde4] ss:$8 sps:$4 sm:$0xff]  }
 0x17b   :  { %3781 = vmatpush2.bf16.msra.mxu0 %v5312_v20  ;;  %v5379_v20 = vld [vmem:[%s7299_s1 + $0xce0] ss:$8 sps:$4 sm:$0xff]  }
 0x17c   :  { %3822 = vmatpush2.bf16.msra.mxu1 %v5315_v21  ;;  %3782 = vmatprep.subr.bf16.mxu0 %v5320_v22  ;;  %v5382_v21 = vld [vmem:[%s7299_s1 + $0xde0] ss:$8 sps:$4 sm:$0xff]   ;;  %v5387_v22 = vld [vmem:[%s7299_s1 + $0xcd4] ss:$8 sps:$4 sm:$0xff]  }
 0x17d   :  { %3823 = vmatprep.subr.bf16.mxu1 %v5323_v23  ;;  %v5390_v23 = vld [vmem:[%s7299_s1 + $0xdd4] ss:$8 sps:$4 sm:$0xff]  }
 0x17f   :  { %3783 = vmatpush2.bf16.msra.mxu0 %v5318_v2  ;;  %v5393_v2 = vld [vmem:[%s7299_s1 + $0xcc4] ss:$8 sps:$4 sm:$0xff]  }
 0x180   :  { %3824 = vmatpush2.bf16.msra.mxu1 %v5321_v27  ;;  %3834 = vmatprep.subr.bf16.mxu0 %v5327_v28  ;;  %v5396_v27 = vld [vmem:[%s7299_s1 + $0xdc4] ss:$8 sps:$4 sm:$0xff]   ;;  %v5391_v28 = vld [vmem:[%s7299_s1 + $0xcc0] ss:$8 sps:$4 sm:$0xff]  }
 0x181   :  { %3875 = vmatprep.subr.bf16.mxu1 %v5330_v60  ;;  %v5394_v60 = vld [vmem:[%s7299_s1 + $0xdc0] ss:$8 sps:$4 sm:$0xff]  }
 0x182   :  { %v3540_v38 = vpop.f32.mrf.mxu0  ;;  %3785 = vmatmul.mubr.bf16.vlgmr.msra.gmra.mxu0 %v682_v26  ;;  %v5388_v26 = vld [vmem:[%s7299_s1 + $0xdd0] ss:$8 sps:$4 sm:$0xff]  }
 0x183   :  { %v3581_v39 = vpop.f32.mrf.mxu1  ;;  %3826 = vmatmul.mubr.bf16.vlgmr.msra.gmra.mxu1 %v698_v33  ;;  %v3541_v40 = vadd.f32 %v3540_v38, %v6653_v25  ;;  %3835 = vmatpush1.bf16.msra.mxu0 %v5325_v34  ;;  %v5342_v25 = vld [vmem:[%s7299_s1 + $0xd54] ss:$8 sps:$4 sm:$0xff]   ;;  %v5397_v34 = vld [vmem:[%s7299_s1 + $0xcb0] ss:$8 sps:$4 sm:$0xff]   ;;  %v5403_v38 = vld [vmem:[%s7299_s1 + $0xca0] ss:$8 sps:$4 sm:$0xff]  }
 0x184   :  { %3876 = vmatpush1.bf16.msra.mxu1 %v5328_v9  ;;  %v3542_v44 = vpop.f32.mrf.mxu0  ;;  %3836 = vmatprep.subr.bf16.mxu0 %v5333_v36  ;;  %v5402_v33 = vld [vmem:[%s7299_s1 + $0xdb4] ss:$8 sps:$4 sm:$0xff]   ;;  %v5400_v9 = vld [vmem:[%s7299_s1 + $0xdb0] ss:$8 sps:$4 sm:$0xff]   ;;  %v5405_v36 = vld [vmem:[%s7299_s1 + $0xca4] ss:$8 sps:$4 sm:$0xff]  }
 0x185   :  { %v3583_v45 = vpop.f32.mrf.mxu1  ;;  %3877 = vmatprep.subr.bf16.mxu1 %v5336_v37  ;;  %v6865_v47 = vadd.f32 %v3581_v39, %v3541_v40  ;;  %v3543_v48 = vadd.f32 %v3542_v44, %v6662_v31  ;;  %3866 = vmatprep.mubr.bf16.mxu0 %v738_v30  ;;  %v5345_v31 = vld [vmem:[%s7299_s1 + $0xc44] ss:$8 sps:$4 sm:$0xff]   ;;  %v5399_v30 = vld [vmem:[%s7299_s1 + $0xcb4] ss:$8 sps:$4 sm:$0xff]   ;;  %v5406_v39 = vld [vmem:[%s7299_s1 + $0xda0] ss:$8 sps:$4 sm:$0xff]  }
 0x186   :  { %3907 = vmatprep.mubr.bf16.mxu1 %v748_v29  ;;  %v3544_v50 = vpop.f32.mrf.mxu0  ;;  %v5408_v37 = vld [vmem:[%s7299_s1 + $0xda4] ss:$8 sps:$4 sm:$0xff]   ;;  %v701_v29 = vcombine.high %v6793_v14, %v6793_v14  ;;  %v5411_v40 = vld [vmem:[%s7299_s1 + $0xc94] ss:$8 sps:$4 sm:$0xff]   ;;  %v5412_v44 = vld [vmem:[%s7299_s1 + $0xd90] ss:$8 sps:$4 sm:$0xff]  }
 0x187   :  { %v3585_v51 = vpop.f32.mrf.mxu1  ;;  %v6868_v6 = vadd.f32 %v3583_v45, %v3543_v48  ;;  %3837 = vmatpush1.bf16.msra.mxu0 %v5331_v41  ;;  %v5414_v14 = vld [vmem:[%s7299_s1 + $0xd94] ss:$8 sps:$4 sm:$0xff]   ;;  %v5417_v45 = vld [vmem:[%s7299_s1 + $0xc84] ss:$8 sps:$4 sm:$0xff]   ;;  %v724_v48 = vrot.slane %v6809_v19, %v5723_v49  ;;  %v5415_v50 = vld [vmem:[%s7299_s1 + $0xc80] ss:$8 sps:$4 sm:$0xff]  }
 0x188   :  { %3878 = vmatpush1.bf16.msra.mxu1 %v5334_v43  ;;  %v3545_v54 = vpop.f32.mrf.mxu0  ;;  %3838 = vmatprep.subr.bf16.mxu0 %v5339_v46  ;;  %v7017_v41 = vrot.slane %v701_v29, %v5723_v49  ;;  %v5409_v43 = vld [vmem:[%s7299_s1 + $0xc90] ss:$8 sps:$4 sm:$0xff]   ;;  %v5420_v46 = vld [vmem:[%s7299_s1 + $0xd84] ss:$8 sps:$4 sm:$0xff]   ;;  %v5418_v51 = vld [vmem:[%s7299_s1 + $0xd80] ss:$8 sps:$4 sm:$0xff]  }
 0x189   :  { %v3586_v42 = vpop.f32.mrf.mxu1  ;;  %3879 = vmatprep.subr.bf16.mxu1 %v5342_v25  ;;  %v5426_v19 = vld [vmem:[%s7299_s1 + $0xf74] ss:$8 sps:$4 sm:$0xff]   ;;  %v746_v54 = vcombine.high %v724_v48, %v724_v48  ;;  %v5469_v29 = vld [vmem:[%s7299_s1 + $0xef0] ss:$8 sps:$4 sm:$0xff]  }
 0x18a   :  { %v717_v25 = vcombine.high %v7017_v41, %v7017_v41  ;;  %v5421_v42 = vld [vmem:[%s7299_s1 + $0xe70] ss:$8 sps:$4 sm:$0xff]  }
 0x18b   :  { %3839 = vmatpush1.bf16.msra.mxu0 %v5337_v52  ;;  %v5423_v52 = vld [vmem:[%s7299_s1 + $0xe74] ss:$8 sps:$4 sm:$0xff]  }
 0x18c   :  { %3880 = vmatpush1.bf16.msra.mxu1 %v5340_v53  ;;  %3840 = vmatprep.subr.bf16.mxu0 %v5345_v31  ;;  %v745_v53 = vrot.slane %v717_v25, %v5723_v49  ;;  %v5424_v31 = vld [vmem:[%s7299_s1 + $0xf70] ss:$8 sps:$4 sm:$0xff]  }
 0x18d   :  { %3881 = vmatprep.subr.bf16.mxu1 %v5348_v55  ;;  %v5429_v55 = vld [vmem:[%s7299_s1 + $0xe64] ss:$8 sps:$4 sm:$0xff]   ;;  %v5484_v25 = vld [vmem:[%s7299_s1 + $0xfd0] ss:$8 sps:$4 sm:$0xff]  }
 0x18f   :  { %3841 = vmatpush1.bf16.msra.mxu0 %v5343_v56  ;;  %v5432_v56 = vld [vmem:[%s7299_s1 + $0xf64] ss:$8 sps:$4 sm:$0xff]  }
 0x190   :  { %3882 = vmatpush1.bf16.msra.mxu1 %v5346_v57  ;;  %3842 = vmatprep.subr.bf16.mxu0 %v5351_v58  ;;  %v749_v57 = vcombine.high %v745_v53, %v745_v53 }
 0x191   :  { %3883 = vmatprep.subr.bf16.mxu1 %v5354_v59 }
 0x193   :  { %3843 = vmatpush1.bf16.msra.mxu0 %v5349_v32 }
 0x194   :  { %3884 = vmatpush1.bf16.msra.mxu1 %v5352_v61  ;;  %3844 = vmatprep.subr.bf16.mxu0 %v5357_v62  ;;  %v5427_v61 = vld [vmem:[%s7299_s1 + $0xe60] ss:$8 sps:$4 sm:$0xff]  }
 0x195   :  { %3885 = vmatprep.subr.bf16.mxu1 %v5360_v63  ;;  %v5430_v62 = vld [vmem:[%s7299_s1 + $0xf60] ss:$8 sps:$4 sm:$0xff]  }
 0x197   :  { %3845 = vmatpush1.bf16.msra.mxu0 %v5355_v0 }
 0x198   :  { %3886 = vmatpush1.bf16.msra.mxu1 %v5358_v1  ;;  %3846 = vmatprep.subr.bf16.mxu0 %v5363_v3  ;;  %v5435_v1 = vld [vmem:[%s7299_s1 + $0xe54] ss:$8 sps:$4 sm:$0xff]  }
 0x199   :  { %3887 = vmatprep.subr.bf16.mxu1 %v5366_v4 }
 0x19b   :  { %3847 = vmatpush1.bf16.msra.mxu0 %v5361_v5 }
 0x19c   :  { %3888 = vmatpush1.bf16.msra.mxu1 %v5364_v7  ;;  %3848 = vmatprep.subr.bf16.mxu0 %v5369_v35 }
 0x19d   :  { %3889 = vmatprep.subr.bf16.mxu1 %v5372_v8  ;;  %v5433_v8 = vld [vmem:[%s7299_s1 + $0xe50] ss:$8 sps:$4 sm:$0xff]  }
 0x19f   :  { %3849 = vmatpush1.bf16.msra.mxu0 %v5367_v10  ;;  %v5436_v10 = vld [vmem:[%s7299_s1 + $0xf50] ss:$8 sps:$4 sm:$0xff]  }
 0x1a0   :  { %3890 = vmatpush1.bf16.msra.mxu1 %v5370_v11  ;;  %3850 = vmatprep.subr.bf16.mxu0 %v5375_v12 }
 0x1a1   :  { %3891 = vmatprep.subr.bf16.mxu1 %v5378_v13  ;;  %v5444_v13 = vld [vmem:[%s7299_s1 + $0xf44] ss:$8 sps:$4 sm:$0xff]  }
 0x1a3   :  { %3851 = vmatpush2.bf16.msra.mxu0 %v5373_v15  ;;  %v5439_v15 = vld [vmem:[%s7299_s1 + $0xe40] ss:$8 sps:$4 sm:$0xff]  }
 0x1a4   :  { %3892 = vmatpush2.bf16.msra.mxu1 %v5376_v16  ;;  %3852 = vmatprep.subr.bf16.mxu0 %v5381_v17  ;;  %v5442_v16 = vld [vmem:[%s7299_s1 + $0xf40] ss:$8 sps:$4 sm:$0xff]   ;;  %v5447_v17 = vld [vmem:[%s7299_s1 + $0xe34] ss:$8 sps:$4 sm:$0xff]  }
 0x1a5   :  { %3893 = vmatprep.subr.bf16.mxu1 %v5384_v18  ;;  %v5450_v18 = vld [vmem:[%s7299_s1 + $0xf34] ss:$8 sps:$4 sm:$0xff]  }
 0x1a7   :  { %3853 = vmatpush2.bf16.msra.mxu0 %v5379_v20  ;;  %v5445_v20 = vld [vmem:[%s7299_s1 + $0xe30] ss:$8 sps:$4 sm:$0xff]  }
 0x1a8   :  { %3894 = vmatpush2.bf16.msra.mxu1 %v5382_v21  ;;  %3854 = vmatprep.subr.bf16.mxu0 %v5387_v22  ;;  %v5448_v21 = vld [vmem:[%s7299_s1 + $0xf30] ss:$8 sps:$4 sm:$0xff]   ;;  %v5453_v22 = vld [vmem:[%s7299_s1 + $0xe24] ss:$8 sps:$4 sm:$0xff]  }
 0x1a9   :  { %3895 = vmatprep.subr.bf16.mxu1 %v5390_v23  ;;  %v5456_v23 = vld [vmem:[%s7299_s1 + $0xf24] ss:$8 sps:$4 sm:$0xff]  }
 0x1ab   :  { %3855 = vmatpush2.bf16.msra.mxu0 %v5385_v24  ;;  %v5451_v24 = vld [vmem:[%s7299_s1 + $0xe20] ss:$8 sps:$4 sm:$0xff]  }
 0x1ac   :  { %3896 = vmatpush2.bf16.msra.mxu1 %v5388_v26  ;;  %3856 = vmatprep.subr.bf16.mxu0 %v5393_v2  ;;  %v5454_v26 = vld [vmem:[%s7299_s1 + $0xf20] ss:$8 sps:$4 sm:$0xff]   ;;  %v5459_v2 = vld [vmem:[%s7299_s1 + $0xe14] ss:$8 sps:$4 sm:$0xff]  }
 0x1ad   :  { %3897 = vmatprep.subr.bf16.mxu1 %v5396_v27  ;;  %v5462_v27 = vld [vmem:[%s7299_s1 + $0xf14] ss:$8 sps:$4 sm:$0xff]  }
 0x1af   :  { %3857 = vmatpush2.bf16.msra.mxu0 %v5391_v28  ;;  %v5457_v28 = vld [vmem:[%s7299_s1 + $0xe10] ss:$8 sps:$4 sm:$0xff]  }
 0x1b0   :  { %3898 = vmatpush2.bf16.msra.mxu1 %v5394_v60  ;;  %3858 = vmatprep.subr.bf16.mxu0 %v5399_v30  ;;  %v5460_v60 = vld [vmem:[%s7299_s1 + $0xf10] ss:$8 sps:$4 sm:$0xff]   ;;  %v5465_v30 = vld [vmem:[%s7299_s1 + $0xe04] ss:$8 sps:$4 sm:$0xff]  }
 0x1b1   :  { %3899 = vmatprep.subr.bf16.mxu1 %v5402_v33  ;;  %v5468_v33 = vld [vmem:[%s7299_s1 + $0xf04] ss:$8 sps:$4 sm:$0xff]  }
 0x1b3   :  { %3859 = vmatpush2.bf16.msra.mxu0 %v5397_v34  ;;  %v5463_v34 = vld [vmem:[%s7299_s1 + $0xe00] ss:$8 sps:$4 sm:$0xff]  }
 0x1b4   :  { %3900 = vmatpush2.bf16.msra.mxu1 %v5400_v9  ;;  %3860 = vmatprep.subr.bf16.mxu0 %v5405_v36  ;;  %v5466_v9 = vld [vmem:[%s7299_s1 + $0xf00] ss:$8 sps:$4 sm:$0xff]   ;;  %v5471_v36 = vld [vmem:[%s7299_s1 + $0xef4] ss:$8 sps:$4 sm:$0xff]  }
 0x1b5   :  { %3901 = vmatprep.subr.bf16.mxu1 %v5408_v37  ;;  %v5474_v37 = vld [vmem:[%s7299_s1 + $0xff4] ss:$8 sps:$4 sm:$0xff]  }
 0x1b7   :  { %3861 = vmatpush2.bf16.msra.mxu0 %v5403_v38  ;;  %v5472_v38 = vld [vmem:[%s7299_s1 + $0xff0] ss:$8 sps:$4 sm:$0xff]  }
 0x1b8   :  { %3902 = vmatpush2.bf16.msra.mxu1 %v5406_v39  ;;  %3862 = vmatprep.subr.bf16.mxu0 %v5411_v40  ;;  %v5477_v39 = vld [vmem:[%s7299_s1 + $0xee4] ss:$8 sps:$4 sm:$0xff]  }
 0x1b9   :  { %3903 = vmatprep.subr.bf16.mxu1 %v5414_v14  ;;  %v5480_v40 = vld [vmem:[%s7299_s1 + $0xfe4] ss:$8 sps:$4 sm:$0xff]   ;;  %v5475_v14 = vld [vmem:[%s7299_s1 + $0xee0] ss:$8 sps:$4 sm:$0xff]  }
 0x1bb   :  { %3863 = vmatpush2.bf16.msra.mxu0 %v5409_v43  ;;  %v5478_v43 = vld [vmem:[%s7299_s1 + $0xfe0] ss:$8 sps:$4 sm:$0xff]  }
 0x1bc   :  { %3904 = vmatpush2.bf16.msra.mxu1 %v5412_v44  ;;  %3864 = vmatprep.subr.bf16.mxu0 %v5417_v45  ;;  %v5483_v44 = vld [vmem:[%s7299_s1 + $0xed4] ss:$8 sps:$4 sm:$0xff]  }
 0x1bd   :  { %3905 = vmatprep.subr.bf16.mxu1 %v5420_v46  ;;  %v5486_v45 = vld [vmem:[%s7299_s1 + $0xfd4] ss:$8 sps:$4 sm:$0xff]   ;;  %v5481_v46 = vld [vmem:[%s7299_s1 + $0xed0] ss:$8 sps:$4 sm:$0xff]  }
 0x1bf   :  { %3865 = vmatpush2.bf16.msra.mxu0 %v5415_v50  ;;  %v5492_v50 = vld [vmem:[%s7299_s1 + $0xfc4] ss:$8 sps:$4 sm:$0xff]  }
 0x1c0   :  { %3906 = vmatpush2.bf16.msra.mxu1 %v5418_v51  ;;  %3916 = vmatprep.subr.bf16.mxu0 %v5423_v52  ;;  %v5487_v51 = vld [vmem:[%s7299_s1 + $0xec0] ss:$8 sps:$4 sm:$0xff]  }
 0x1c1   :  { %3957 = vmatprep.subr.bf16.mxu1 %v5426_v19  ;;  %v5490_v52 = vld [vmem:[%s7299_s1 + $0xfc0] ss:$8 sps:$4 sm:$0xff]   ;;  %v5495_v19 = vld [vmem:[%s7299_s1 + $0xeb4] ss:$8 sps:$4 sm:$0xff]  }
 0x1c2   :  { %v3622_v58 = vpop.f32.mrf.mxu0  ;;  %3867 = vmatmul.mubr.bf16.vlgmr.msra.gmra.mxu0 %v724_v48  ;;  %v5489_v48 = vld [vmem:[%s7299_s1 + $0xec4] ss:$8 sps:$4 sm:$0xff]  }
 0x1c3   :  { %v3663_v59 = vpop.f32.mrf.mxu1  ;;  %3908 = vmatmul.mubr.bf16.vlgmr.msra.gmra.mxu1 %v746_v54  ;;  %v3623_v32 = vadd.f32 %v3622_v58, %v6865_v47  ;;  %3917 = vmatpush1.bf16.msra.mxu0 %v5421_v42  ;;  %v5438_v47 = vld [vmem:[%s7299_s1 + $0xf54] ss:$8 sps:$4 sm:$0xff]   ;;  %v5493_v54 = vld [vmem:[%s7299_s1 + $0xeb0] ss:$8 sps:$4 sm:$0xff]  }
 0x1c4   :  { %3958 = vmatpush1.bf16.msra.mxu1 %v5424_v31  ;;  %v3624_v63 = vpop.f32.mrf.mxu0  ;;  %3918 = vmatprep.subr.bf16.mxu0 %v5429_v55  ;;  %v5496_v42 = vld [vmem:[%s7299_s1 + $0xfb0] ss:$8 sps:$4 sm:$0xff]   ;;  %v5501_v31 = vld [vmem:[%s7299_s1 + $0xea4] ss:$8 sps:$4 sm:$0xff]   ;;  %v5507_v58 = vld [vmem:[%s7299_s1 + $0xe94] ss:$8 sps:$4 sm:$0xff]  }
 0x1c5   :  { %v3665_v0 = vpop.f32.mrf.mxu1  ;;  %3959 = vmatprep.subr.bf16.mxu1 %v5432_v56  ;;  %v7073_v3 = vadd.f32 %v3663_v59, %v3623_v32  ;;  %v3625_v4 = vadd.f32 %v3624_v63, %v6868_v6  ;;  %3948 = vmatprep.mubr.bf16.mxu0 %v745_v53  ;;  %v5441_v6 = vld [vmem:[%s7299_s1 + $0xe44] ss:$8 sps:$4 sm:$0xff]   ;;  %v5498_v53 = vld [vmem:[%s7299_s1 + $0xfb4] ss:$8 sps:$4 sm:$0xff]   ;;  %v5499_v56 = vld [vmem:[%s7299_s1 + $0xea0] ss:$8 sps:$4 sm:$0xff]  }
 0x1c6   :  { %3989 = vmatprep.mubr.bf16.mxu1 %v749_v57  ;;  %v3626_v5 = vpop.f32.mrf.mxu0  ;;  %v5504_v55 = vld [vmem:[%s7299_s1 + $0xfa4] ss:$8 sps:$4 sm:$0xff]   ;;  %v5502_v57 = vld [vmem:[%s7299_s1 + $0xfa0] ss:$8 sps:$4 sm:$0xff]   ;;  %v5510_v59 = vld [vmem:[%s7299_s1 + $0xf94] ss:$8 sps:$4 sm:$0xff]  }
 0x1c7   :  { %v3667_v7 = vpop.f32.mrf.mxu1  ;;  %v7076_v35 = vadd.f32 %v3665_v0, %v3625_v4  ;;  %3919 = vmatpush1.bf16.msra.mxu0 %v5427_v61  ;;  %v5505_v32 = vld [vmem:[%s7299_s1 + $0xe90] ss:$8 sps:$4 sm:$0xff]   ;;  %v5516_v63 = vld [vmem:[%s7299_s1 + $0xf84] ss:$8 sps:$4 sm:$0xff]   ;;  %v731_v0 = vrot.slane %v7017_v41, %v5723_v49 }
 0x1c8   :  { %3960 = vmatpush1.bf16.msra.mxu1 %v5430_v62  ;;  %v3627_v11 = vpop.f32.mrf.mxu0  ;;  %3920 = vmatprep.subr.bf16.mxu0 %v5435_v1  ;;  %v5508_v61 = vld [vmem:[%s7299_s1 + $0xf90] ss:$8 sps:$4 sm:$0xff]   ;;  %v5513_v62 = vld [vmem:[%s7299_s1 + $0xe84] ss:$8 sps:$4 sm:$0xff]   ;;  %v5511_v1 = vld [vmem:[%s7299_s1 + $0xe80] ss:$8 sps:$4 sm:$0xff]  }
 0x1c9   :  { %v3668_v12 = vpop.f32.mrf.mxu1  ;;  %3961 = vmatprep.subr.bf16.mxu1 %v5438_v47  ;;  %v5514_v47 = vld [vmem:[%s7299_s1 + $0xf80] ss:$8 sps:$4 sm:$0xff]   ;;  %v747_v4 = vcombine.high %v731_v0, %v731_v0 }
 0x1cb   :  { %3921 = vmatpush1.bf16.msra.mxu0 %v5433_v8 }
 0x1cc   :  { %3962 = vmatpush1.bf16.msra.mxu1 %v5436_v10  ;;  %3922 = vmatprep.subr.bf16.mxu0 %v5441_v6 }
 0x1cd   :  { %3963 = vmatprep.subr.bf16.mxu1 %v5444_v13 }
 0x1cf   :  { %3923 = vmatpush1.bf16.msra.mxu0 %v5439_v15 }
 0x1d0   :  { %3964 = vmatpush1.bf16.msra.mxu1 %v5442_v16  ;;  %3924 = vmatprep.subr.bf16.mxu0 %v5447_v17  ;;  %v5518_v17 = vld [vmem:[%s7301_s3 + $0x78] sm:$0xff]  }
 0x1d1   :  { %3965 = vmatprep.subr.bf16.mxu1 %v5450_v18  ;;  %v5519_v18 = vld [vmem:[%s7301_s3 + $0x38] sm:$0xff]  }
 0x1d3   :  { %3925 = vmatpush1.bf16.msra.mxu0 %v5445_v20  ;;  %v5522_v20 = vld [vmem:[%s7301_s3 + $0x68] sm:$0xff]  }
 0x1d4   :  { %3966 = vmatpush1.bf16.msra.mxu1 %v5448_v21  ;;  %3926 = vmatprep.subr.bf16.mxu0 %v5453_v22  ;;  %v5523_v21 = vld [vmem:[%s7301_s3 + $0x28] sm:$0xff]   ;;  %v5524_v22 = vld [vmem:[%s7301_s3 + $0x60] sm:$0xff]  }
 0x1d5   :  { %3967 = vmatprep.subr.bf16.mxu1 %v5456_v23  ;;  %v5525_v23 = vld [vmem:[%s7301_s3 + $0x20] sm:$0xff]  }
 0x1d7   :  { %3927 = vmatpush1.bf16.msra.mxu0 %v5451_v24  ;;  %v5526_v24 = vld [vmem:[%s7301_s3 + $0x58] sm:$0xff]  }
 0x1d8   :  { %3968 = vmatpush1.bf16.msra.mxu1 %v5454_v26  ;;  %3928 = vmatprep.subr.bf16.mxu0 %v5459_v2  ;;  %v5527_v26 = vld [vmem:[%s7301_s3 + $0x18] sm:$0xff]   ;;  %v5528_v2 = vld [vmem:[%s7301_s3 + $0x50] sm:$0xff]  }
 0x1d9   :  { %3969 = vmatprep.subr.bf16.mxu1 %v5462_v27  ;;  %v5529_v27 = vld [vmem:[%s7301_s3 + $0x10] sm:$0xff]  }
 0x1db   :  { %3929 = vmatpush1.bf16.msra.mxu0 %v5457_v28 }
 0x1dc   :  { %3970 = vmatpush1.bf16.msra.mxu1 %v5460_v60  ;;  %3930 = vmatprep.subr.bf16.mxu0 %v5465_v30 }
 0x1dd   :  { %3971 = vmatprep.subr.bf16.mxu1 %v5468_v33 }
 0x1df   :  { %3931 = vmatpush1.bf16.msra.mxu0 %v5463_v34 }
 0x1e0   :  { %3972 = vmatpush1.bf16.msra.mxu1 %v5466_v9  ;;  %3932 = vmatprep.subr.bf16.mxu0 %v5471_v36  ;;  %v5530_v9 = vld [vmem:[%s7301_s3 + $0x48] sm:$0xff]  }
 0x1e1   :  { %3973 = vmatprep.subr.bf16.mxu1 %v5474_v37 }
 0x1e3   :  { %3933 = vmatpush2.bf16.msra.mxu0 %v5469_v29  ;;  %v5531_v29 = vld [vmem:[%s7301_s3 + $0x8] sm:$0xff]  }
 0x1e4   :  { %3974 = vmatpush2.bf16.msra.mxu1 %v5472_v38  ;;  %3934 = vmatprep.subr.bf16.mxu0 %v5477_v39 }
 0x1e5   :  { %3975 = vmatprep.subr.bf16.mxu1 %v5480_v40 }
 0x1e7   :  { %3935 = vmatpush2.bf16.msra.mxu0 %v5475_v14 }
 0x1e8   :  { %3976 = vmatpush2.bf16.msra.mxu1 %v5478_v43  ;;  %3936 = vmatprep.subr.bf16.mxu0 %v5483_v44  ;;  %v5532_v44 = vld [vmem:[%s7301_s3 + $0x40] sm:$0xff]  }
 0x1e9   :  { %3977 = vmatprep.subr.bf16.mxu1 %v5486_v45  ;;  %v5533_v45 = vld [vmem:[%s7301_s3] sm:$0xff]  }
 0x1eb   :  { %3937 = vmatpush2.bf16.msra.mxu0 %v5481_v46 }
 0x1ec   :  { %3978 = vmatpush2.bf16.msra.mxu1 %v5484_v25  ;;  %3938 = vmatprep.subr.bf16.mxu0 %v5489_v48 }
 0x1ed   :  { %3979 = vmatprep.subr.bf16.mxu1 %v5492_v50 }
 0x1ef   :  { %3939 = vmatpush2.bf16.msra.mxu0 %v5487_v51 }
 0x1f0   :  { %3980 = vmatpush2.bf16.msra.mxu1 %v5490_v52  ;;  %3940 = vmatprep.subr.bf16.mxu0 %v5495_v19 }
 0x1f1   :  { %3981 = vmatprep.subr.bf16.mxu1 %v5498_v53 }
 0x1f3   :  { %3941 = vmatpush2.bf16.msra.mxu0 %v5493_v54 }
 0x1f4   :  { %3982 = vmatpush2.bf16.msra.mxu1 %v5496_v42  ;;  %3942 = vmatprep.subr.bf16.mxu0 %v5501_v31 }
 0x1f5   :  { %3983 = vmatprep.subr.bf16.mxu1 %v5504_v55 }
 0x1f7   :  { %3943 = vmatpush2.bf16.msra.mxu0 %v5499_v56 }
 0x1f8   :  { %3984 = vmatpush2.bf16.msra.mxu1 %v5502_v57  ;;  %3944 = vmatprep.subr.bf16.mxu0 %v5507_v58 }
 0x1f9   :  { %3985 = vmatprep.subr.bf16.mxu1 %v5510_v59 }
 0x1fb   :  { %3945 = vmatpush2.bf16.msra.mxu0 %v5505_v32 }
 0x1fc   :  { %3986 = vmatpush2.bf16.msra.mxu1 %v5508_v61  ;;  %3946 = vmatprep.subr.bf16.mxu0 %v5513_v62 }
 0x1fd   :  { %3987 = vmatprep.subr.bf16.mxu1 %v5516_v63 }
 0x1ff   :  { %3947 = vmatpush2.bf16.msra.mxu0 %v5511_v1 }
 0x200   :  { %3988 = vmatpush2.bf16.msra.mxu1 %v5514_v47  ;;  %4722 = vmatprep.subr.bf16.mxu0 %v5518_v17 }
 0x202   :  { %v3704_v5 = vpop.f32.mrf.mxu0  ;;  %3949 = vmatmul.mubr.bf16.vlgmr.msra.gmra.mxu0 %v731_v0 }
 0x203   :  { %v3745_v7 = vpop.f32.mrf.mxu1  ;;  %3990 = vmatmul.mubr.bf16.vlgmr.msra.gmra.mxu1 %v747_v4  ;;  %v3705_v49 = vadd.f32 %v3704_v5, %v7073_v3  ;;  %v5520_v3 = vld [vmem:[%s7301_s3 + $0x70] sm:$0xff]   ;;  %4723 = vmatpush3.bf16.msra.mxu0 %v5519_v18 }
 0x204   :  { %v3706_v41 = vpop.f32.mrf.mxu0  ;;  %4724 = vmatprep.subr.bf16.mxu0 %v5520_v3 }
 0x205   :  { %v3747_v8 = vpop.f32.mrf.mxu1  ;;  %v3746_v10 = vadd.f32 %v3745_v7, %v3705_v49  ;;  %v3707_v11 = vadd.f32 %v3706_v41, %v7076_v35  ;;  %v5521_v35 = vld [vmem:[%s7301_s3 + $0x30] sm:$0xff]  }
 0x206   :  { %v3708_v12 = vpop.f32.mrf.mxu0 }
 0x207   :  { %v3749_v6 = vpop.f32.mrf.mxu1  ;;  %v3748_v13 = vadd.f32 %v3747_v8, %v3707_v11  ;;  %4725 = vmatpush3.bf16.msra.mxu0 %v5521_v35 }
 0x208   :  { %v3709_v15 = vpop.f32.mrf.mxu0  ;;  %4726 = vmatprep.subr.bf16.mxu0 %v5522_v20 }
 0x209   :  { %v3750_v16 = vpop.f32.mrf.mxu1 }
 0x20b   :  { %4727 = vmatpush3.bf16.msra.mxu0 %v5523_v21 }
 0x20c   :  { %4728 = vmatprep.subr.bf16.mxu0 %v5524_v22 }
 0x20f   :  { %4729 = vmatpush3.bf16.msra.mxu0 %v5525_v23 }
 0x210   :  { %4730 = vmatprep.subr.bf16.mxu0 %v5526_v24 }
 0x213   :  { %4731 = vmatpush3.bf16.msra.mxu0 %v5527_v26 }
 0x214   :  { %4732 = vmatprep.subr.bf16.mxu0 %v5528_v2 }
 0x217   :  { %4733 = vmatpush3.bf16.msra.mxu0 %v5529_v27 }
 0x218   :  { %4734 = vmatprep.subr.bf16.mxu0 %v5530_v9 }
 0x21b   :  { %4735 = vmatpush3.bf16.msra.mxu0 %v5531_v29 }
 0x21c   :  { %4736 = vmatprep.subr.bf16.mxu0 %v5532_v44 }
 0x21f   :  { %4737 = vmatpush3.bf16.msra.mxu0 %v5533_v45 }
 0x242   :  { %v3786_v28 = vpop.f32.mrf.mxu0 }
 0x243   :  { %v3827_v60 = vpop.f32.mrf.mxu1  ;;  %v3787_v30 = vadd.f32 %v3786_v28, %v3746_v10  ;;  %v4705_v10 = vld [vmem:[%s7302_s4] ss:$0 sm:$0xff] }
 0x244   :  { %v3788_v33 = vpop.f32.mrf.mxu0 }
 0x245   :  { %v3829_v34 = vpop.f32.mrf.mxu1  ;;  %v3828_v36 = vadd.f32 %v3827_v60, %v3787_v30  ;;  %v3789_v37 = vadd.f32 %v3788_v33, %v3748_v13 }
 0x246   :  { %v3790_v38 = vpop.f32.mrf.mxu0 }
 0x247   :  { %v3831_v39 = vpop.f32.mrf.mxu1  ;;  %v3830_v40 = vadd.f32 %v3829_v34, %v3789_v37 }
 0x248   :  { %v3791_v14 = vpop.f32.mrf.mxu0 }
 0x249   :  { %v3832_v43 = vpop.f32.mrf.mxu1 }
 0x282   :  { %v3868_v46 = vpop.f32.mrf.mxu0 }
 0x283   :  { %v3909_v25 = vpop.f32.mrf.mxu1  ;;  %v3869_v48 = vadd.f32 %v3868_v46, %v3828_v36 }
 0x284   :  { %v3870_v50 = vpop.f32.mrf.mxu0 }
 0x285   :  { %v3911_v51 = vpop.f32.mrf.mxu1  ;;  %v3910_v52 = vadd.f32 %v3909_v25, %v3869_v48  ;;  %v3871_v31 = vadd.f32 %v3870_v50, %v3830_v40 }
 0x286   :  { %v3872_v19 = vpop.f32.mrf.mxu0 }
 0x287   :  { %v3913_v53 = vpop.f32.mrf.mxu1  ;;  %v3912_v57 = vadd.f32 %v3911_v51, %v3871_v31 }
 0x288   :  { %v3873_v54 = vpop.f32.mrf.mxu0 }
 0x289   :  { %v3914_v42 = vpop.f32.mrf.mxu1 }
 0x2c2   :  { %v3950_v55 = vpop.f32.mrf.mxu0 }
 0x2c3   :  { %v3991_v56 = vpop.f32.mrf.mxu1  ;;  %v3951_v58 = vadd.f32 %v3950_v55, %v3910_v52 }
 0x2c4   :  { %v3952_v59 = vpop.f32.mrf.mxu0 }
 0x2c5   :  { %v3993_v32 = vpop.f32.mrf.mxu1  ;;  %v3992_v61 = vadd.f32 %v3991_v56, %v3951_v58  ;;  %v3953_v62 = vadd.f32 %v3952_v59, %v3912_v57 }
 0x2c6   :  { %v3954_v63 = vpop.f32.mrf.mxu0 }
 0x2c7   :  { %v3995_v0 = vpop.f32.mrf.mxu1  ;;  %v3994_v1 = vadd.f32 %v3993_v32, %v3953_v62  ;;  %v3998_v47 = vmax.f32 %v3992_v61, 0.0 }
 0x2c8   :  { %v3955_v4 = vpop.f32.mrf.mxu0 }
 0x2c9   :  { %v3996_v5 = vpop.f32.mrf.mxu1  ;;  %v3999_v7 = vmax.f32 %v3994_v1, 0.0  ;;  %v4000_v41 = vpack.c.bf16 %v3998_v47, %v3998_v47 }
 0x2cb   :  { %v4001_v49 = vpack.c.bf16 %v3999_v7, %v3999_v7 }
 0x2cd   :  { %4169 = vmatprep.mubr.bf16.mxu0 %v4001_v49 }
 0x2ce   :  { %4170 = vmatmul.mubr.bf16.vlgmr.msra.gmra.mxu0 %v4000_v41 }
 0x38e   :  { %v4738_v8 = vpop.f32.mrf.mxu0 }
 0x390   :  { %v4739_v11 = vpop.f32.mrf.mxu0 }
 0x391   :  { %v4740_v12 = vadd.f32 %v4739_v11, %v4738_v8 }
 0x392   :  { %v4741_v6 = vpop.f32.mrf.mxu0 }
 0x393   :  { %v4172_v13 = vadd.f32 %v4740_v12, %v4705_v10 }
 0x394   :  { %v4742_v15 = vpop.f32.mrf.mxu0 }
 0x395   :  { %4178 = vst.msk [vmem:[#allocation2] sm:$0x3] %vm4177_vm0, %v4172_v13 }
 0x396   :  { %5545 = shalt.err (!%p5542_p4)
}
 0x397   :  { %4188 = dma.vmem_to_hbm [thread:$0]  %s4186_s26, 32, %s7303_s5, [#allocation3]  }
 0x398   :  { %5554 = dma.done.wait [#allocation3], 32  }
 0x399   :  { %5555 = vsyncadd [#allocation3], 4294967264 }
 0x39a   :  { %4192 = vsyncpa [#allocation3], 1 }

</bundles_post_ra>
